<compile_context>
chip_gen: v7x
topology: tpu7x:2x2x1
jax: 0.10.0
libtpu: 0.0.40
codegen_flags: <defaults>
</compile_context>

<pallas_src>
import jax
import jax.numpy as jnp
from jax.experimental import pallas as pl
from jax.experimental.pallas import tpu as pltpu

LANE = 128     # TPU lane width: each gate block is padded to a multiple of this.
SUBLANE = 8    # f32 sublane count: batch is padded to a multiple of this.


def _round_up(x, m):
    return ((x + m - 1) // m) * m


# -----------------------------------------------------------------------------
# Fused multi-layer GRU kernel (single invocation, no grid).
# -----------------------------------------------------------------------------
def _make_encoder_gru_kernel(num_layers, T, Bp, Hp, unroll_threshold=32):
    """Builds the fused kernel for `num_layers` stacked GRU layers.

    Ref layout (in order):
      x_ref                    : (T*Bp, Ep) bf16, time-major (t-major, b-minor)
      per layer (x num_layers) : wih (in_p, 3Hp) bf16, whh (Hp, 3Hp) bf16,
                                 b_gi (1, 3Hp) f32, b_hn (1, Hp) f32
      out_ref                  : (T*Bp, Hp) f32 top-layer sequence
      hlast_ref                : (L*Bp, Hp) f32 final hidden state per layer
      gi_ref                   : (T*Bp, 3Hp) f32 scratch (re-used per layer)
      hseq_ref (if L > 1)      : (T*Bp, Hp) bf16 scratch (re-used per layer)
    """

    def kernel(*refs):
        x_ref = refs[0]
        layer_refs = refs[1:1 + 4 * num_layers]
        out_ref = refs[1 + 4 * num_layers]
        hlast_ref = refs[2 + 4 * num_layers]
        gi_ref = refs[3 + 4 * num_layers]
        hseq_ref = refs[4 + 4 * num_layers] if num_layers > 1 else None

        for l in range(num_layers):
            wih = layer_refs[4 * l][...]       # bf16 (in_p, 3Hp)
            whh = layer_refs[4 * l + 1][...]   # bf16 (Hp, 3Hp), resident all steps
            b_gi = layer_refs[4 * l + 2][...]  # f32  (1, 3Hp)
            b_hn = layer_refs[4 * l + 3][...]  # f32  (1, Hp)

            # Hoisted input projection: one big MXU matmul for the whole
            # sequence (bf16 operands, f32 accumulation), fused r/z/n bias.
            cur = x_ref[...] if l == 0 else hseq_ref[...]          # bf16
            gi_ref[...] = (jnp.dot(cur, wih,
                                   preferred_element_type=jnp.float32) + b_gi)

            # Hoist the n-gate hidden-bias broadcast out of the time loop.
            b_hn_b = jnp.broadcast_to(b_hn, (Bp, Hp))

            is_last = (l == num_layers - 1)
            dst_ref = out_ref if is_last else hseq_ref
            dst_dtype = jnp.float32 if is_last else jnp.bfloat16

            def step(h, row):
                # All tiles below are full (8,128)-aligned vreg blocks.
                gi = gi_ref[pl.ds(row, Bp), :]                      # f32 (Bp, 3Hp)
                gh = jnp.dot(h.astype(jnp.bfloat16), whh,
                             preferred_element_type=jnp.float32)    # f32 (Bp, 3Hp)
                r = jax.nn.sigmoid(gi[:, 0:Hp] + gh[:, 0:Hp])
                z = jax.nn.sigmoid(gi[:, Hp:2 * Hp] + gh[:, Hp:2 * Hp])
                n = jnp.tanh(gi[:, 2 * Hp:3 * Hp]
                             + r * (gh[:, 2 * Hp:3 * Hp] + b_hn_b))
                h_new = (1.0 - z) * n + z * h
                dst_ref[pl.ds(row, Bp), :] = h_new.astype(dst_dtype)
                return h_new

            h = jnp.zeros((Bp, Hp), jnp.float32)   # PyTorch GRU h0 = zeros
            if T <= unroll_threshold:
                # Short sequence: static unroll, all slice starts static.
                for t in range(T):
                    h = step(h, t * Bp)
            else:
                # Long sequence: moderately unrolled fori_loop caps vreg
                # pressure / code size while keeping scheduler visibility.
                def body(t, h_carry):
                    row = pl.multiple_of(t * Bp, Bp)
                    return step(h_carry, row)
                h = jax.lax.fori_loop(0, T, body, h, unroll=min(8, T))

            hlast_ref[pl.ds(l * Bp, Bp), :] = h

    return kernel


# -----------------------------------------------------------------------------
# Parameter re-layout: PyTorch GRU params -> padded, gate-blocked, transposed.
# -----------------------------------------------------------------------------
def _prep_gru_layer(w_ih, w_hh, b_ih, b_hh, H, Hp, in_dim_p):
    """w_ih:(3H,in_dim)  w_hh:(3H,H)  b_*:(3H,), gate order [r|z|n].

    Returns:
      wih_p : (in_dim_p, 3*Hp) bf16   x @ wih_p = per-gate input projection
      whh_p : (Hp, 3*Hp)       bf16
      b_gi  : (1, 3*Hp)        f32    fused bias added to the input projection
                                      (r: b_ir+b_hr, z: b_iz+b_hz, n: b_in)
      b_hn  : (1, Hp)          f32    hidden n-gate bias (inside r*(...))
    Padded entries are exactly zero (preserved by the bf16 cast), which keeps
    padded hidden lanes identically 0 across every step.
    """
    w_ih = jnp.asarray(w_ih, jnp.float32)
    w_hh = jnp.asarray(w_hh, jnp.float32)
    b_ih = jnp.asarray(b_ih, jnp.float32)
    b_hh = jnp.asarray(b_hh, jnp.float32)

    in_dim = w_ih.shape[1]
    wih_t = w_ih.T   # (in_dim, 3H)
    whh_t = w_hh.T   # (H, 3H)

    wih_p = jnp.zeros((in_dim_p, 3 * Hp), jnp.float32)
    whh_p = jnp.zeros((Hp, 3 * Hp), jnp.float32)
    b_gi = jnp.zeros((1, 3 * Hp), jnp.float32)
    for g in range(3):
        wih_p = wih_p.at[:in_dim, g * Hp:g * Hp + H].set(wih_t[:, g * H:(g + 1) * H])
        whh_p = whh_p.at[:H, g * Hp:g * Hp + H].set(whh_t[:, g * H:(g + 1) * H])
        gate_b = b_ih[g * H:(g + 1) * H]
        if g < 2:  # fuse b_hh into r and z; the n gate keeps b_hn separate
            gate_b = gate_b + b_hh[g * H:(g + 1) * H]
        b_gi = b_gi.at[0, g * Hp:g * Hp + H].set(gate_b)
    b_hn = jnp.zeros((1, Hp), jnp.float32).at[0, :H].set(b_hh[2 * H:3 * H])
    return (wih_p.astype(jnp.bfloat16), whh_p.astype(jnp.bfloat16), b_gi, b_hn)


# -----------------------------------------------------------------------------
# EncoderRNN forward (embedding lookup is a gather -> plain JAX glue).
# -----------------------------------------------------------------------------
def encoder_rnn_forward(input_ids, params):
    """input_ids: (B, T) int32 token indices.

    Returns (top_layer_output, last_hidden):
      top_layer_output : (B, T, H)  -- batch_first, like PyTorch nn.GRU output
      last_hidden      : (L, B, H)  -- h_T of every layer
    """
    layers = params["gru_layers"]
    num_layers = len(layers)
    B, T = input_ids.shape
    emb_table = jnp.asarray(params["embedding"], jnp.float32)
    E = emb_table.shape[1]
    H = layers[0]["w_hh"].shape[1]
    Hp = _round_up(H, LANE)
    Ep = _round_up(E, LANE)
    Bp = _round_up(B, SUBLANE)

    # Embedding gather directly in time-major row order (t-major, b-minor),
    # zero-padded to (T, Bp, Ep) and cast to bf16 (matmul operand).
    gathered = jnp.take(emb_table, input_ids.T, axis=0)            # (T, B, E)
    x = jnp.pad(gathered, ((0, 0), (0, Bp - B), (0, Ep - E)))
    x2d = x.reshape(T * Bp, Ep).astype(jnp.bfloat16)

    flat = []
    for l, lp in enumerate(layers):
        in_dim_p = Ep if l == 0 else Hp
        flat.extend(_prep_gru_layer(lp["w_ih"], lp["w_hh"], lp["b_ih"], lp["b_hh"],
                                    H, Hp, in_dim_p))

    # Explicit VMEM budget: resident footprint x2 plus slack, clamped to a
    # value that fits every generation's physical VMEM.
    total_bytes = x2d.size * 2
    for w in flat:
        total_bytes += int(w.size) * w.dtype.itemsize
    total_bytes += T * Bp * 3 * Hp * 4          # gi scratch (f32)
    total_bytes += T * Bp * Hp * 4              # top-layer output (f32)
    total_bytes += num_layers * Bp * Hp * 4     # last hidden (f32)
    if num_layers > 1:
        total_bytes += T * Bp * Hp * 2          # inter-layer scratch (bf16)
    vmem_limit = int(min(96 * 2**20, max(32 * 2**20, 2 * total_bytes + (1 << 20))))

    scratch = [pltpu.VMEM((T * Bp, 3 * Hp), jnp.float32)]
    if num_layers > 1:
        scratch.append(pltpu.VMEM((T * Bp, Hp), jnp.bfloat16))

    vmem = pl.BlockSpec(memory_space=pltpu.MemorySpace.VMEM)
    out2d, hlast2d = pl.pallas_call(
        _make_encoder_gru_kernel(num_layers, T, Bp, Hp),
        out_shape=(jax.ShapeDtypeStruct((T * Bp, Hp), jnp.float32),
                   jax.ShapeDtypeStruct((num_layers * Bp, Hp), jnp.float32)),
        in_specs=[vmem] * (1 + 4 * num_layers),
        out_specs=(vmem, vmem),
        scratch_shapes=scratch,
        compiler_params=pltpu.CompilerParams(vmem_limit_bytes=vmem_limit),
    )(x2d, *flat)

    # Layout plumbing back to PyTorch conventions (done outside the kernel).
    out_tbh = out2d.reshape(T, Bp, Hp)[:, :B, :H]
    top_layer_output = jnp.transpose(out_tbh, (1, 0, 2))            # (B, T, H)
    last_hidden = hlast2d.reshape(num_layers, Bp, Hp)[:, :B, :H]    # (L, B, H)
    return top_layer_output, last_hidden


# -----------------------------------------------------------------------------
# Pure-JAX reference (PyTorch GRU semantics) for correctness checking.
# -----------------------------------------------------------------------------
def gru_layer_ref(x_tbd, w_ih, w_hh, b_ih, b_hh):
    H = w_hh.shape[1]

    def step(h, x_t):
        gi = x_t @ w_ih.T + b_ih
        gh = h @ w_hh.T + b_hh
        r = jax.nn.sigmoid(gi[:, :H] + gh[:, :H])
        z = jax.nn.sigmoid(gi[:, H:2 * H] + gh[:, H:2 * H])
        n = jnp.tanh(gi[:, 2 * H:] + r * gh[:, 2 * H:])
        h_new = (1.0 - z) * n + z * h
        return h_new, h_new

    h0 = jnp.zeros((x_tbd.shape[1], H), jnp.float32)
    _, ys = jax.lax.scan(step, h0, x_tbd)
    return ys


def encoder_rnn_forward_ref(input_ids, params):
    emb = jnp.take(params["embedding"], input_ids, axis=0)
    x = jnp.transpose(emb, (1, 0, 2)).astype(jnp.float32)
    last = []
    for layer in params["gru_layers"]:
        x = gru_layer_ref(x, layer["w_ih"], layer["w_hh"], layer["b_ih"], layer["b_hh"])
        last.append(x[-1])
    return jnp.transpose(x, (1, 0, 2)), jnp.stack(last, axis=0)


# -----------------------------------------------------------------------------
# Deterministic parameter construction (mirrors EncoderRNN.__init__ shapes).
# -----------------------------------------------------------------------------
def make_params(key, vocab_size, word_vec_dim, hidden_size, num_layers):
    keys = jax.random.split(key, 1 + 4 * num_layers)
    embedding = jax.random.normal(keys[0], (vocab_size, word_vec_dim), jnp.float32)

    bound = 1.0 / jnp.sqrt(jnp.float32(hidden_size))
    layers = []
    for l in range(num_layers):
        in_dim = word_vec_dim if l == 0 else hidden_size
        k = keys[1 + 4 * l:1 + 4 * (l + 1)]
        layers.append({
            "w_ih": jax.random.uniform(k[0], (3 * hidden_size, in_dim),
                                       jnp.float32, -bound, bound),
            "w_hh": jax.random.uniform(k[1], (3 * hidden_size, hidden_size),
                                       jnp.float32, -bound, bound),
            "b_ih": jax.random.uniform(k[2], (3 * hidden_size,),
                                       jnp.float32, -bound, bound),
            "b_hh": jax.random.uniform(k[3], (3 * hidden_size,),
                                       jnp.float32, -bound, bound),
        })
    return {"embedding": embedding, "gru_layers": layers}


if __name__ == "__main__":
    BATCH, SEQ = 2, 8
    VOCAB, WORD_DIM, HIDDEN, NUM_LAYERS = 50, 16, 32, 2

    key = jax.random.PRNGKey(0)
    k_param, k_ids = jax.random.split(key)
    params = make_params(k_param, VOCAB, WORD_DIM, HIDDEN, NUM_LAYERS)
    input_ids = jax.random.randint(k_ids, (BATCH, SEQ), 0, VOCAB, dtype=jnp.int32)

    fwd = jax.jit(encoder_rnn_forward)
    top_out, last_hidden = fwd(input_ids, params)
    top_out = jax.block_until_ready(top_out)
    last_hidden = jax.block_until_ready(last_hidden)

    assert top_out.shape == (BATCH, SEQ, HIDDEN)
    assert last_hidden.shape == (NUM_LAYERS, BATCH, HIDDEN)

    # Check against pure-JAX PyTorch-semantics reference (bf16 matmul path ->
    # tolerances loosened accordingly; gate math stays f32).
    ref_out, ref_hidden = encoder_rnn_forward_ref(input_ids, params)
    assert jnp.allclose(top_out, ref_out, rtol=3e-2, atol=3e-2)
    assert jnp.allclose(last_hidden, ref_hidden, rtol=3e-2, atol=3e-2)

    print("KERNEL_OK")
</pallas_src>

<mosaic_0001>
module attributes {stable_mosaic.version = 11 : i64} {
  func.func @kernel(%arg0: memref<64x128xbf16, #tpu.memory_space<vmem>>, %arg1: memref<128x384xbf16, #tpu.memory_space<vmem>>, %arg2: memref<128x384xbf16, #tpu.memory_space<vmem>>, %arg3: memref<1x384xf32, #tpu.memory_space<vmem>>, %arg4: memref<1x128xf32, #tpu.memory_space<vmem>>, %arg5: memref<128x384xbf16, #tpu.memory_space<vmem>>, %arg6: memref<128x384xbf16, #tpu.memory_space<vmem>>, %arg7: memref<1x384xf32, #tpu.memory_space<vmem>>, %arg8: memref<1x128xf32, #tpu.memory_space<vmem>>, %arg9: memref<64x128xf32, #tpu.memory_space<vmem>>, %arg10: memref<16x128xf32, #tpu.memory_space<vmem>>, %arg11: memref<64x384xf32, #tpu.memory_space<vmem>>, %arg12: memref<64x128xbf16, #tpu.memory_space<vmem>>) attributes {dimension_semantics = [], scalar_prefetch = 0 : i64, scratch_operands = 2 : i64, tpu.core_type = #tpu.core_type<tc>} {
    %c0 = arith.constant 0 : index
    %c0_0 = arith.constant 0 : index
    %0 = vector.load %arg1[%c0, %c0_0] : memref<128x384xbf16, #tpu.memory_space<vmem>>, vector<128x384xbf16>
    %c0_1 = arith.constant 0 : index
    %c0_2 = arith.constant 0 : index
    %1 = vector.load %arg2[%c0_1, %c0_2] : memref<128x384xbf16, #tpu.memory_space<vmem>>, vector<128x384xbf16>
    %c0_3 = arith.constant 0 : index
    %c0_4 = arith.constant 0 : index
    %2 = vector.load %arg3[%c0_3, %c0_4] : memref<1x384xf32, #tpu.memory_space<vmem>>, vector<1x384xf32>
    %c0_5 = arith.constant 0 : index
    %c0_6 = arith.constant 0 : index
    %3 = vector.load %arg4[%c0_5, %c0_6] : memref<1x128xf32, #tpu.memory_space<vmem>>, vector<1x128xf32>
    %c0_7 = arith.constant 0 : index
    %c0_8 = arith.constant 0 : index
    %4 = vector.load %arg0[%c0_7, %c0_8] : memref<64x128xbf16, #tpu.memory_space<vmem>>, vector<64x128xbf16>
    %cst = arith.constant dense<0.000000e+00> : vector<64x384xf32>
    %5 = tpu.matmul %4, %0, %cst {dimension_numbers = #tpu.dot_dimension_numbers<[1], [0], [0], [1], [0, 0, 1, 1], [], []>} : vector<64x128xbf16>, vector<128x384xbf16>, vector<64x384xf32> -> vector<64x384xf32>
    %6 = vector.broadcast %2 : vector<1x384xf32> to vector<64x384xf32>
    %7 = arith.addf %5, %6 : vector<64x384xf32>
    %c0_9 = arith.constant 0 : index
    %c0_10 = arith.constant 0 : index
    %8 = vector.load %arg11[%c0_9, %c0_10] : memref<64x384xf32, #tpu.memory_space<vmem>>, vector<64x384xf32>
    tpu.vector_store %arg11[%c0_9, %c0_10], %7 {strides = array<i32>} : memref<64x384xf32, #tpu.memory_space<vmem>>, vector<64x384xf32>,
    %9 = vector.shape_cast %3 : vector<1x128xf32> to vector<1x128xf32>
    %10 = vector.broadcast %9 : vector<1x128xf32> to vector<8x128xf32>
    %cst_11 = arith.constant 0.000000e+00 : f32
    %11 = vector.broadcast %cst_11 : f32 to vector<8x128xf32>
    %c0_12 = arith.constant 0 : index
    %c0_13 = arith.constant 0 : index
    %12 = vector.load %arg11[%c0_12, %c0_13] : memref<64x384xf32, #tpu.memory_space<vmem>>, vector<8x384xf32>
    %13 = arith.truncf %11 : vector<8x128xf32> to vector<8x128xbf16>
    %cst_14 = arith.constant dense<0.000000e+00> : vector<8x384xf32>
    %14 = tpu.matmul %13, %1, %cst_14 {dimension_numbers = #tpu.dot_dimension_numbers<[1], [0], [0], [1], [0, 0, 1, 1], [], []>} : vector<8x128xbf16>, vector<128x384xbf16>, vector<8x384xf32> -> vector<8x384xf32>
    %15 = vector.extract_strided_slice %12 {offsets = [0, 0], sizes = [8, 128], strides = [1, 1]} : vector<8x384xf32> to vector<8x128xf32>
    %16 = vector.extract_strided_slice %14 {offsets = [0, 0], sizes = [8, 128], strides = [1, 1]} : vector<8x384xf32> to vector<8x128xf32>
    %17 = arith.addf %15, %16 : vector<8x128xf32>
    %18 = arith.negf %17 : vector<8x128xf32>
    %19 = math.exp %18 : vector<8x128xf32>
    %cst_15 = arith.constant 1.000000e+00 : f32
    %20 = vector.broadcast %cst_15 : f32 to vector<8x128xf32>
    %21 = arith.addf %20, %19 : vector<8x128xf32>
    %22 = arith.divf %20, %21 : vector<8x128xf32>
    %23 = vector.extract_strided_slice %12 {offsets = [0, 128], sizes = [8, 128], strides = [1, 1]} : vector<8x384xf32> to vector<8x128xf32>
    %24 = vector.extract_strided_slice %14 {offsets = [0, 128], sizes = [8, 128], strides = [1, 1]} : vector<8x384xf32> to vector<8x128xf32>
    %25 = arith.addf %23, %24 : vector<8x128xf32>
    %26 = arith.negf %25 : vector<8x128xf32>
    %27 = math.exp %26 : vector<8x128xf32>
    %cst_16 = arith.constant 1.000000e+00 : f32
    %28 = vector.broadcast %cst_16 : f32 to vector<8x128xf32>
    %29 = arith.addf %28, %27 : vector<8x128xf32>
    %30 = arith.divf %28, %29 : vector<8x128xf32>
    %31 = vector.extract_strided_slice %12 {offsets = [0, 256], sizes = [8, 128], strides = [1, 1]} : vector<8x384xf32> to vector<8x128xf32>
    %32 = vector.extract_strided_slice %14 {offsets = [0, 256], sizes = [8, 128], strides = [1, 1]} : vector<8x384xf32> to vector<8x128xf32>
    %33 = arith.addf %32, %10 : vector<8x128xf32>
    %34 = arith.mulf %22, %33 : vector<8x128xf32>
    %35 = arith.addf %31, %34 : vector<8x128xf32>
    %36 = math.tanh %35 : vector<8x128xf32>
    %cst_17 = arith.constant 1.000000e+00 : f32
    %37 = vector.broadcast %cst_17 : f32 to vector<8x128xf32>
    %38 = arith.subf %37, %30 : vector<8x128xf32>
    %39 = arith.mulf %38, %36 : vector<8x128xf32>
    %40 = arith.mulf %30, %11 : vector<8x128xf32>
    %41 = arith.addf %39, %40 : vector<8x128xf32>
    %42 = arith.truncf %41 : vector<8x128xf32> to vector<8x128xbf16>
    %c0_18 = arith.constant 0 : index
    %c0_19 = arith.constant 0 : index
    %43 = vector.load %arg12[%c0_18, %c0_19] : memref<64x128xbf16, #tpu.memory_space<vmem>>, vector<8x128xbf16>
    tpu.vector_store %arg12[%c0_18, %c0_19], %42 {strides = array<i32>} : memref<64x128xbf16, #tpu.memory_space<vmem>>, vector<8x128xbf16>,
    %c8 = arith.constant 8 : index
    %c0_20 = arith.constant 0 : index
    %44 = vector.load %arg11[%c8, %c0_20] : memref<64x384xf32, #tpu.memory_space<vmem>>, vector<8x384xf32>
    %45 = arith.truncf %41 : vector<8x128xf32> to vector<8x128xbf16>
    %cst_21 = arith.constant dense<0.000000e+00> : vector<8x384xf32>
    %46 = tpu.matmul %45, %1, %cst_21 {dimension_numbers = #tpu.dot_dimension_numbers<[1], [0], [0], [1], [0, 0, 1, 1], [], []>} : vector<8x128xbf16>, vector<128x384xbf16>, vector<8x384xf32> -> vector<8x384xf32>
    %47 = vector.extract_strided_slice %44 {offsets = [0, 0], sizes = [8, 128], strides = [1, 1]} : vector<8x384xf32> to vector<8x128xf32>
    %48 = vector.extract_strided_slice %46 {offsets = [0, 0], sizes = [8, 128], strides = [1, 1]} : vector<8x384xf32> to vector<8x128xf32>
    %49 = arith.addf %47, %48 : vector<8x128xf32>
    %50 = arith.negf %49 : vector<8x128xf32>
    %51 = math.exp %50 : vector<8x128xf32>
    %cst_22 = arith.constant 1.000000e+00 : f32
    %52 = vector.broadcast %cst_22 : f32 to vector<8x128xf32>
    %53 = arith.addf %52, %51 : vector<8x128xf32>
    %54 = arith.divf %52, %53 : vector<8x128xf32>
    %55 = vector.extract_strided_slice %44 {offsets = [0, 128], sizes = [8, 128], strides = [1, 1]} : vector<8x384xf32> to vector<8x128xf32>
    %56 = vector.extract_strided_slice %46 {offsets = [0, 128], sizes = [8, 128], strides = [1, 1]} : vector<8x384xf32> to vector<8x128xf32>
    %57 = arith.addf %55, %56 : vector<8x128xf32>
    %58 = arith.negf %57 : vector<8x128xf32>
    %59 = math.exp %58 : vector<8x128xf32>
    %cst_23 = arith.constant 1.000000e+00 : f32
    %60 = vector.broadcast %cst_23 : f32 to vector<8x128xf32>
    %61 = arith.addf %60, %59 : vector<8x128xf32>
    %62 = arith.divf %60, %61 : vector<8x128xf32>
    %63 = vector.extract_strided_slice %44 {offsets = [0, 256], sizes = [8, 128], strides = [1, 1]} : vector<8x384xf32> to vector<8x128xf32>
    %64 = vector.extract_strided_slice %46 {offsets = [0, 256], sizes = [8, 128], strides = [1, 1]} : vector<8x384xf32> to vector<8x128xf32>
    %65 = arith.addf %64, %10 : vector<8x128xf32>
    %66 = arith.mulf %54, %65 : vector<8x128xf32>
    %67 = arith.addf %63, %66 : vector<8x128xf32>
    %68 = math.tanh %67 : vector<8x128xf32>
    %cst_24 = arith.constant 1.000000e+00 : f32
    %69 = vector.broadcast %cst_24 : f32 to vector<8x128xf32>
    %70 = arith.subf %69, %62 : vector<8x128xf32>
    %71 = arith.mulf %70, %68 : vector<8x128xf32>
    %72 = arith.mulf %62, %41 : vector<8x128xf32>
    %73 = arith.addf %71, %72 : vector<8x128xf32>
    %74 = arith.truncf %73 : vector<8x128xf32> to vector<8x128xbf16>
    %c8_25 = arith.constant 8 : index
    %c0_26 = arith.constant 0 : index
    %75 = vector.load %arg12[%c8_25, %c0_26] : memref<64x128xbf16, #tpu.memory_space<vmem>>, vector<8x128xbf16>
    tpu.vector_store %arg12[%c8_25, %c0_26], %74 {strides = array<i32>} : memref<64x128xbf16, #tpu.memory_space<vmem>>, vector<8x128xbf16>,
    %c16 = arith.constant 16 : index
    %c0_27 = arith.constant 0 : index
    %76 = vector.load %arg11[%c16, %c0_27] : memref<64x384xf32, #tpu.memory_space<vmem>>, vector<8x384xf32>
    %77 = arith.truncf %73 : vector<8x128xf32> to vector<8x128xbf16>
    %cst_28 = arith.constant dense<0.000000e+00> : vector<8x384xf32>
    %78 = tpu.matmul %77, %1, %cst_28 {dimension_numbers = #tpu.dot_dimension_numbers<[1], [0], [0], [1], [0, 0, 1, 1], [], []>} : vector<8x128xbf16>, vector<128x384xbf16>, vector<8x384xf32> -> vector<8x384xf32>
    %79 = vector.extract_strided_slice %76 {offsets = [0, 0], sizes = [8, 128], strides = [1, 1]} : vector<8x384xf32> to vector<8x128xf32>
    %80 = vector.extract_strided_slice %78 {offsets = [0, 0], sizes = [8, 128], strides = [1, 1]} : vector<8x384xf32> to vector<8x128xf32>
    %81 = arith.addf %79, %80 : vector<8x128xf32>
    %82 = arith.negf %81 : vector<8x128xf32>
    %83 = math.exp %82 : vector<8x128xf32>
    %cst_29 = arith.constant 1.000000e+00 : f32
    %84 = vector.broadcast %cst_29 : f32 to vector<8x128xf32>
    %85 = arith.addf %84, %83 : vector<8x128xf32>
    %86 = arith.divf %84, %85 : vector<8x128xf32>
    %87 = vector.extract_strided_slice %76 {offsets = [0, 128], sizes = [8, 128], strides = [1, 1]} : vector<8x384xf32> to vector<8x128xf32>
    %88 = vector.extract_strided_slice %78 {offsets = [0, 128], sizes = [8, 128], strides = [1, 1]} : vector<8x384xf32> to vector<8x128xf32>
    %89 = arith.addf %87, %88 : vector<8x128xf32>
    %90 = arith.negf %89 : vector<8x128xf32>
    %91 = math.exp %90 : vector<8x128xf32>
    %cst_30 = arith.constant 1.000000e+00 : f32
    %92 = vector.broadcast %cst_30 : f32 to vector<8x128xf32>
    %93 = arith.addf %92, %91 : vector<8x128xf32>
    %94 = arith.divf %92, %93 : vector<8x128xf32>
    %95 = vector.extract_strided_slice %76 {offsets = [0, 256], sizes = [8, 128], strides = [1, 1]} : vector<8x384xf32> to vector<8x128xf32>
    %96 = vector.extract_strided_slice %78 {offsets = [0, 256], sizes = [8, 128], strides = [1, 1]} : vector<8x384xf32> to vector<8x128xf32>
    %97 = arith.addf %96, %10 : vector<8x128xf32>
    %98 = arith.mulf %86, %97 : vector<8x128xf32>
    %99 = arith.addf %95, %98 : vector<8x128xf32>
    %100 = math.tanh %99 : vector<8x128xf32>
    %cst_31 = arith.constant 1.000000e+00 : f32
    %101 = vector.broadcast %cst_31 : f32 to vector<8x128xf32>
    %102 = arith.subf %101, %94 : vector<8x128xf32>
    %103 = arith.mulf %102, %100 : vector<8x128xf32>
    %104 = arith.mulf %94, %73 : vector<8x128xf32>
    %105 = arith.addf %103, %104 : vector<8x128xf32>
    %106 = arith.truncf %105 : vector<8x128xf32> to vector<8x128xbf16>
    %c16_32 = arith.constant 16 : index
    %c0_33 = arith.constant 0 : index
    %107 = vector.load %arg12[%c16_32, %c0_33] : memref<64x128xbf16, #tpu.memory_space<vmem>>, vector<8x128xbf16>
    tpu.vector_store %arg12[%c16_32, %c0_33], %106 {strides = array<i32>} : memref<64x128xbf16, #tpu.memory_space<vmem>>, vector<8x128xbf16>,
    %c24 = arith.constant 24 : index
    %c0_34 = arith.constant 0 : index
    %108 = vector.load %arg11[%c24, %c0_34] : memref<64x384xf32, #tpu.memory_space<vmem>>, vector<8x384xf32>
    %109 = arith.truncf %105 : vector<8x128xf32> to vector<8x128xbf16>
    %cst_35 = arith.constant dense<0.000000e+00> : vector<8x384xf32>
    %110 = tpu.matmul %109, %1, %cst_35 {dimension_numbers = #tpu.dot_dimension_numbers<[1], [0], [0], [1], [0, 0, 1, 1], [], []>} : vector<8x128xbf16>, vector<128x384xbf16>, vector<8x384xf32> -> vector<8x384xf32>
    %111 = vector.extract_strided_slice %108 {offsets = [0, 0], sizes = [8, 128], strides = [1, 1]} : vector<8x384xf32> to vector<8x128xf32>
    %112 = vector.extract_strided_slice %110 {offsets = [0, 0], sizes = [8, 128], strides = [1, 1]} : vector<8x384xf32> to vector<8x128xf32>
    %113 = arith.addf %111, %112 : vector<8x128xf32>
    %114 = arith.negf %113 : vector<8x128xf32>
    %115 = math.exp %114 : vector<8x128xf32>
    %cst_36 = arith.constant 1.000000e+00 : f32
    %116 = vector.broadcast %cst_36 : f32 to vector<8x128xf32>
    %117 = arith.addf %116, %115 : vector<8x128xf32>
    %118 = arith.divf %116, %117 : vector<8x128xf32>
    %119 = vector.extract_strided_slice %108 {offsets = [0, 128], sizes = [8, 128], strides = [1, 1]} : vector<8x384xf32> to vector<8x128xf32>
    %120 = vector.extract_strided_slice %110 {offsets = [0, 128], sizes = [8, 128], strides = [1, 1]} : vector<8x384xf32> to vector<8x128xf32>
    %121 = arith.addf %119, %120 : vector<8x128xf32>
    %122 = arith.negf %121 : vector<8x128xf32>
    %123 = math.exp %122 : vector<8x128xf32>
    %cst_37 = arith.constant 1.000000e+00 : f32
    %124 = vector.broadcast %cst_37 : f32 to vector<8x128xf32>
    %125 = arith.addf %124, %123 : vector<8x128xf32>
    %126 = arith.divf %124, %125 : vector<8x128xf32>
    %127 = vector.extract_strided_slice %108 {offsets = [0, 256], sizes = [8, 128], strides = [1, 1]} : vector<8x384xf32> to vector<8x128xf32>
    %128 = vector.extract_strided_slice %110 {offsets = [0, 256], sizes = [8, 128], strides = [1, 1]} : vector<8x384xf32> to vector<8x128xf32>
    %129 = arith.addf %128, %10 : vector<8x128xf32>
    %130 = arith.mulf %118, %129 : vector<8x128xf32>
    %131 = arith.addf %127, %130 : vector<8x128xf32>
    %132 = math.tanh %131 : vector<8x128xf32>
    %cst_38 = arith.constant 1.000000e+00 : f32
    %133 = vector.broadcast %cst_38 : f32 to vector<8x128xf32>
    %134 = arith.subf %133, %126 : vector<8x128xf32>
    %135 = arith.mulf %134, %132 : vector<8x128xf32>
    %136 = arith.mulf %126, %105 : vector<8x128xf32>
    %137 = arith.addf %135, %136 : vector<8x128xf32>
    %138 = arith.truncf %137 : vector<8x128xf32> to vector<8x128xbf16>
    %c24_39 = arith.constant 24 : index
    %c0_40 = arith.constant 0 : index
    %139 = vector.load %arg12[%c24_39, %c0_40] : memref<64x128xbf16, #tpu.memory_space<vmem>>, vector<8x128xbf16>
    tpu.vector_store %arg12[%c24_39, %c0_40], %138 {strides = array<i32>} : memref<64x128xbf16, #tpu.memory_space<vmem>>, vector<8x128xbf16>,
    %c32 = arith.constant 32 : index
    %c0_41 = arith.constant 0 : index
    %140 = vector.load %arg11[%c32, %c0_41] : memref<64x384xf32, #tpu.memory_space<vmem>>, vector<8x384xf32>
    %141 = arith.truncf %137 : vector<8x128xf32> to vector<8x128xbf16>
    %cst_42 = arith.constant dense<0.000000e+00> : vector<8x384xf32>
    %142 = tpu.matmul %141, %1, %cst_42 {dimension_numbers = #tpu.dot_dimension_numbers<[1], [0], [0], [1], [0, 0, 1, 1], [], []>} : vector<8x128xbf16>, vector<128x384xbf16>, vector<8x384xf32> -> vector<8x384xf32>
    %143 = vector.extract_strided_slice %140 {offsets = [0, 0], sizes = [8, 128], strides = [1, 1]} : vector<8x384xf32> to vector<8x128xf32>
    %144 = vector.extract_strided_slice %142 {offsets = [0, 0], sizes = [8, 128], strides = [1, 1]} : vector<8x384xf32> to vector<8x128xf32>
    %145 = arith.addf %143, %144 : vector<8x128xf32>
    %146 = arith.negf %145 : vector<8x128xf32>
    %147 = math.exp %146 : vector<8x128xf32>
    %cst_43 = arith.constant 1.000000e+00 : f32
    %148 = vector.broadcast %cst_43 : f32 to vector<8x128xf32>
    %149 = arith.addf %148, %147 : vector<8x128xf32>
    %150 = arith.divf %148, %149 : vector<8x128xf32>
    %151 = vector.extract_strided_slice %140 {offsets = [0, 128], sizes = [8, 128], strides = [1, 1]} : vector<8x384xf32> to vector<8x128xf32>
    %152 = vector.extract_strided_slice %142 {offsets = [0, 128], sizes = [8, 128], strides = [1, 1]} : vector<8x384xf32> to vector<8x128xf32>
    %153 = arith.addf %151, %152 : vector<8x128xf32>
    %154 = arith.negf %153 : vector<8x128xf32>
    %155 = math.exp %154 : vector<8x128xf32>
    %cst_44 = arith.constant 1.000000e+00 : f32
    %156 = vector.broadcast %cst_44 : f32 to vector<8x128xf32>
    %157 = arith.addf %156, %155 : vector<8x128xf32>
    %158 = arith.divf %156, %157 : vector<8x128xf32>
    %159 = vector.extract_strided_slice %140 {offsets = [0, 256], sizes = [8, 128], strides = [1, 1]} : vector<8x384xf32> to vector<8x128xf32>
    %160 = vector.extract_strided_slice %142 {offsets = [0, 256], sizes = [8, 128], strides = [1, 1]} : vector<8x384xf32> to vector<8x128xf32>
    %161 = arith.addf %160, %10 : vector<8x128xf32>
    %162 = arith.mulf %150, %161 : vector<8x128xf32>
    %163 = arith.addf %159, %162 : vector<8x128xf32>
    %164 = math.tanh %163 : vector<8x128xf32>
    %cst_45 = arith.constant 1.000000e+00 : f32
    %165 = vector.broadcast %cst_45 : f32 to vector<8x128xf32>
    %166 = arith.subf %165, %158 : vector<8x128xf32>
    %167 = arith.mulf %166, %164 : vector<8x128xf32>
    %168 = arith.mulf %158, %137 : vector<8x128xf32>
    %169 = arith.addf %167, %168 : vector<8x128xf32>
    %170 = arith.truncf %169 : vector<8x128xf32> to vector<8x128xbf16>
    %c32_46 = arith.constant 32 : index
    %c0_47 = arith.constant 0 : index
    %171 = vector.load %arg12[%c32_46, %c0_47] : memref<64x128xbf16, #tpu.memory_space<vmem>>, vector<8x128xbf16>
    tpu.vector_store %arg12[%c32_46, %c0_47], %170 {strides = array<i32>} : memref<64x128xbf16, #tpu.memory_space<vmem>>, vector<8x128xbf16>,
    %c40 = arith.constant 40 : index
    %c0_48 = arith.constant 0 : index
    %172 = vector.load %arg11[%c40, %c0_48] : memref<64x384xf32, #tpu.memory_space<vmem>>, vector<8x384xf32>
    %173 = arith.truncf %169 : vector<8x128xf32> to vector<8x128xbf16>
    %cst_49 = arith.constant dense<0.000000e+00> : vector<8x384xf32>
    %174 = tpu.matmul %173, %1, %cst_49 {dimension_numbers = #tpu.dot_dimension_numbers<[1], [0], [0], [1], [0, 0, 1, 1], [], []>} : vector<8x128xbf16>, vector<128x384xbf16>, vector<8x384xf32> -> vector<8x384xf32>
    %175 = vector.extract_strided_slice %172 {offsets = [0, 0], sizes = [8, 128], strides = [1, 1]} : vector<8x384xf32> to vector<8x128xf32>
    %176 = vector.extract_strided_slice %174 {offsets = [0, 0], sizes = [8, 128], strides = [1, 1]} : vector<8x384xf32> to vector<8x128xf32>
    %177 = arith.addf %175, %176 : vector<8x128xf32>
    %178 = arith.negf %177 : vector<8x128xf32>
    %179 = math.exp %178 : vector<8x128xf32>
    %cst_50 = arith.constant 1.000000e+00 : f32
    %180 = vector.broadcast %cst_50 : f32 to vector<8x128xf32>
    %181 = arith.addf %180, %179 : vector<8x128xf32>
    %182 = arith.divf %180, %181 : vector<8x128xf32>
    %183 = vector.extract_strided_slice %172 {offsets = [0, 128], sizes = [8, 128], strides = [1, 1]} : vector<8x384xf32> to vector<8x128xf32>
    %184 = vector.extract_strided_slice %174 {offsets = [0, 128], sizes = [8, 128], strides = [1, 1]} : vector<8x384xf32> to vector<8x128xf32>
    %185 = arith.addf %183, %184 : vector<8x128xf32>
    %186 = arith.negf %185 : vector<8x128xf32>
    %187 = math.exp %186 : vector<8x128xf32>
    %cst_51 = arith.constant 1.000000e+00 : f32
    %188 = vector.broadcast %cst_51 : f32 to vector<8x128xf32>
    %189 = arith.addf %188, %187 : vector<8x128xf32>
    %190 = arith.divf %188, %189 : vector<8x128xf32>
    %191 = vector.extract_strided_slice %172 {offsets = [0, 256], sizes = [8, 128], strides = [1, 1]} : vector<8x384xf32> to vector<8x128xf32>
    %192 = vector.extract_strided_slice %174 {offsets = [0, 256], sizes = [8, 128], strides = [1, 1]} : vector<8x384xf32> to vector<8x128xf32>
    %193 = arith.addf %192, %10 : vector<8x128xf32>
    %194 = arith.mulf %182, %193 : vector<8x128xf32>
    %195 = arith.addf %191, %194 : vector<8x128xf32>
    %196 = math.tanh %195 : vector<8x128xf32>
    %cst_52 = arith.constant 1.000000e+00 : f32
    %197 = vector.broadcast %cst_52 : f32 to vector<8x128xf32>
    %198 = arith.subf %197, %190 : vector<8x128xf32>
    %199 = arith.mulf %198, %196 : vector<8x128xf32>
    %200 = arith.mulf %190, %169 : vector<8x128xf32>
    %201 = arith.addf %199, %200 : vector<8x128xf32>
    %202 = arith.truncf %201 : vector<8x128xf32> to vector<8x128xbf16>
    %c40_53 = arith.constant 40 : index
    %c0_54 = arith.constant 0 : index
    %203 = vector.load %arg12[%c40_53, %c0_54] : memref<64x128xbf16, #tpu.memory_space<vmem>>, vector<8x128xbf16>
    tpu.vector_store %arg12[%c40_53, %c0_54], %202 {strides = array<i32>} : memref<64x128xbf16, #tpu.memory_space<vmem>>, vector<8x128xbf16>,
    %c48 = arith.constant 48 : index
    %c0_55 = arith.constant 0 : index
    %204 = vector.load %arg11[%c48, %c0_55] : memref<64x384xf32, #tpu.memory_space<vmem>>, vector<8x384xf32>
    %205 = arith.truncf %201 : vector<8x128xf32> to vector<8x128xbf16>
    %cst_56 = arith.constant dense<0.000000e+00> : vector<8x384xf32>
    %206 = tpu.matmul %205, %1, %cst_56 {dimension_numbers = #tpu.dot_dimension_numbers<[1], [0], [0], [1], [0, 0, 1, 1], [], []>} : vector<8x128xbf16>, vector<128x384xbf16>, vector<8x384xf32> -> vector<8x384xf32>
    %207 = vector.extract_strided_slice %204 {offsets = [0, 0], sizes = [8, 128], strides = [1, 1]} : vector<8x384xf32> to vector<8x128xf32>
    %208 = vector.extract_strided_slice %206 {offsets = [0, 0], sizes = [8, 128], strides = [1, 1]} : vector<8x384xf32> to vector<8x128xf32>
    %209 = arith.addf %207, %208 : vector<8x128xf32>
    %210 = arith.negf %209 : vector<8x128xf32>
    %211 = math.exp %210 : vector<8x128xf32>
    %cst_57 = arith.constant 1.000000e+00 : f32
    %212 = vector.broadcast %cst_57 : f32 to vector<8x128xf32>
    %213 = arith.addf %212, %211 : vector<8x128xf32>
    %214 = arith.divf %212, %213 : vector<8x128xf32>
    %215 = vector.extract_strided_slice %204 {offsets = [0, 128], sizes = [8, 128], strides = [1, 1]} : vector<8x384xf32> to vector<8x128xf32>
    %216 = vector.extract_strided_slice %206 {offsets = [0, 128], sizes = [8, 128], strides = [1, 1]} : vector<8x384xf32> to vector<8x128xf32>
    %217 = arith.addf %215, %216 : vector<8x128xf32>
    %218 = arith.negf %217 : vector<8x128xf32>
    %219 = math.exp %218 : vector<8x128xf32>
    %cst_58 = arith.constant 1.000000e+00 : f32
    %220 = vector.broadcast %cst_58 : f32 to vector<8x128xf32>
    %221 = arith.addf %220, %219 : vector<8x128xf32>
    %222 = arith.divf %220, %221 : vector<8x128xf32>
    %223 = vector.extract_strided_slice %204 {offsets = [0, 256], sizes = [8, 128], strides = [1, 1]} : vector<8x384xf32> to vector<8x128xf32>
    %224 = vector.extract_strided_slice %206 {offsets = [0, 256], sizes = [8, 128], strides = [1, 1]} : vector<8x384xf32> to vector<8x128xf32>
    %225 = arith.addf %224, %10 : vector<8x128xf32>
    %226 = arith.mulf %214, %225 : vector<8x128xf32>
    %227 = arith.addf %223, %226 : vector<8x128xf32>
    %228 = math.tanh %227 : vector<8x128xf32>
    %cst_59 = arith.constant 1.000000e+00 : f32
    %229 = vector.broadcast %cst_59 : f32 to vector<8x128xf32>
    %230 = arith.subf %229, %222 : vector<8x128xf32>
    %231 = arith.mulf %230, %228 : vector<8x128xf32>
    %232 = arith.mulf %222, %201 : vector<8x128xf32>
    %233 = arith.addf %231, %232 : vector<8x128xf32>
    %234 = arith.truncf %233 : vector<8x128xf32> to vector<8x128xbf16>
    %c48_60 = arith.constant 48 : index
    %c0_61 = arith.constant 0 : index
    %235 = vector.load %arg12[%c48_60, %c0_61] : memref<64x128xbf16, #tpu.memory_space<vmem>>, vector<8x128xbf16>
    tpu.vector_store %arg12[%c48_60, %c0_61], %234 {strides = array<i32>} : memref<64x128xbf16, #tpu.memory_space<vmem>>, vector<8x128xbf16>,
    %c56 = arith.constant 56 : index
    %c0_62 = arith.constant 0 : index
    %236 = vector.load %arg11[%c56, %c0_62] : memref<64x384xf32, #tpu.memory_space<vmem>>, vector<8x384xf32>
    %237 = arith.truncf %233 : vector<8x128xf32> to vector<8x128xbf16>
    %cst_63 = arith.constant dense<0.000000e+00> : vector<8x384xf32>
    %238 = tpu.matmul %237, %1, %cst_63 {dimension_numbers = #tpu.dot_dimension_numbers<[1], [0], [0], [1], [0, 0, 1, 1], [], []>} : vector<8x128xbf16>, vector<128x384xbf16>, vector<8x384xf32> -> vector<8x384xf32>
    %239 = vector.extract_strided_slice %236 {offsets = [0, 0], sizes = [8, 128], strides = [1, 1]} : vector<8x384xf32> to vector<8x128xf32>
    %240 = vector.extract_strided_slice %238 {offsets = [0, 0], sizes = [8, 128], strides = [1, 1]} : vector<8x384xf32> to vector<8x128xf32>
    %241 = arith.addf %239, %240 : vector<8x128xf32>
    %242 = arith.negf %241 : vector<8x128xf32>
    %243 = math.exp %242 : vector<8x128xf32>
    %cst_64 = arith.constant 1.000000e+00 : f32
    %244 = vector.broadcast %cst_64 : f32 to vector<8x128xf32>
    %245 = arith.addf %244, %243 : vector<8x128xf32>
    %246 = arith.divf %244, %245 : vector<8x128xf32>
    %247 = vector.extract_strided_slice %236 {offsets = [0, 128], sizes = [8, 128], strides = [1, 1]} : vector<8x384xf32> to vector<8x128xf32>
    %248 = vector.extract_strided_slice %238 {offsets = [0, 128], sizes = [8, 128], strides = [1, 1]} : vector<8x384xf32> to vector<8x128xf32>
    %249 = arith.addf %247, %248 : vector<8x128xf32>
    %250 = arith.negf %249 : vector<8x128xf32>
    %251 = math.exp %250 : vector<8x128xf32>
    %cst_65 = arith.constant 1.000000e+00 : f32
    %252 = vector.broadcast %cst_65 : f32 to vector<8x128xf32>
    %253 = arith.addf %252, %251 : vector<8x128xf32>
    %254 = arith.divf %252, %253 : vector<8x128xf32>
    %255 = vector.extract_strided_slice %236 {offsets = [0, 256], sizes = [8, 128], strides = [1, 1]} : vector<8x384xf32> to vector<8x128xf32>
    %256 = vector.extract_strided_slice %238 {offsets = [0, 256], sizes = [8, 128], strides = [1, 1]} : vector<8x384xf32> to vector<8x128xf32>
    %257 = arith.addf %256, %10 : vector<8x128xf32>
    %258 = arith.mulf %246, %257 : vector<8x128xf32>
    %259 = arith.addf %255, %258 : vector<8x128xf32>
    %260 = math.tanh %259 : vector<8x128xf32>
    %cst_66 = arith.constant 1.000000e+00 : f32
    %261 = vector.broadcast %cst_66 : f32 to vector<8x128xf32>
    %262 = arith.subf %261, %254 : vector<8x128xf32>
    %263 = arith.mulf %262, %260 : vector<8x128xf32>
    %264 = arith.mulf %254, %233 : vector<8x128xf32>
    %265 = arith.addf %263, %264 : vector<8x128xf32>
    %266 = arith.truncf %265 : vector<8x128xf32> to vector<8x128xbf16>
    %c56_67 = arith.constant 56 : index
    %c0_68 = arith.constant 0 : index
    %267 = vector.load %arg12[%c56_67, %c0_68] : memref<64x128xbf16, #tpu.memory_space<vmem>>, vector<8x128xbf16>
    tpu.vector_store %arg12[%c56_67, %c0_68], %266 {strides = array<i32>} : memref<64x128xbf16, #tpu.memory_space<vmem>>, vector<8x128xbf16>,
    %c0_69 = arith.constant 0 : index
    %c0_70 = arith.constant 0 : index
    %268 = vector.load %arg10[%c0_69, %c0_70] : memref<16x128xf32, #tpu.memory_space<vmem>>, vector<8x128xf32>
    tpu.vector_store %arg10[%c0_69, %c0_70], %265 {strides = array<i32>} : memref<16x128xf32, #tpu.memory_space<vmem>>, vector<8x128xf32>,
    %c0_71 = arith.constant 0 : index
    %c0_72 = arith.constant 0 : index
    %269 = vector.load %arg5[%c0_71, %c0_72] : memref<128x384xbf16, #tpu.memory_space<vmem>>, vector<128x384xbf16>
    %c0_73 = arith.constant 0 : index
    %c0_74 = arith.constant 0 : index
    %270 = vector.load %arg6[%c0_73, %c0_74] : memref<128x384xbf16, #tpu.memory_space<vmem>>, vector<128x384xbf16>
    %c0_75 = arith.constant 0 : index
    %c0_76 = arith.constant 0 : index
    %271 = vector.load %arg7[%c0_75, %c0_76] : memref<1x384xf32, #tpu.memory_space<vmem>>, vector<1x384xf32>
    %c0_77 = arith.constant 0 : index
    %c0_78 = arith.constant 0 : index
    %272 = vector.load %arg8[%c0_77, %c0_78] : memref<1x128xf32, #tpu.memory_space<vmem>>, vector<1x128xf32>
    %c0_79 = arith.constant 0 : index
    %c0_80 = arith.constant 0 : index
    %273 = vector.load %arg12[%c0_79, %c0_80] : memref<64x128xbf16, #tpu.memory_space<vmem>>, vector<64x128xbf16>
    %cst_81 = arith.constant dense<0.000000e+00> : vector<64x384xf32>
    %274 = tpu.matmul %273, %269, %cst_81 {dimension_numbers = #tpu.dot_dimension_numbers<[1], [0], [0], [1], [0, 0, 1, 1], [], []>} : vector<64x128xbf16>, vector<128x384xbf16>, vector<64x384xf32> -> vector<64x384xf32>
    %275 = vector.broadcast %271 : vector<1x384xf32> to vector<64x384xf32>
    %276 = arith.addf %274, %275 : vector<64x384xf32>
    %c0_82 = arith.constant 0 : index
    %c0_83 = arith.constant 0 : index
    %277 = vector.load %arg11[%c0_82, %c0_83] : memref<64x384xf32, #tpu.memory_space<vmem>>, vector<64x384xf32>
    tpu.vector_store %arg11[%c0_82, %c0_83], %276 {strides = array<i32>} : memref<64x384xf32, #tpu.memory_space<vmem>>, vector<64x384xf32>,
    %278 = vector.shape_cast %272 : vector<1x128xf32> to vector<1x128xf32>
    %279 = vector.broadcast %278 : vector<1x128xf32> to vector<8x128xf32>
    %cst_84 = arith.constant 0.000000e+00 : f32
    %280 = vector.broadcast %cst_84 : f32 to vector<8x128xf32>
    %c0_85 = arith.constant 0 : index
    %c0_86 = arith.constant 0 : index
    %281 = vector.load %arg11[%c0_85, %c0_86] : memref<64x384xf32, #tpu.memory_space<vmem>>, vector<8x384xf32>
    %282 = arith.truncf %280 : vector<8x128xf32> to vector<8x128xbf16>
    %cst_87 = arith.constant dense<0.000000e+00> : vector<8x384xf32>
    %283 = tpu.matmul %282, %270, %cst_87 {dimension_numbers = #tpu.dot_dimension_numbers<[1], [0], [0], [1], [0, 0, 1, 1], [], []>} : vector<8x128xbf16>, vector<128x384xbf16>, vector<8x384xf32> -> vector<8x384xf32>
    %284 = vector.extract_strided_slice %281 {offsets = [0, 0], sizes = [8, 128], strides = [1, 1]} : vector<8x384xf32> to vector<8x128xf32>
    %285 = vector.extract_strided_slice %283 {offsets = [0, 0], sizes = [8, 128], strides = [1, 1]} : vector<8x384xf32> to vector<8x128xf32>
    %286 = arith.addf %284, %285 : vector<8x128xf32>
    %287 = arith.negf %286 : vector<8x128xf32>
    %288 = math.exp %287 : vector<8x128xf32>
    %cst_88 = arith.constant 1.000000e+00 : f32
    %289 = vector.broadcast %cst_88 : f32 to vector<8x128xf32>
    %290 = arith.addf %289, %288 : vector<8x128xf32>
    %291 = arith.divf %289, %290 : vector<8x128xf32>
    %292 = vector.extract_strided_slice %281 {offsets = [0, 128], sizes = [8, 128], strides = [1, 1]} : vector<8x384xf32> to vector<8x128xf32>
    %293 = vector.extract_strided_slice %283 {offsets = [0, 128], sizes = [8, 128], strides = [1, 1]} : vector<8x384xf32> to vector<8x128xf32>
    %294 = arith.addf %292, %293 : vector<8x128xf32>
    %295 = arith.negf %294 : vector<8x128xf32>
    %296 = math.exp %295 : vector<8x128xf32>
    %cst_89 = arith.constant 1.000000e+00 : f32
    %297 = vector.broadcast %cst_89 : f32 to vector<8x128xf32>
    %298 = arith.addf %297, %296 : vector<8x128xf32>
    %299 = arith.divf %297, %298 : vector<8x128xf32>
    %300 = vector.extract_strided_slice %281 {offsets = [0, 256], sizes = [8, 128], strides = [1, 1]} : vector<8x384xf32> to vector<8x128xf32>
    %301 = vector.extract_strided_slice %283 {offsets = [0, 256], sizes = [8, 128], strides = [1, 1]} : vector<8x384xf32> to vector<8x128xf32>
    %302 = arith.addf %301, %279 : vector<8x128xf32>
    %303 = arith.mulf %291, %302 : vector<8x128xf32>
    %304 = arith.addf %300, %303 : vector<8x128xf32>
    %305 = math.tanh %304 : vector<8x128xf32>
    %cst_90 = arith.constant 1.000000e+00 : f32
    %306 = vector.broadcast %cst_90 : f32 to vector<8x128xf32>
    %307 = arith.subf %306, %299 : vector<8x128xf32>
    %308 = arith.mulf %307, %305 : vector<8x128xf32>
    %309 = arith.mulf %299, %280 : vector<8x128xf32>
    %310 = arith.addf %308, %309 : vector<8x128xf32>
    %c0_91 = arith.constant 0 : index
    %c0_92 = arith.constant 0 : index
    %311 = vector.load %arg9[%c0_91, %c0_92] : memref<64x128xf32, #tpu.memory_space<vmem>>, vector<8x128xf32>
    tpu.vector_store %arg9[%c0_91, %c0_92], %310 {strides = array<i32>} : memref<64x128xf32, #tpu.memory_space<vmem>>, vector<8x128xf32>,
    %c8_93 = arith.constant 8 : index
    %c0_94 = arith.constant 0 : index
    %312 = vector.load %arg11[%c8_93, %c0_94] : memref<64x384xf32, #tpu.memory_space<vmem>>, vector<8x384xf32>
    %313 = arith.truncf %310 : vector<8x128xf32> to vector<8x128xbf16>
    %cst_95 = arith.constant dense<0.000000e+00> : vector<8x384xf32>
    %314 = tpu.matmul %313, %270, %cst_95 {dimension_numbers = #tpu.dot_dimension_numbers<[1], [0], [0], [1], [0, 0, 1, 1], [], []>} : vector<8x128xbf16>, vector<128x384xbf16>, vector<8x384xf32> -> vector<8x384xf32>
    %315 = vector.extract_strided_slice %312 {offsets = [0, 0], sizes = [8, 128], strides = [1, 1]} : vector<8x384xf32> to vector<8x128xf32>
    %316 = vector.extract_strided_slice %314 {offsets = [0, 0], sizes = [8, 128], strides = [1, 1]} : vector<8x384xf32> to vector<8x128xf32>
    %317 = arith.addf %315, %316 : vector<8x128xf32>
    %318 = arith.negf %317 : vector<8x128xf32>
    %319 = math.exp %318 : vector<8x128xf32>
    %cst_96 = arith.constant 1.000000e+00 : f32
    %320 = vector.broadcast %cst_96 : f32 to vector<8x128xf32>
    %321 = arith.addf %320, %319 : vector<8x128xf32>
    %322 = arith.divf %320, %321 : vector<8x128xf32>
    %323 = vector.extract_strided_slice %312 {offsets = [0, 128], sizes = [8, 128], strides = [1, 1]} : vector<8x384xf32> to vector<8x128xf32>
    %324 = vector.extract_strided_slice %314 {offsets = [0, 128], sizes = [8, 128], strides = [1, 1]} : vector<8x384xf32> to vector<8x128xf32>
    %325 = arith.addf %323, %324 : vector<8x128xf32>
    %326 = arith.negf %325 : vector<8x128xf32>
    %327 = math.exp %326 : vector<8x128xf32>
    %cst_97 = arith.constant 1.000000e+00 : f32
    %328 = vector.broadcast %cst_97 : f32 to vector<8x128xf32>
    %329 = arith.addf %328, %327 : vector<8x128xf32>
    %330 = arith.divf %328, %329 : vector<8x128xf32>
    %331 = vector.extract_strided_slice %312 {offsets = [0, 256], sizes = [8, 128], strides = [1, 1]} : vector<8x384xf32> to vector<8x128xf32>
    %332 = vector.extract_strided_slice %314 {offsets = [0, 256], sizes = [8, 128], strides = [1, 1]} : vector<8x384xf32> to vector<8x128xf32>
    %333 = arith.addf %332, %279 : vector<8x128xf32>
    %334 = arith.mulf %322, %333 : vector<8x128xf32>
    %335 = arith.addf %331, %334 : vector<8x128xf32>
    %336 = math.tanh %335 : vector<8x128xf32>
    %cst_98 = arith.constant 1.000000e+00 : f32
    %337 = vector.broadcast %cst_98 : f32 to vector<8x128xf32>
    %338 = arith.subf %337, %330 : vector<8x128xf32>
    %339 = arith.mulf %338, %336 : vector<8x128xf32>
    %340 = arith.mulf %330, %310 : vector<8x128xf32>
    %341 = arith.addf %339, %340 : vector<8x128xf32>
    %c8_99 = arith.constant 8 : index
    %c0_100 = arith.constant 0 : index
    %342 = vector.load %arg9[%c8_99, %c0_100] : memref<64x128xf32, #tpu.memory_space<vmem>>, vector<8x128xf32>
    tpu.vector_store %arg9[%c8_99, %c0_100], %341 {strides = array<i32>} : memref<64x128xf32, #tpu.memory_space<vmem>>, vector<8x128xf32>,
    %c16_101 = arith.constant 16 : index
    %c0_102 = arith.constant 0 : index
    %343 = vector.load %arg11[%c16_101, %c0_102] : memref<64x384xf32, #tpu.memory_space<vmem>>, vector<8x384xf32>
    %344 = arith.truncf %341 : vector<8x128xf32> to vector<8x128xbf16>
    %cst_103 = arith.constant dense<0.000000e+00> : vector<8x384xf32>
    %345 = tpu.matmul %344, %270, %cst_103 {dimension_numbers = #tpu.dot_dimension_numbers<[1], [0], [0], [1], [0, 0, 1, 1], [], []>} : vector<8x128xbf16>, vector<128x384xbf16>, vector<8x384xf32> -> vector<8x384xf32>
    %346 = vector.extract_strided_slice %343 {offsets = [0, 0], sizes = [8, 128], strides = [1, 1]} : vector<8x384xf32> to vector<8x128xf32>
    %347 = vector.extract_strided_slice %345 {offsets = [0, 0], sizes = [8, 128], strides = [1, 1]} : vector<8x384xf32> to vector<8x128xf32>
    %348 = arith.addf %346, %347 : vector<8x128xf32>
    %349 = arith.negf %348 : vector<8x128xf32>
    %350 = math.exp %349 : vector<8x128xf32>
    %cst_104 = arith.constant 1.000000e+00 : f32
    %351 = vector.broadcast %cst_104 : f32 to vector<8x128xf32>
    %352 = arith.addf %351, %350 : vector<8x128xf32>
    %353 = arith.divf %351, %352 : vector<8x128xf32>
    %354 = vector.extract_strided_slice %343 {offsets = [0, 128], sizes = [8, 128], strides = [1, 1]} : vector<8x384xf32> to vector<8x128xf32>
    %355 = vector.extract_strided_slice %345 {offsets = [0, 128], sizes = [8, 128], strides = [1, 1]} : vector<8x384xf32> to vector<8x128xf32>
    %356 = arith.addf %354, %355 : vector<8x128xf32>
    %357 = arith.negf %356 : vector<8x128xf32>
    %358 = math.exp %357 : vector<8x128xf32>
    %cst_105 = arith.constant 1.000000e+00 : f32
    %359 = vector.broadcast %cst_105 : f32 to vector<8x128xf32>
    %360 = arith.addf %359, %358 : vector<8x128xf32>
    %361 = arith.divf %359, %360 : vector<8x128xf32>
    %362 = vector.extract_strided_slice %343 {offsets = [0, 256], sizes = [8, 128], strides = [1, 1]} : vector<8x384xf32> to vector<8x128xf32>
    %363 = vector.extract_strided_slice %345 {offsets = [0, 256], sizes = [8, 128], strides = [1, 1]} : vector<8x384xf32> to vector<8x128xf32>
    %364 = arith.addf %363, %279 : vector<8x128xf32>
    %365 = arith.mulf %353, %364 : vector<8x128xf32>
    %366 = arith.addf %362, %365 : vector<8x128xf32>
    %367 = math.tanh %366 : vector<8x128xf32>
    %cst_106 = arith.constant 1.000000e+00 : f32
    %368 = vector.broadcast %cst_106 : f32 to vector<8x128xf32>
    %369 = arith.subf %368, %361 : vector<8x128xf32>
    %370 = arith.mulf %369, %367 : vector<8x128xf32>
    %371 = arith.mulf %361, %341 : vector<8x128xf32>
    %372 = arith.addf %370, %371 : vector<8x128xf32>
    %c16_107 = arith.constant 16 : index
    %c0_108 = arith.constant 0 : index
    %373 = vector.load %arg9[%c16_107, %c0_108] : memref<64x128xf32, #tpu.memory_space<vmem>>, vector<8x128xf32>
    tpu.vector_store %arg9[%c16_107, %c0_108], %372 {strides = array<i32>} : memref<64x128xf32, #tpu.memory_space<vmem>>, vector<8x128xf32>,
    %c24_109 = arith.constant 24 : index
    %c0_110 = arith.constant 0 : index
    %374 = vector.load %arg11[%c24_109, %c0_110] : memref<64x384xf32, #tpu.memory_space<vmem>>, vector<8x384xf32>
    %375 = arith.truncf %372 : vector<8x128xf32> to vector<8x128xbf16>
    %cst_111 = arith.constant dense<0.000000e+00> : vector<8x384xf32>
    %376 = tpu.matmul %375, %270, %cst_111 {dimension_numbers = #tpu.dot_dimension_numbers<[1], [0], [0], [1], [0, 0, 1, 1], [], []>} : vector<8x128xbf16>, vector<128x384xbf16>, vector<8x384xf32> -> vector<8x384xf32>
    %377 = vector.extract_strided_slice %374 {offsets = [0, 0], sizes = [8, 128], strides = [1, 1]} : vector<8x384xf32> to vector<8x128xf32>
    %378 = vector.extract_strided_slice %376 {offsets = [0, 0], sizes = [8, 128], strides = [1, 1]} : vector<8x384xf32> to vector<8x128xf32>
    %379 = arith.addf %377, %378 : vector<8x128xf32>
    %380 = arith.negf %379 : vector<8x128xf32>
    %381 = math.exp %380 : vector<8x128xf32>
    %cst_112 = arith.constant 1.000000e+00 : f32
    %382 = vector.broadcast %cst_112 : f32 to vector<8x128xf32>
    %383 = arith.addf %382, %381 : vector<8x128xf32>
    %384 = arith.divf %382, %383 : vector<8x128xf32>
    %385 = vector.extract_strided_slice %374 {offsets = [0, 128], sizes = [8, 128], strides = [1, 1]} : vector<8x384xf32> to vector<8x128xf32>
    %386 = vector.extract_strided_slice %376 {offsets = [0, 128], sizes = [8, 128], strides = [1, 1]} : vector<8x384xf32> to vector<8x128xf32>
    %387 = arith.addf %385, %386 : vector<8x128xf32>
    %388 = arith.negf %387 : vector<8x128xf32>
    %389 = math.exp %388 : vector<8x128xf32>
    %cst_113 = arith.constant 1.000000e+00 : f32
    %390 = vector.broadcast %cst_113 : f32 to vector<8x128xf32>
    %391 = arith.addf %390, %389 : vector<8x128xf32>
    %392 = arith.divf %390, %391 : vector<8x128xf32>
    %393 = vector.extract_strided_slice %374 {offsets = [0, 256], sizes = [8, 128], strides = [1, 1]} : vector<8x384xf32> to vector<8x128xf32>
    %394 = vector.extract_strided_slice %376 {offsets = [0, 256], sizes = [8, 128], strides = [1, 1]} : vector<8x384xf32> to vector<8x128xf32>
    %395 = arith.addf %394, %279 : vector<8x128xf32>
    %396 = arith.mulf %384, %395 : vector<8x128xf32>
    %397 = arith.addf %393, %396 : vector<8x128xf32>
    %398 = math.tanh %397 : vector<8x128xf32>
    %cst_114 = arith.constant 1.000000e+00 : f32
    %399 = vector.broadcast %cst_114 : f32 to vector<8x128xf32>
    %400 = arith.subf %399, %392 : vector<8x128xf32>
    %401 = arith.mulf %400, %398 : vector<8x128xf32>
    %402 = arith.mulf %392, %372 : vector<8x128xf32>
    %403 = arith.addf %401, %402 : vector<8x128xf32>
    %c24_115 = arith.constant 24 : index
    %c0_116 = arith.constant 0 : index
    %404 = vector.load %arg9[%c24_115, %c0_116] : memref<64x128xf32, #tpu.memory_space<vmem>>, vector<8x128xf32>
    tpu.vector_store %arg9[%c24_115, %c0_116], %403 {strides = array<i32>} : memref<64x128xf32, #tpu.memory_space<vmem>>, vector<8x128xf32>,
    %c32_117 = arith.constant 32 : index
    %c0_118 = arith.constant 0 : index
    %405 = vector.load %arg11[%c32_117, %c0_118] : memref<64x384xf32, #tpu.memory_space<vmem>>, vector<8x384xf32>
    %406 = arith.truncf %403 : vector<8x128xf32> to vector<8x128xbf16>
    %cst_119 = arith.constant dense<0.000000e+00> : vector<8x384xf32>
    %407 = tpu.matmul %406, %270, %cst_119 {dimension_numbers = #tpu.dot_dimension_numbers<[1], [0], [0], [1], [0, 0, 1, 1], [], []>} : vector<8x128xbf16>, vector<128x384xbf16>, vector<8x384xf32> -> vector<8x384xf32>
    %408 = vector.extract_strided_slice %405 {offsets = [0, 0], sizes = [8, 128], strides = [1, 1]} : vector<8x384xf32> to vector<8x128xf32>
    %409 = vector.extract_strided_slice %407 {offsets = [0, 0], sizes = [8, 128], strides = [1, 1]} : vector<8x384xf32> to vector<8x128xf32>
    %410 = arith.addf %408, %409 : vector<8x128xf32>
    %411 = arith.negf %410 : vector<8x128xf32>
    %412 = math.exp %411 : vector<8x128xf32>
    %cst_120 = arith.constant 1.000000e+00 : f32
    %413 = vector.broadcast %cst_120 : f32 to vector<8x128xf32>
    %414 = arith.addf %413, %412 : vector<8x128xf32>
    %415 = arith.divf %413, %414 : vector<8x128xf32>
    %416 = vector.extract_strided_slice %405 {offsets = [0, 128], sizes = [8, 128], strides = [1, 1]} : vector<8x384xf32> to vector<8x128xf32>
    %417 = vector.extract_strided_slice %407 {offsets = [0, 128], sizes = [8, 128], strides = [1, 1]} : vector<8x384xf32> to vector<8x128xf32>
    %418 = arith.addf %416, %417 : vector<8x128xf32>
    %419 = arith.negf %418 : vector<8x128xf32>
    %420 = math.exp %419 : vector<8x128xf32>
    %cst_121 = arith.constant 1.000000e+00 : f32
    %421 = vector.broadcast %cst_121 : f32 to vector<8x128xf32>
    %422 = arith.addf %421, %420 : vector<8x128xf32>
    %423 = arith.divf %421, %422 : vector<8x128xf32>
    %424 = vector.extract_strided_slice %405 {offsets = [0, 256], sizes = [8, 128], strides = [1, 1]} : vector<8x384xf32> to vector<8x128xf32>
    %425 = vector.extract_strided_slice %407 {offsets = [0, 256], sizes = [8, 128], strides = [1, 1]} : vector<8x384xf32> to vector<8x128xf32>
    %426 = arith.addf %425, %279 : vector<8x128xf32>
    %427 = arith.mulf %415, %426 : vector<8x128xf32>
    %428 = arith.addf %424, %427 : vector<8x128xf32>
    %429 = math.tanh %428 : vector<8x128xf32>
    %cst_122 = arith.constant 1.000000e+00 : f32
    %430 = vector.broadcast %cst_122 : f32 to vector<8x128xf32>
    %431 = arith.subf %430, %423 : vector<8x128xf32>
    %432 = arith.mulf %431, %429 : vector<8x128xf32>
    %433 = arith.mulf %423, %403 : vector<8x128xf32>
    %434 = arith.addf %432, %433 : vector<8x128xf32>
    %c32_123 = arith.constant 32 : index
    %c0_124 = arith.constant 0 : index
    %435 = vector.load %arg9[%c32_123, %c0_124] : memref<64x128xf32, #tpu.memory_space<vmem>>, vector<8x128xf32>
    tpu.vector_store %arg9[%c32_123, %c0_124], %434 {strides = array<i32>} : memref<64x128xf32, #tpu.memory_space<vmem>>, vector<8x128xf32>,
    %c40_125 = arith.constant 40 : index
    %c0_126 = arith.constant 0 : index
    %436 = vector.load %arg11[%c40_125, %c0_126] : memref<64x384xf32, #tpu.memory_space<vmem>>, vector<8x384xf32>
    %437 = arith.truncf %434 : vector<8x128xf32> to vector<8x128xbf16>
    %cst_127 = arith.constant dense<0.000000e+00> : vector<8x384xf32>
    %438 = tpu.matmul %437, %270, %cst_127 {dimension_numbers = #tpu.dot_dimension_numbers<[1], [0], [0], [1], [0, 0, 1, 1], [], []>} : vector<8x128xbf16>, vector<128x384xbf16>, vector<8x384xf32> -> vector<8x384xf32>
    %439 = vector.extract_strided_slice %436 {offsets = [0, 0], sizes = [8, 128], strides = [1, 1]} : vector<8x384xf32> to vector<8x128xf32>
    %440 = vector.extract_strided_slice %438 {offsets = [0, 0], sizes = [8, 128], strides = [1, 1]} : vector<8x384xf32> to vector<8x128xf32>
    %441 = arith.addf %439, %440 : vector<8x128xf32>
    %442 = arith.negf %441 : vector<8x128xf32>
    %443 = math.exp %442 : vector<8x128xf32>
    %cst_128 = arith.constant 1.000000e+00 : f32
    %444 = vector.broadcast %cst_128 : f32 to vector<8x128xf32>
    %445 = arith.addf %444, %443 : vector<8x128xf32>
    %446 = arith.divf %444, %445 : vector<8x128xf32>
    %447 = vector.extract_strided_slice %436 {offsets = [0, 128], sizes = [8, 128], strides = [1, 1]} : vector<8x384xf32> to vector<8x128xf32>
    %448 = vector.extract_strided_slice %438 {offsets = [0, 128], sizes = [8, 128], strides = [1, 1]} : vector<8x384xf32> to vector<8x128xf32>
    %449 = arith.addf %447, %448 : vector<8x128xf32>
    %450 = arith.negf %449 : vector<8x128xf32>
    %451 = math.exp %450 : vector<8x128xf32>
    %cst_129 = arith.constant 1.000000e+00 : f32
    %452 = vector.broadcast %cst_129 : f32 to vector<8x128xf32>
    %453 = arith.addf %452, %451 : vector<8x128xf32>
    %454 = arith.divf %452, %453 : vector<8x128xf32>
    %455 = vector.extract_strided_slice %436 {offsets = [0, 256], sizes = [8, 128], strides = [1, 1]} : vector<8x384xf32> to vector<8x128xf32>
    %456 = vector.extract_strided_slice %438 {offsets = [0, 256], sizes = [8, 128], strides = [1, 1]} : vector<8x384xf32> to vector<8x128xf32>
    %457 = arith.addf %456, %279 : vector<8x128xf32>
    %458 = arith.mulf %446, %457 : vector<8x128xf32>
    %459 = arith.addf %455, %458 : vector<8x128xf32>
    %460 = math.tanh %459 : vector<8x128xf32>
    %cst_130 = arith.constant 1.000000e+00 : f32
    %461 = vector.broadcast %cst_130 : f32 to vector<8x128xf32>
    %462 = arith.subf %461, %454 : vector<8x128xf32>
    %463 = arith.mulf %462, %460 : vector<8x128xf32>
    %464 = arith.mulf %454, %434 : vector<8x128xf32>
    %465 = arith.addf %463, %464 : vector<8x128xf32>
    %c40_131 = arith.constant 40 : index
    %c0_132 = arith.constant 0 : index
    %466 = vector.load %arg9[%c40_131, %c0_132] : memref<64x128xf32, #tpu.memory_space<vmem>>, vector<8x128xf32>
    tpu.vector_store %arg9[%c40_131, %c0_132], %465 {strides = array<i32>} : memref<64x128xf32, #tpu.memory_space<vmem>>, vector<8x128xf32>,
    %c48_133 = arith.constant 48 : index
    %c0_134 = arith.constant 0 : index
    %467 = vector.load %arg11[%c48_133, %c0_134] : memref<64x384xf32, #tpu.memory_space<vmem>>, vector<8x384xf32>
    %468 = arith.truncf %465 : vector<8x128xf32> to vector<8x128xbf16>
    %cst_135 = arith.constant dense<0.000000e+00> : vector<8x384xf32>
    %469 = tpu.matmul %468, %270, %cst_135 {dimension_numbers = #tpu.dot_dimension_numbers<[1], [0], [0], [1], [0, 0, 1, 1], [], []>} : vector<8x128xbf16>, vector<128x384xbf16>, vector<8x384xf32> -> vector<8x384xf32>
    %470 = vector.extract_strided_slice %467 {offsets = [0, 0], sizes = [8, 128], strides = [1, 1]} : vector<8x384xf32> to vector<8x128xf32>
    %471 = vector.extract_strided_slice %469 {offsets = [0, 0], sizes = [8, 128], strides = [1, 1]} : vector<8x384xf32> to vector<8x128xf32>
    %472 = arith.addf %470, %471 : vector<8x128xf32>
    %473 = arith.negf %472 : vector<8x128xf32>
    %474 = math.exp %473 : vector<8x128xf32>
    %cst_136 = arith.constant 1.000000e+00 : f32
    %475 = vector.broadcast %cst_136 : f32 to vector<8x128xf32>
    %476 = arith.addf %475, %474 : vector<8x128xf32>
    %477 = arith.divf %475, %476 : vector<8x128xf32>
    %478 = vector.extract_strided_slice %467 {offsets = [0, 128], sizes = [8, 128], strides = [1, 1]} : vector<8x384xf32> to vector<8x128xf32>
    %479 = vector.extract_strided_slice %469 {offsets = [0, 128], sizes = [8, 128], strides = [1, 1]} : vector<8x384xf32> to vector<8x128xf32>
    %480 = arith.addf %478, %479 : vector<8x128xf32>
    %481 = arith.negf %480 : vector<8x128xf32>
    %482 = math.exp %481 : vector<8x128xf32>
    %cst_137 = arith.constant 1.000000e+00 : f32
    %483 = vector.broadcast %cst_137 : f32 to vector<8x128xf32>
    %484 = arith.addf %483, %482 : vector<8x128xf32>
    %485 = arith.divf %483, %484 : vector<8x128xf32>
    %486 = vector.extract_strided_slice %467 {offsets = [0, 256], sizes = [8, 128], strides = [1, 1]} : vector<8x384xf32> to vector<8x128xf32>
    %487 = vector.extract_strided_slice %469 {offsets = [0, 256], sizes = [8, 128], strides = [1, 1]} : vector<8x384xf32> to vector<8x128xf32>
    %488 = arith.addf %487, %279 : vector<8x128xf32>
    %489 = arith.mulf %477, %488 : vector<8x128xf32>
    %490 = arith.addf %486, %489 : vector<8x128xf32>
    %491 = math.tanh %490 : vector<8x128xf32>
    %cst_138 = arith.constant 1.000000e+00 : f32
    %492 = vector.broadcast %cst_138 : f32 to vector<8x128xf32>
    %493 = arith.subf %492, %485 : vector<8x128xf32>
    %494 = arith.mulf %493, %491 : vector<8x128xf32>
    %495 = arith.mulf %485, %465 : vector<8x128xf32>
    %496 = arith.addf %494, %495 : vector<8x128xf32>
    %c48_139 = arith.constant 48 : index
    %c0_140 = arith.constant 0 : index
    %497 = vector.load %arg9[%c48_139, %c0_140] : memref<64x128xf32, #tpu.memory_space<vmem>>, vector<8x128xf32>
    tpu.vector_store %arg9[%c48_139, %c0_140], %496 {strides = array<i32>} : memref<64x128xf32, #tpu.memory_space<vmem>>, vector<8x128xf32>,
    %c56_141 = arith.constant 56 : index
    %c0_142 = arith.constant 0 : index
    %498 = vector.load %arg11[%c56_141, %c0_142] : memref<64x384xf32, #tpu.memory_space<vmem>>, vector<8x384xf32>
    %499 = arith.truncf %496 : vector<8x128xf32> to vector<8x128xbf16>
    %cst_143 = arith.constant dense<0.000000e+00> : vector<8x384xf32>
    %500 = tpu.matmul %499, %270, %cst_143 {dimension_numbers = #tpu.dot_dimension_numbers<[1], [0], [0], [1], [0, 0, 1, 1], [], []>} : vector<8x128xbf16>, vector<128x384xbf16>, vector<8x384xf32> -> vector<8x384xf32>
    %501 = vector.extract_strided_slice %498 {offsets = [0, 0], sizes = [8, 128], strides = [1, 1]} : vector<8x384xf32> to vector<8x128xf32>
    %502 = vector.extract_strided_slice %500 {offsets = [0, 0], sizes = [8, 128], strides = [1, 1]} : vector<8x384xf32> to vector<8x128xf32>
    %503 = arith.addf %501, %502 : vector<8x128xf32>
    %504 = arith.negf %503 : vector<8x128xf32>
    %505 = math.exp %504 : vector<8x128xf32>
    %cst_144 = arith.constant 1.000000e+00 : f32
    %506 = vector.broadcast %cst_144 : f32 to vector<8x128xf32>
    %507 = arith.addf %506, %505 : vector<8x128xf32>
    %508 = arith.divf %506, %507 : vector<8x128xf32>
    %509 = vector.extract_strided_slice %498 {offsets = [0, 128], sizes = [8, 128], strides = [1, 1]} : vector<8x384xf32> to vector<8x128xf32>
    %510 = vector.extract_strided_slice %500 {offsets = [0, 128], sizes = [8, 128], strides = [1, 1]} : vector<8x384xf32> to vector<8x128xf32>
    %511 = arith.addf %509, %510 : vector<8x128xf32>
    %512 = arith.negf %511 : vector<8x128xf32>
    %513 = math.exp %512 : vector<8x128xf32>
    %cst_145 = arith.constant 1.000000e+00 : f32
    %514 = vector.broadcast %cst_145 : f32 to vector<8x128xf32>
    %515 = arith.addf %514, %513 : vector<8x128xf32>
    %516 = arith.divf %514, %515 : vector<8x128xf32>
    %517 = vector.extract_strided_slice %498 {offsets = [0, 256], sizes = [8, 128], strides = [1, 1]} : vector<8x384xf32> to vector<8x128xf32>
    %518 = vector.extract_strided_slice %500 {offsets = [0, 256], sizes = [8, 128], strides = [1, 1]} : vector<8x384xf32> to vector<8x128xf32>
    %519 = arith.addf %518, %279 : vector<8x128xf32>
    %520 = arith.mulf %508, %519 : vector<8x128xf32>
    %521 = arith.addf %517, %520 : vector<8x128xf32>
    %522 = math.tanh %521 : vector<8x128xf32>
    %cst_146 = arith.constant 1.000000e+00 : f32
    %523 = vector.broadcast %cst_146 : f32 to vector<8x128xf32>
    %524 = arith.subf %523, %516 : vector<8x128xf32>
    %525 = arith.mulf %524, %522 : vector<8x128xf32>
    %526 = arith.mulf %516, %496 : vector<8x128xf32>
    %527 = arith.addf %525, %526 : vector<8x128xf32>
    %c56_147 = arith.constant 56 : index
    %c0_148 = arith.constant 0 : index
    %528 = vector.load %arg9[%c56_147, %c0_148] : memref<64x128xf32, #tpu.memory_space<vmem>>, vector<8x128xf32>
    tpu.vector_store %arg9[%c56_147, %c0_148], %527 {strides = array<i32>} : memref<64x128xf32, #tpu.memory_space<vmem>>, vector<8x128xf32>,
    %c8_149 = arith.constant 8 : index
    %c0_150 = arith.constant 0 : index
    %529 = vector.load %arg10[%c8_149, %c0_150] : memref<16x128xf32, #tpu.memory_space<vmem>>, vector<8x128xf32>
    tpu.vector_store %arg10[%c8_149, %c0_150], %527 {strides = array<i32>} : memref<16x128xf32, #tpu.memory_space<vmem>>, vector<8x128xf32>,
    return
  }
}

</mosaic_0001>

<bundles_post_ra>
// kernel: encoder_rnn_forward.1
= control target key start
LH: loop header
LB: loop body
LE: loop exit
PB: predicated region body
PF: predicated region fallthrough
CT: control target
= control target key end

     0   :  { %v5315_v1 = vmov 0   ;;  %v5317_v34 = vmov 0.0   ;;  %vm3847_vm0 = vmmov 0   ;;  %v110_v54 = vlaneseq  ;;  %s5301_s1 = inlined_call_operand.vmem [shape: bf16[128,384], index: 1, kind: input, shape index: {}]   ;;  %s5302_s0 = inlined_call_operand.vmem [shape: bf16[64,128], index: 0, kind: input, shape index: {}]   ;;  %s5303_s2 = inlined_call_operand.vmem [shape: bf16[128,384], index: 2, kind: input, shape index: {}]   ;;  %s5304_s3 = inlined_call_operand.vmem [shape: f32[1,384], index: 3, kind: input, shape index: {}]   ;;  %s5305_s4 = inlined_call_operand.vmem [shape: f32[1,128], index: 4, kind: input, shape index: {}]   ;;  %s5306_s5 = inlined_call_operand.vmem [shape: bf16[128,384], index: 5, kind: input, shape index: {}]   ;;  %s5307_s6 = inlined_call_operand.vmem [shape: bf16[128,384], index: 6, kind: input, shape index: {}]   ;;  %s5308_s10 = inlined_call_operand.vmem [shape: f32[16,128], index: 10, kind: output, shape index: {1}]   ;;  %s5309_s7 = inlined_call_operand.vmem [shape: f32[1,384], index: 7, kind: input, shape index: {}]   ;;  %s5310_s8 = inlined_call_operand.vmem [shape: f32[1,128], index: 8, kind: input, shape index: {}]   ;;  %s5311_s9 = inlined_call_operand.vmem [shape: f32[64,128], index: 9, kind: output, shape index: {0}]  }
   0x1   :  { %v3505_v0 = vld [vmem:[%s5301_s1 + $0x4] ss:$12 sps:$4 sm:$0xff]   ;;  %309 = vmatprep.mubr.bf16.mxu0 %v5315_v1  ;;  %v3507_v2 = vld [vmem:[%s5301_s1] ss:$12 sps:$4 sm:$0xff]   ;;  %v3508_v3 = vld [vmem:[%s5301_s1 + $0x1c] ss:$12 sps:$4 sm:$0xff]  }
   0x2   :  { %277 = vmatprep.subr.bf16.mxu0 %v3505_v0  ;;  %v3510_v4 = vld [vmem:[%s5301_s1 + $0x18] ss:$12 sps:$4 sm:$0xff]   ;;  %v3511_v5 = vld [vmem:[%s5301_s1 + $0x34] ss:$12 sps:$4 sm:$0xff]   ;;  %v3513_v6 = vld [vmem:[%s5301_s1 + $0x30] ss:$12 sps:$4 sm:$0xff]  }
   0x3   :  { %278 = vmatpush1.bf16.msra.mxu0 %v3507_v2  ;;  %v3514_v7 = vld [vmem:[%s5301_s1 + $0x4c] ss:$12 sps:$4 sm:$0xff]   ;;  %v3525_v8 = vld [vmem:[%s5301_s1 + $0x8] ss:$12 sps:$4 sm:$0xff]   ;;  %v3517_v10 = vld [vmem:[%s5301_s1 + $0x64] ss:$12 sps:$4 sm:$0xff]  }
   0x4   :  { %279 = vmatprep.subr.bf16.mxu0 %v3508_v3  ;;  %v3516_v9 = vld [vmem:[%s5301_s1 + $0x48] ss:$12 sps:$4 sm:$0xff]   ;;  %3134 = vmatprep.subr.bf16.mxu1 %v3525_v8  ;;  %v3529_v11 = vld [vmem:[%s5301_s1 + $0x20] ss:$12 sps:$4 sm:$0xff]   ;;  %v3532_v13 = vld [vmem:[%s5301_s1 + $0x38] ss:$12 sps:$4 sm:$0xff]  }
   0x5   :  { %3135 = vmatpush3.bf16.msra.mxu1 %v3525_v8  ;;  %v3531_v12 = vld [vmem:[%s5302_s0] sm:$0xff]   ;;  %v3520_v15 = vld [vmem:[%s5301_s1 + $0x7c] ss:$12 sps:$4 sm:$0xff]   ;;  %v3527_v21 = vld [vmem:[%s5301_s1 + $0xac] ss:$12 sps:$4 sm:$0xff]   ;;  %v4185_v55 = vshrl.u32 %v110_v54, 7 }
   0x6   :  { %3136 = vmatprep.subr.bf16.mxu1 %v3529_v11  ;;  %v3519_v14 = vld [vmem:[%s5301_s1 + $0x60] ss:$12 sps:$4 sm:$0xff]   ;;  %3150 = vmatprep.mubr.bf16.mxu1 %v3531_v12  ;;  %v3536_v16 = vld [vmem:[%s5301_s1 + $0x50] ss:$12 sps:$4 sm:$0xff]   ;;  %v3522_v17 = vld [vmem:[%s5301_s1 + $0x78] ss:$12 sps:$4 sm:$0xff]  }
   0x7   :  { %280 = vmatpush1.bf16.msra.mxu0 %v3510_v4  ;;  %v3523_v18 = vld [vmem:[%s5301_s1 + $0x94] ss:$12 sps:$4 sm:$0xff]   ;;  %v3526_v20 = vld [vmem:[%s5301_s1 + $0x90] ss:$12 sps:$4 sm:$0xff]   ;;  %v3550_v25 = vld [vmem:[%s5301_s1 + $0x98] ss:$12 sps:$4 sm:$0xff]  }
   0x8   :  { %281 = vmatprep.subr.bf16.mxu0 %v3511_v5  ;;  %v3541_v19 = vld [vmem:[%s5301_s1 + $0x68] ss:$12 sps:$4 sm:$0xff]   ;;  %v3545_v22 = vld [vmem:[%s5301_s1 + $0x80] ss:$12 sps:$4 sm:$0xff]   ;;  %v3976_v24 = vld [vmem:[%s5303_s2 + $0x4] ss:$12 sps:$4 sm:$0xff]  }
   0x9   :  { %3137 = vmatpush3.bf16.msra.mxu1 %v3529_v11  ;;  %v3530_v23 = vld [vmem:[%s5301_s1 + $0xa8] ss:$12 sps:$4 sm:$0xff]   ;;  %v3984_v26 = vld [vmem:[%s5303_s2] ss:$12 sps:$4 sm:$0xff]   ;;  %v3554_v28 = vld [vmem:[%s5301_s1 + $0xb0] ss:$12 sps:$4 sm:$0xff]  }
   0xa   :  { %3138 = vmatprep.subr.bf16.mxu1 %v3532_v13  ;;  %v3990_v27 = vld [vmem:[%s5303_s2 + $0x1c] ss:$12 sps:$4 sm:$0xff]   ;;  %v3999_v29 = vld [vmem:[%s5303_s2 + $0x18] ss:$12 sps:$4 sm:$0xff]   ;;  %v4006_v30 = vld [vmem:[%s5303_s2 + $0x34] ss:$12 sps:$4 sm:$0xff]  }
   0xb   :  { %282 = vmatpush1.bf16.msra.mxu0 %v3513_v6  ;;  %v3540_v31 = vld [vmem:[%s5302_s0 + $0x8] sm:$0xff]   ;;  %v4015_v32 = vld [vmem:[%s5303_s2 + $0x30] ss:$12 sps:$4 sm:$0xff]   ;;  %v4068_v42 = vld [vmem:[%s5303_s2 + $0x38] ss:$12 sps:$4 sm:$0xff]   ;;  %5321 = vst [vmem:[#allocation4_spill] sm:$0xff] %v4185_v55 }
   0xc   :  { %283 = vmatprep.subr.bf16.mxu0 %v3514_v7  ;;  %v4021_v33 = vld [vmem:[%s5303_s2 + $0x4c] ss:$12 sps:$4 sm:$0xff]   ;;  %v4027_v35 = vld [vmem:[%s5303_s2 + $0x8] ss:$12 sps:$4 sm:$0xff]   ;;  %v4043_v38 = vld [vmem:[%s5303_s2 + $0x64] ss:$12 sps:$4 sm:$0xff]  }
   0xd   :  { %3139 = vmatpush3.bf16.msra.mxu1 %v3532_v13  ;;  %v4033_v36 = vld [vmem:[%s5303_s2 + $0x48] ss:$12 sps:$4 sm:$0xff]   ;;  %v4049_v39 = vld [vmem:[%s5303_s2 + $0x20] ss:$12 sps:$4 sm:$0xff]   ;;  %v3558_v43 = vld [vmem:[%s5302_s0 + $0x18] sm:$0xff]   ;;  %v5314_v56 = vsub.s32 0, %v4185_v55 }
   0xe   :  { %3140 = vmatprep.subr.bf16.mxu1 %v3536_v16  ;;  %v3549_v37 = vld [vmem:[%s5302_s0 + $0x10] sm:$0xff]   ;;  %v4056_v40 = vld [vmem:[%s5303_s2 + $0x60] ss:$12 sps:$4 sm:$0xff]   ;;  %v4062_v41 = vld [vmem:[%s5303_s2 + $0x7c] ss:$12 sps:$4 sm:$0xff]   ;;  %v5313_v58 = vsub.s32 1, %v4185_v55 }
   0xf   :  { %284 = vmatpush1.bf16.msra.mxu0 %v3516_v9  ;;  %v4078_v44 = vld [vmem:[%s5303_s2 + $0x78] ss:$12 sps:$4 sm:$0xff]   ;;  %v4085_v45 = vld [vmem:[%s5303_s2 + $0x94] ss:$12 sps:$4 sm:$0xff]   ;;  %v4091_v46 = vld [vmem:[%s5303_s2 + $0x50] ss:$12 sps:$4 sm:$0xff]  }
  0x10   :  { %285 = vmatprep.subr.bf16.mxu0 %v3517_v10  ;;  %v4100_v47 = vld [vmem:[%s5303_s2 + $0x90] ss:$12 sps:$4 sm:$0xff]   ;;  %v4106_v48 = vld [vmem:[%s5303_s2 + $0xac] ss:$12 sps:$4 sm:$0xff]   ;;  %v4112_v49 = vld [vmem:[%s5303_s2 + $0x68] ss:$12 sps:$4 sm:$0xff]  }
  0x11   :  { %3141 = vmatpush3.bf16.msra.mxu1 %v3536_v16  ;;  %v4119_v50 = vld [vmem:[%s5303_s2 + $0xa8] ss:$12 sps:$4 sm:$0xff]   ;;  %v4127_v51 = vld [vmem:[%s5303_s2 + $0x80] ss:$12 sps:$4 sm:$0xff]   ;;  %v4136_v52 = vld [vmem:[%s5303_s2 + $0x98] ss:$12 sps:$4 sm:$0xff]  }
  0x12   :  { %3142 = vmatprep.subr.bf16.mxu1 %v3541_v19  ;;  %v4147_v53 = vld [vmem:[%s5303_s2 + $0xb0] ss:$12 sps:$4 sm:$0xff]   ;;  %v99_v57 = vld [vmem:[%s5304_s3] sm:$0x7]  ;;  %v5312_v3 = vsub.s32 2, %v4185_v55 }
  0x13   :  { %286 = vmatpush1.bf16.msra.mxu0 %v3519_v14  ;;  %v113_v60 = vrot.slane %v99_v57, %v5314_v56  ;;  %v117_v62 = vrot.slane %v99_v57, %v5313_v58 }
  0x14   :  { %287 = vmatprep.subr.bf16.mxu0 %v3520_v15  ;;  %v4203_v5 = vrot.slane %v99_v57, %v5312_v3 }
  0x15   :  { %3143 = vmatpush3.bf16.msra.mxu1 %v3541_v19 }
  0x16   :  { %3144 = vmatprep.subr.bf16.mxu1 %v3545_v22 }
  0x17   :  { %288 = vmatpush1.bf16.msra.mxu0 %v3522_v17 }
  0x18   :  { %289 = vmatprep.subr.bf16.mxu0 %v3523_v18 }
  0x19   :  { %3145 = vmatpush3.bf16.msra.mxu1 %v3545_v22 }
  0x1a   :  { %3146 = vmatprep.subr.bf16.mxu1 %v3550_v25 }
  0x1b   :  { %290 = vmatpush1.bf16.msra.mxu0 %v3526_v20 }
  0x1c   :  { %291 = vmatprep.subr.bf16.mxu0 %v3527_v21 }
  0x1d   :  { %3147 = vmatpush3.bf16.msra.mxu1 %v3550_v25 }
  0x1e   :  { %3148 = vmatprep.subr.bf16.mxu1 %v3554_v28 }
  0x1f   :  { %292 = vmatpush1.bf16.msra.mxu0 %v3530_v23 }
  0x20   :  { %576 = vmatprep.subr.bf16.mxu0 %v3976_v24 }
  0x21   :  { %3149 = vmatpush3.bf16.msra.mxu1 %v3554_v28 }
  0x22   :  { %310 = vmatmul.mubr.bf16.vlgmr.msra.gmra.mrb[0].mxu0 %v3531_v12  ;;  %3158 = vmatprep.subr.bf16.mxu1 %v5317_v34 }
  0x23   :  { %577 = vmatpush1.bf16.msra.mxu0 %v3984_v26  ;;  %319 = vmatprep.mubr.bf16.mxu0 %v5315_v1 }
  0x24   :  { %578 = vmatprep.subr.bf16.mxu0 %v3990_v27  ;;  %3151 = vmatmul.mubr.bf16.vlgmr.msra.gmra.mrb[0].mxu1 %v3540_v31 }
  0x25   :  { %3159 = vmatpush3.bf16.msra.mxu1 %v4027_v35  ;;  %3154 = vmatprep.mubr.bf16.mxu1 %v3549_v37 }
  0x26   :  { %3160 = vmatprep.subr.bf16.mxu1 %v5317_v34 }
  0x27   :  { %579 = vmatpush1.bf16.msra.mxu0 %v3999_v29 }
  0x28   :  { %580 = vmatprep.subr.bf16.mxu0 %v4006_v30 }
  0x29   :  { %3161 = vmatpush3.bf16.msra.mxu1 %v4049_v39 }
  0x2a   :  { %320 = vmatmul.mubr.bf16.gmra.mrb[4].mxu0 %v3540_v31  ;;  %3162 = vmatprep.subr.bf16.mxu1 %v5317_v34 }
  0x2b   :  { %581 = vmatpush1.bf16.msra.mxu0 %v4015_v32  ;;  %329 = vmatprep.mubr.bf16.mxu0 %v5315_v1 }
  0x2c   :  { %582 = vmatprep.subr.bf16.mxu0 %v4021_v33  ;;  %3155 = vmatmul.mubr.bf16.gmra.mrb[4].mxu1 %v3558_v43 }
  0x2d   :  { %3163 = vmatpush3.bf16.msra.mxu1 %v4068_v42  ;;  %3174 = vmatprep.mubr.msk.bf16.mxu1 %vm3847_vm0, %v5317_v34 }
  0x2e   :  { %3164 = vmatprep.subr.bf16.mxu1 %v5317_v34 }
  0x2f   :  { %583 = vmatpush1.bf16.msra.mxu0 %v4033_v36 }
  0x30   :  { %584 = vmatprep.subr.bf16.mxu0 %v4043_v38 }
  0x31   :  { %3165 = vmatpush3.bf16.msra.mxu1 %v4091_v46 }
  0x32   :  { %330 = vmatmul.mubr.bf16.gmra.mrb[8].mxu0 %v3549_v37  ;;  %3166 = vmatprep.subr.bf16.mxu1 %v5317_v34 }
  0x33   :  { %585 = vmatpush1.bf16.msra.mxu0 %v4056_v40  ;;  %339 = vmatprep.mubr.bf16.mxu0 %v5315_v1 }
  0x34   :  { %586 = vmatprep.subr.bf16.mxu0 %v4062_v41 }
  0x35   :  { %3167 = vmatpush3.bf16.msra.mxu1 %v4112_v49 }
  0x36   :  { %3168 = vmatprep.subr.bf16.mxu1 %v5317_v34 }
  0x37   :  { %587 = vmatpush1.bf16.msra.mxu0 %v4078_v44 }
  0x38   :  { %588 = vmatprep.subr.bf16.mxu0 %v4085_v45 }
  0x39   :  { %3169 = vmatpush3.bf16.msra.mxu1 %v4127_v51 }
  0x3a   :  { %340 = vmatmul.mubr.bf16.gmra.mrb[12].mxu0 %v3558_v43  ;;  %3170 = vmatprep.subr.bf16.mxu1 %v5317_v34 }
  0x3b   :  { %589 = vmatpush1.bf16.msra.mxu0 %v4100_v47  ;;  %608 = vmatprep.mubr.bf16.mxu0 %v5315_v1 }
  0x3c   :  { %590 = vmatprep.subr.bf16.mxu0 %v4106_v48 }
  0x3d   :  { %3171 = vmatpush3.bf16.msra.mxu1 %v4136_v52 }
  0x3e   :  { %3172 = vmatprep.subr.bf16.mxu1 %v5317_v34 }
  0x3f   :  { %591 = vmatpush1.bf16.msra.mxu0 %v4119_v50 }
  0x40   :  { %684 = vmatprep.subr.bf16.mxu0 %v3976_v24 }
  0x41   :  { %3173 = vmatpush3.bf16.msra.mxu1 %v4147_v53 }
  0x42   :  { %609 = vmatmul.mubr.bf16.vlgmr.msra.gmra.mrb[16].mxu0 %v5315_v1  ;;  %3178 = vmatprep.subr.bf16.mxu1 %v5317_v34 }
  0x43   :  { %685 = vmatpush1.bf16.msra.mxu0 %v3984_v26  ;;  %716 = vmatprep.mubr.bf16.mxu0 %v5315_v1 }
  0x44   :  { %686 = vmatprep.subr.bf16.mxu0 %v3990_v27  ;;  %3175 = vmatmul.mubr.bf16.vlgmr.msra.gmra.mrb[8].mxu1 %v5315_v1 }
  0x45   :  { %3179 = vmatpush3.bf16.msra.mxu1 %v4027_v35  ;;  %3194 = vmatprep.mubr.msk.bf16.mxu1 %vm3847_vm0, %v5317_v34 }
  0x46   :  { %3180 = vmatprep.subr.bf16.mxu1 %v5317_v34 }
  0x47   :  { %687 = vmatpush1.bf16.msra.mxu0 %v3999_v29 }
  0x48   :  { %688 = vmatprep.subr.bf16.mxu0 %v4006_v30 }
  0x49   :  { %3181 = vmatpush3.bf16.msra.mxu1 %v4049_v39 }
  0x4a   :  { %3182 = vmatprep.subr.bf16.mxu1 %v5317_v34 }
  0x4b   :  { %689 = vmatpush1.bf16.msra.mxu0 %v4015_v32 }
  0x4c   :  { %690 = vmatprep.subr.bf16.mxu0 %v4021_v33 }
  0x4d   :  { %3183 = vmatpush3.bf16.msra.mxu1 %v4068_v42 }
  0x4e   :  { %3184 = vmatprep.subr.bf16.mxu1 %v5317_v34 }
  0x4f   :  { %691 = vmatpush1.bf16.msra.mxu0 %v4033_v36 }
  0x50   :  { %692 = vmatprep.subr.bf16.mxu0 %v4043_v38 }
  0x51   :  { %3185 = vmatpush3.bf16.msra.mxu1 %v4091_v46 }
  0x52   :  { %3186 = vmatprep.subr.bf16.mxu1 %v5317_v34 }
  0x53   :  { %693 = vmatpush1.bf16.msra.mxu0 %v4056_v40 }
  0x54   :  { %694 = vmatprep.subr.bf16.mxu0 %v4062_v41 }
  0x55   :  { %3187 = vmatpush3.bf16.msra.mxu1 %v4112_v49 }
  0x56   :  { %3188 = vmatprep.subr.bf16.mxu1 %v5317_v34 }
  0x57   :  { %695 = vmatpush1.bf16.msra.mxu0 %v4078_v44 }
  0x58   :  { %696 = vmatprep.subr.bf16.mxu0 %v4085_v45 }
  0x59   :  { %3189 = vmatpush3.bf16.msra.mxu1 %v4127_v51 }
  0x5a   :  { %3190 = vmatprep.subr.bf16.mxu1 %v5317_v34 }
  0x5b   :  { %697 = vmatpush1.bf16.msra.mxu0 %v4100_v47 }
  0x5c   :  { %698 = vmatprep.subr.bf16.mxu0 %v4106_v48 }
  0x5d   :  { %3191 = vmatpush3.bf16.msra.mxu1 %v4136_v52 }
  0x5e   :  { %3192 = vmatprep.subr.bf16.mxu1 %v5317_v34 }
  0x5f   :  { %699 = vmatpush1.bf16.msra.mxu0 %v4119_v50 }
  0x60   :  { %795 = vmatprep.subr.bf16.mxu0 %v3976_v24 }
  0x61   :  { %3193 = vmatpush3.bf16.msra.mxu1 %v4147_v53 }
  0x62   :  { %3198 = vmatprep.subr.bf16.mxu1 %v5317_v34 }
  0xf5   :  { %v311_v59 = vpop.f32.mrb[0].mxu0 }
  0xf6   :  { %v313_v61 = vpop.f32.mrb[1].mxu0 }
  0xf7   :  { %v315_v63 = vpop.f32.mrb[2].mxu0  ;;  %v3152_v11 = vpop.f32.mrb[0].mxu1  ;;  %v314_v3 = vadd.f32 %v313_v61, %v117_v62 }
  0xf8   :  { %v4196_v0 = vadd.f32 %v315_v63, %v113_v60  ;;  %v317_v2 = vpop.f32.mrb[3].mxu0  ;;  %v4212_v14 = vadd.f32 %v3152_v11, %v4203_v5  ;;  %v384_v15 = vpop.f32.mrb[1].mxu1 }
  0xf9   :  { %v4199_v4 = vadd.f32 %v317_v2, %v117_v62  ;;  %v3153_v17 = vpop.f32.mrb[2].mxu1 }
  0xfa   :  { %v4217_v18 = vadd.f32 %v3153_v17, %v4203_v5  ;;  %v387_v19 = vpop.f32.mrb[3].mxu1 }
  0xfb   :  { %v4220_v20 = vadd.f32 %v387_v19, %v4203_v5 }
  0xfd   :  { %v321_v6 = vpop.f32.mrb[4].mxu0 }
  0xfe   :  { %v4205_v7 = vadd.f32 %v321_v6, %v113_v60  ;;  %v323_v8 = vpop.f32.mrb[5].mxu0 }
  0xff   :  { %v4207_v9 = vadd.f32 %v323_v8, %v117_v62  ;;  %v325_v10 = vpop.f32.mrb[6].mxu0  ;;  %v3156_v31 = vpop.f32.mrb[4].mxu1 }
 0x100   :  { %v4209_v12 = vadd.f32 %v325_v10, %v113_v60  ;;  %v327_v13 = vpop.f32.mrb[7].mxu0  ;;  %v4229_v54 = vadd.f32 %v3156_v31, %v4203_v5  ;;  %v400_v57 = vpop.f32.mrb[5].mxu1 }
 0x101   :  { %v4214_v16 = vadd.f32 %v327_v13, %v117_v62  ;;  %v4234_v2 = vadd.f32 %v400_v57, %v4203_v5  ;;  %v3157_v6 = vpop.f32.mrb[6].mxu1  ;;  %v312_v57 = vadd.f32 %v311_v59, %v113_v60  ;;  %v4253_v59 = vld [vmem:[%s5305_s4] ss:$0 sm:$0xff] }
 0x102   :  { %5322 = vst [vmem:[#allocation5_spill] sm:$0xff] %v4229_v54  ;;  %v4237_v8 = vadd.f32 %v3157_v6, %v4203_v5  ;;  %v403_v10 = vpop.f32.mrb[7].mxu1 }
 0x103   :  { %v4240_v11 = vadd.f32 %v403_v10, %v4203_v5 }
 0x104   :  { %5323 = vst [vmem:[#allocation6_spill] sm:$0xff] %v4237_v8 }
 0x105   :  { %v331_v21 = vpop.f32.mrb[8].mxu0 }
 0x106   :  { %v4222_v22 = vadd.f32 %v331_v21, %v113_v60  ;;  %v333_v23 = vpop.f32.mrb[9].mxu0 }
 0x107   :  { %v4224_v25 = vadd.f32 %v333_v23, %v117_v62  ;;  %v335_v28 = vpop.f32.mrb[10].mxu0 }
 0x108   :  { %v4226_v37 = vadd.f32 %v335_v28, %v113_v60  ;;  %v337_v43 = vpop.f32.mrb[11].mxu0 }
 0x109   :  { %v4231_v63 = vadd.f32 %v337_v43, %v117_v62 }
 0x10d   :  { %v341_v13 = vpop.f32.mrb[12].mxu0 }
 0x10e   :  { %v4242_v17 = vadd.f32 %v341_v13, %v113_v60  ;;  %v343_v19 = vpop.f32.mrb[13].mxu0 }
 0x10f   :  { %v4244_v21 = vadd.f32 %v343_v19, %v117_v62  ;;  %v345_v23 = vpop.f32.mrb[14].mxu0 }
 0x110   :  { %v4246_v28 = vadd.f32 %v345_v23, %v113_v60  ;;  %v347_v31 = vpop.f32.mrb[15].mxu0 }
 0x111   :  { %5324 = vst [vmem:[#allocation7_spill] sm:$0xff] %v4244_v21  ;;  %v4248_v43 = vadd.f32 %v347_v31, %v117_v62 }
 0x112   :  { %5325 = vst [vmem:[#allocation8_spill] sm:$0xff] %v4246_v28 }
 0x115   :  { %v610_v6 = vpop.f32.mrb[16].mxu0 }
 0x116   :  { %v657_v58 = vadd.f32 %v610_v6, %v312_v57  ;;  %v612_v56 = vpop.f32.mrb[17].mxu0 }
 0x117   :  { %v664_v1 = vadd.f32 %v612_v56, %v314_v3  ;;  %v614_v10 = vpop.f32.mrb[18].mxu0  ;;  %v651_v8 = vpop.f32.mrb[8].mxu1 }
 0x118   :  { %v2885_v34 = vmul.f32 -1.442695, %v657_v58  ;;  %v615_v55 = vpop.f32.mrb[19].mxu0  ;;  %v3176_v19 = vpop.f32.mrb[9].mxu1  ;;  %v671_v58 = vadd.f32 %v4253_v59, %v651_v8 }
 0x119   :  { %v2886_v13 = vmul.f32 -1.442695, %v664_v1  ;;  %v654_v54 = vpop.f32.mrb[10].mxu1  ;;  %v385_v1 = vadd.f32 %v384_v15, %v4203_v5  ;;  %v5326_v5 = vmov 0.0   ;;  %v5327_v15 = vmov 0  }
 0x11a   :  { %3637 = vpow2.f32 %v2885_v34  ;;  %v3177_v23 = vpop.f32.mrb[11].mxu1 }
 0x11b   :  { %3639 = vpow2.f32 %v2886_v13 }
 0x124   :  { %v3638_v28 = vpop.eup %3637 }
 0x125   :  { %v661_v21 = vadd.f32 1.0, %v3638_v28  ;;  %v3640_v31 = vpop.eup %3639 }
 0x126   :  { %v668_v56 = vadd.f32 1.0, %v3640_v31 }
 0x127   :  { %3641 = vrcp.f32 %v661_v21 }
 0x128   :  { %3643 = vrcp.f32 %v668_v56 }
 0x131   :  { %v3642_v55 = vpop.eup %3641 }
 0x132   :  { %v672_v34 = vmul.f32 %v3642_v55, %v671_v58  ;;  %v3644_v61 = vpop.eup %3643 }
 0x133   :  { %v675_v62 = vsub.f32 1.0, %v3644_v61  ;;  %v677_v21 = vmul.f32 0.0, %v3644_v61 }
 0x134   :  { %v673_v60 = vadd.f32 %v672_v34, %v385_v1 }
 0x136   :  { %3645 = vtanh.f32 %v673_v60 }
 0x140   :  { %v3646_v3 = vpop.eup %3645 }
 0x141   :  { %v676_v54 = vmul.f32 %v3646_v3, %v675_v62 }
 0x143   :  { %v4257_v28 = vadd.f32 %v677_v21, %v676_v54 }
 0x145   :  { %v679_v57 = vpack.c.bf16 %v4257_v28, %v4257_v28 }
 0x147   :  { %680 = vst [vmem:[#allocation3] sm:$0xf] %v679_v57  ;;  %717 = vmatmul.mubr.bf16.vlgmr.msra.gmra.mrb[20].mxu0 %v679_v57  ;;  %3195 = vmatmul.mubr.bf16.vlgmr.msra.gmra.mrb[12].mxu1 %v679_v57 }
 0x148   :  { %796 = vmatpush1.bf16.msra.mxu0 %v3984_v26  ;;  %3199 = vmatpush3.bf16.msra.mxu1 %v4027_v35 }
 0x149   :  { %797 = vmatprep.subr.bf16.mxu0 %v3990_v27  ;;  %3200 = vmatprep.subr.bf16.mxu1 %v5326_v5 }
 0x14a   :  { %827 = vmatprep.mubr.bf16.mxu0 %v5327_v15  ;;  %3214 = vmatprep.mubr.msk.bf16.mxu1 %vm3847_vm0, %v5326_v5 }
 0x14c   :  { %798 = vmatpush1.bf16.msra.mxu0 %v3999_v29  ;;  %3201 = vmatpush3.bf16.msra.mxu1 %v4049_v39 }
 0x14d   :  { %799 = vmatprep.subr.bf16.mxu0 %v4006_v30  ;;  %3202 = vmatprep.subr.bf16.mxu1 %v5326_v5 }
 0x150   :  { %800 = vmatpush1.bf16.msra.mxu0 %v4015_v32  ;;  %3203 = vmatpush3.bf16.msra.mxu1 %v4068_v42 }
 0x151   :  { %801 = vmatprep.subr.bf16.mxu0 %v4021_v33  ;;  %3204 = vmatprep.subr.bf16.mxu1 %v5326_v5 }
 0x154   :  { %802 = vmatpush1.bf16.msra.mxu0 %v4033_v36  ;;  %3205 = vmatpush3.bf16.msra.mxu1 %v4091_v46 }
 0x155   :  { %803 = vmatprep.subr.bf16.mxu0 %v4043_v38  ;;  %3206 = vmatprep.subr.bf16.mxu1 %v5326_v5 }
 0x158   :  { %804 = vmatpush1.bf16.msra.mxu0 %v4056_v40  ;;  %3207 = vmatpush3.bf16.msra.mxu1 %v4112_v49 }
 0x159   :  { %805 = vmatprep.subr.bf16.mxu0 %v4062_v41  ;;  %3208 = vmatprep.subr.bf16.mxu1 %v5326_v5 }
 0x15c   :  { %806 = vmatpush1.bf16.msra.mxu0 %v4078_v44  ;;  %3209 = vmatpush3.bf16.msra.mxu1 %v4127_v51 }
 0x15d   :  { %807 = vmatprep.subr.bf16.mxu0 %v4085_v45  ;;  %3210 = vmatprep.subr.bf16.mxu1 %v5326_v5 }
 0x160   :  { %808 = vmatpush1.bf16.msra.mxu0 %v4100_v47  ;;  %3211 = vmatpush3.bf16.msra.mxu1 %v4136_v52 }
 0x161   :  { %809 = vmatprep.subr.bf16.mxu0 %v4106_v48  ;;  %3212 = vmatprep.subr.bf16.mxu1 %v5326_v5 }
 0x164   :  { %810 = vmatpush1.bf16.msra.mxu0 %v4119_v50  ;;  %3213 = vmatpush3.bf16.msra.mxu1 %v4147_v53 }
 0x165   :  { %903 = vmatprep.subr.bf16.mxu0 %v3976_v24  ;;  %3218 = vmatprep.subr.bf16.mxu1 %v5326_v5 }
 0x21a   :  { %v718_v8 = vpop.f32.mrb[20].mxu0  ;;  %v759_v6 = vpop.f32.mrb[12].mxu1 }
 0x21b   :  { %v765_v10 = vadd.f32 %v718_v8, %v4196_v0  ;;  %v720_v13 = vpop.f32.mrb[21].mxu0  ;;  %v3196_v19 = vpop.f32.mrb[13].mxu1  ;;  %v779_v54 = vadd.f32 %v4253_v59, %v759_v6 }
 0x21c   :  { %v772_v23 = vadd.f32 %v720_v13, %v4199_v4  ;;  %v722_v31 = vpop.f32.mrb[22].mxu0  ;;  %v762_v56 = vpop.f32.mrb[14].mxu1 }
 0x21d   :  { %v2887_v58 = vmul.f32 -1.442695, %v765_v10  ;;  %v723_v55 = vpop.f32.mrb[23].mxu0  ;;  %v3197_v1 = vpop.f32.mrb[15].mxu1 }
 0x21e   :  { %v2888_v34 = vmul.f32 -1.442695, %v772_v23 }
 0x21f   :  { %3647 = vpow2.f32 %v2887_v58 }
 0x220   :  { %3649 = vpow2.f32 %v2888_v34 }
 0x229   :  { %v3648_v60 = vpop.eup %3647 }
 0x22a   :  { %v769_v61 = vadd.f32 1.0, %v3648_v60  ;;  %v3650_v62 = vpop.eup %3649 }
 0x22b   :  { %v776_v3 = vadd.f32 1.0, %v3650_v62 }
 0x22c   :  { %3651 = vrcp.f32 %v769_v61 }
 0x22d   :  { %3653 = vrcp.f32 %v776_v3 }
 0x236   :  { %v3652_v0 = vpop.eup %3651 }
 0x237   :  { %v780_v21 = vmul.f32 %v3652_v0, %v779_v54  ;;  %v3654_v57 = vpop.eup %3653 }
 0x238   :  { %v783_v8 = vsub.f32 1.0, %v3654_v57  ;;  %v785_v19 = vmul.f32 %v3654_v57, %v4257_v28 }
 0x239   :  { %v781_v4 = vadd.f32 %v780_v21, %v4220_v20 }
 0x23b   :  { %3655 = vtanh.f32 %v781_v4 }
 0x245   :  { %v3656_v10 = vpop.eup %3655 }
 0x246   :  { %v784_v13 = vmul.f32 %v3656_v10, %v783_v8 }
 0x248   :  { %v4301_v23 = vadd.f32 %v785_v19, %v784_v13 }
 0x24a   :  { %v787_v31 = vpack.c.bf16 %v4301_v23, %v4301_v23 }
 0x24c   :  { %v789_v56 = vrot.slane %v787_v31, 4  ;;  %828 = vmatmul.mubr.bf16.vlgmr.msra.gmra.mrb[24].mxu0 %v787_v31  ;;  %3215 = vmatmul.mubr.bf16.vlgmr.msra.gmra.mrb[16].mxu1 %v787_v31 }
 0x24d   :  { %904 = vmatpush1.bf16.msra.mxu0 %v3984_v26  ;;  %3219 = vmatpush3.bf16.msra.mxu1 %v4027_v35 }
 0x24e   :  { %791 = vst [vmem:[#allocation3] sm:$0xf0] %v789_v56  ;;  %905 = vmatprep.subr.bf16.mxu0 %v3990_v27  ;;  %3220 = vmatprep.subr.bf16.mxu1 %v5326_v5 }
 0x24f   :  { %935 = vmatprep.mubr.bf16.mxu0 %v5327_v15  ;;  %3234 = vmatprep.mubr.msk.bf16.mxu1 %vm3847_vm0, %v5326_v5 }
 0x251   :  { %906 = vmatpush1.bf16.msra.mxu0 %v3999_v29  ;;  %3221 = vmatpush3.bf16.msra.mxu1 %v4049_v39 }
 0x252   :  { %907 = vmatprep.subr.bf16.mxu0 %v4006_v30  ;;  %3222 = vmatprep.subr.bf16.mxu1 %v5326_v5 }
 0x255   :  { %908 = vmatpush1.bf16.msra.mxu0 %v4015_v32  ;;  %3223 = vmatpush3.bf16.msra.mxu1 %v4068_v42 }
 0x256   :  { %909 = vmatprep.subr.bf16.mxu0 %v4021_v33  ;;  %3224 = vmatprep.subr.bf16.mxu1 %v5326_v5 }
 0x259   :  { %910 = vmatpush1.bf16.msra.mxu0 %v4033_v36  ;;  %3225 = vmatpush3.bf16.msra.mxu1 %v4091_v46 }
 0x25a   :  { %911 = vmatprep.subr.bf16.mxu0 %v4043_v38  ;;  %3226 = vmatprep.subr.bf16.mxu1 %v5326_v5 }
 0x25d   :  { %912 = vmatpush1.bf16.msra.mxu0 %v4056_v40  ;;  %3227 = vmatpush3.bf16.msra.mxu1 %v4112_v49 }
 0x25e   :  { %913 = vmatprep.subr.bf16.mxu0 %v4062_v41  ;;  %3228 = vmatprep.subr.bf16.mxu1 %v5326_v5 }
 0x261   :  { %914 = vmatpush1.bf16.msra.mxu0 %v4078_v44  ;;  %3229 = vmatpush3.bf16.msra.mxu1 %v4127_v51 }
 0x262   :  { %915 = vmatprep.subr.bf16.mxu0 %v4085_v45  ;;  %3230 = vmatprep.subr.bf16.mxu1 %v5326_v5 }
 0x265   :  { %916 = vmatpush1.bf16.msra.mxu0 %v4100_v47  ;;  %3231 = vmatpush3.bf16.msra.mxu1 %v4136_v52 }
 0x266   :  { %917 = vmatprep.subr.bf16.mxu0 %v4106_v48  ;;  %3232 = vmatprep.subr.bf16.mxu1 %v5326_v5 }
 0x269   :  { %918 = vmatpush1.bf16.msra.mxu0 %v4119_v50  ;;  %3233 = vmatpush3.bf16.msra.mxu1 %v4147_v53 }
 0x26a   :  { %1014 = vmatprep.subr.bf16.mxu0 %v3976_v24  ;;  %3238 = vmatprep.subr.bf16.mxu1 %v5326_v5 }
 0x31f   :  { %v829_v20 = vpop.f32.mrb[24].mxu0  ;;  %v870_v28 = vpop.f32.mrb[16].mxu1 }
 0x320   :  { %v876_v6 = vadd.f32 %v829_v20, %v4205_v7  ;;  %v831_v58 = vpop.f32.mrb[25].mxu0  ;;  %v3216_v55 = vpop.f32.mrb[17].mxu1  ;;  %v890_v8 = vadd.f32 %v4253_v59, %v870_v28 }
 0x321   :  { %v883_v1 = vadd.f32 %v831_v58, %v4207_v9  ;;  %v833_v34 = vpop.f32.mrb[26].mxu0  ;;  %v873_v60 = vpop.f32.mrb[18].mxu1 }
 0x322   :  { %v2889_v61 = vmul.f32 -1.442695, %v876_v6  ;;  %v834_v62 = vpop.f32.mrb[27].mxu0  ;;  %v3217_v3 = vpop.f32.mrb[19].mxu1 }
 0x323   :  { %v2890_v54 = vmul.f32 -1.442695, %v883_v1 }
 0x324   :  { %3657 = vpow2.f32 %v2889_v61 }
 0x325   :  { %3659 = vpow2.f32 %v2890_v54 }
 0x32e   :  { %v3658_v0 = vpop.eup %3657 }
 0x32f   :  { %v880_v21 = vadd.f32 1.0, %v3658_v0  ;;  %v3660_v4 = vpop.eup %3659 }
 0x330   :  { %v887_v57 = vadd.f32 1.0, %v3660_v4 }
 0x331   :  { %3661 = vrcp.f32 %v880_v21 }
 0x332   :  { %3663 = vrcp.f32 %v887_v57 }
 0x33b   :  { %v3662_v7 = vpop.eup %3661 }
 0x33c   :  { %v891_v10 = vmul.f32 %v3662_v7, %v890_v8  ;;  %v3664_v13 = vpop.eup %3663 }
 0x33d   :  { %v894_v19 = vsub.f32 1.0, %v3664_v13  ;;  %v896_v20 = vmul.f32 %v3664_v13, %v4301_v23 }
 0x33e   :  { %v892_v9 = vadd.f32 %v891_v10, %v4212_v14 }
 0x340   :  { %3665 = vtanh.f32 %v892_v9 }
 0x34a   :  { %v3666_v31 = vpop.eup %3665 }
 0x34b   :  { %v895_v56 = vmul.f32 %v3666_v31, %v894_v19 }
 0x34d   :  { %v4345_v6 = vadd.f32 %v896_v20, %v895_v56 }
 0x34f   :  { %v898_v58 = vpack.c.bf16 %v4345_v6, %v4345_v6 }
 0x351   :  { %899 = vst [vmem:[#allocation3 + $0x8] sm:$0xf] %v898_v58  ;;  %936 = vmatmul.mubr.bf16.vlgmr.msra.gmra.mrb[28].mxu0 %v898_v58  ;;  %3235 = vmatmul.mubr.bf16.vlgmr.msra.gmra.mrb[20].mxu1 %v898_v58 }
 0x352   :  { %1015 = vmatpush1.bf16.msra.mxu0 %v3984_v26  ;;  %3239 = vmatpush3.bf16.msra.mxu1 %v4027_v35 }
 0x353   :  { %1016 = vmatprep.subr.bf16.mxu0 %v3990_v27  ;;  %3240 = vmatprep.subr.bf16.mxu1 %v5326_v5 }
 0x354   :  { %1046 = vmatprep.mubr.bf16.mxu0 %v5327_v15  ;;  %3254 = vmatprep.mubr.msk.bf16.mxu1 %vm3847_vm0, %v5326_v5 }
 0x356   :  { %1017 = vmatpush1.bf16.msra.mxu0 %v3999_v29  ;;  %3241 = vmatpush3.bf16.msra.mxu1 %v4049_v39 }
 0x357   :  { %1018 = vmatprep.subr.bf16.mxu0 %v4006_v30  ;;  %3242 = vmatprep.subr.bf16.mxu1 %v5326_v5 }
 0x35a   :  { %1019 = vmatpush1.bf16.msra.mxu0 %v4015_v32  ;;  %3243 = vmatpush3.bf16.msra.mxu1 %v4068_v42 }
 0x35b   :  { %1020 = vmatprep.subr.bf16.mxu0 %v4021_v33  ;;  %3244 = vmatprep.subr.bf16.mxu1 %v5326_v5 }
 0x35e   :  { %1021 = vmatpush1.bf16.msra.mxu0 %v4033_v36  ;;  %3245 = vmatpush3.bf16.msra.mxu1 %v4091_v46 }
 0x35f   :  { %1022 = vmatprep.subr.bf16.mxu0 %v4043_v38  ;;  %3246 = vmatprep.subr.bf16.mxu1 %v5326_v5 }
 0x362   :  { %1023 = vmatpush1.bf16.msra.mxu0 %v4056_v40  ;;  %3247 = vmatpush3.bf16.msra.mxu1 %v4112_v49 }
 0x363   :  { %1024 = vmatprep.subr.bf16.mxu0 %v4062_v41  ;;  %3248 = vmatprep.subr.bf16.mxu1 %v5326_v5 }
 0x366   :  { %1025 = vmatpush1.bf16.msra.mxu0 %v4078_v44  ;;  %3249 = vmatpush3.bf16.msra.mxu1 %v4127_v51 }
 0x367   :  { %1026 = vmatprep.subr.bf16.mxu0 %v4085_v45  ;;  %3250 = vmatprep.subr.bf16.mxu1 %v5326_v5 }
 0x36a   :  { %1027 = vmatpush1.bf16.msra.mxu0 %v4100_v47  ;;  %3251 = vmatpush3.bf16.msra.mxu1 %v4136_v52 }
 0x36b   :  { %1028 = vmatprep.subr.bf16.mxu0 %v4106_v48  ;;  %3252 = vmatprep.subr.bf16.mxu1 %v5326_v5 }
 0x36e   :  { %1029 = vmatpush1.bf16.msra.mxu0 %v4119_v50  ;;  %3253 = vmatpush3.bf16.msra.mxu1 %v4147_v53 }
 0x36f   :  { %1122 = vmatprep.subr.bf16.mxu0 %v3976_v24  ;;  %3258 = vmatprep.subr.bf16.mxu1 %v5326_v5 }
 0x424   :  { %v937_v14 = vpop.f32.mrb[28].mxu0  ;;  %v978_v23 = vpop.f32.mrb[20].mxu1 }
 0x425   :  { %v984_v28 = vadd.f32 %v937_v14, %v4209_v12  ;;  %v939_v55 = vpop.f32.mrb[29].mxu0  ;;  %v3236_v1 = vpop.f32.mrb[21].mxu1  ;;  %v998_v7 = vadd.f32 %v4253_v59, %v978_v23 }
 0x426   :  { %v991_v34 = vadd.f32 %v939_v55, %v4214_v16  ;;  %v941_v60 = vpop.f32.mrb[30].mxu0  ;;  %v981_v61 = vpop.f32.mrb[22].mxu1 }
 0x427   :  { %v2891_v62 = vmul.f32 -1.442695, %v984_v28  ;;  %v942_v3 = vpop.f32.mrb[31].mxu0  ;;  %v3237_v54 = vpop.f32.mrb[23].mxu1 }
 0x428   :  { %v2892_v0 = vmul.f32 -1.442695, %v991_v34 }
 0x429   :  { %3667 = vpow2.f32 %v2891_v62 }
 0x42a   :  { %3669 = vpow2.f32 %v2892_v0 }
 0x433   :  { %v3668_v21 = vpop.eup %3667 }
 0x434   :  { %v988_v4 = vadd.f32 1.0, %v3668_v21  ;;  %v3670_v57 = vpop.eup %3669 }
 0x435   :  { %v995_v8 = vadd.f32 1.0, %v3670_v57 }
 0x436   :  { %3671 = vrcp.f32 %v988_v4 }
 0x437   :  { %3673 = vrcp.f32 %v995_v8 }
 0x440   :  { %v3672_v12 = vpop.eup %3671 }
 0x441   :  { %v999_v10 = vmul.f32 %v3672_v12, %v998_v7  ;;  %v3674_v9 = vpop.eup %3673 }
 0x442   :  { %v1002_v13 = vsub.f32 1.0, %v3674_v9  ;;  %v1004_v56 = vmul.f32 %v3674_v9, %v4345_v6 }
 0x443   :  { %v1000_v16 = vadd.f32 %v999_v10, %v4217_v18 }
 0x445   :  { %3675 = vtanh.f32 %v1000_v16 }
 0x44f   :  { %v3676_v19 = vpop.eup %3675 }
 0x450   :  { %v1003_v31 = vmul.f32 %v3676_v19, %v1002_v13 }
 0x452   :  { %v4389_v20 = vadd.f32 %v1004_v56, %v1003_v31 }
 0x454   :  { %v1006_v58 = vpack.c.bf16 %v4389_v20, %v4389_v20 }
 0x456   :  { %v1008_v14 = vrot.slane %v1006_v58, 4  ;;  %1047 = vmatmul.mubr.bf16.vlgmr.msra.gmra.mrb[32].mxu0 %v1006_v58  ;;  %3255 = vmatmul.mubr.bf16.vlgmr.msra.gmra.mrb[24].mxu1 %v1006_v58 }
 0x457   :  { %1123 = vmatpush1.bf16.msra.mxu0 %v3984_v26  ;;  %3259 = vmatpush3.bf16.msra.mxu1 %v4027_v35 }
 0x458   :  { %1010 = vst [vmem:[#allocation3 + $0x8] sm:$0xf0] %v1008_v14  ;;  %1124 = vmatprep.subr.bf16.mxu0 %v3990_v27  ;;  %3260 = vmatprep.subr.bf16.mxu1 %v5326_v5  ;;  %v3798_v14 = vld [vmem:[%s5303_s2] ss:$12 sps:$4 sm:$0xff]  }
 0x459   :  { %1154 = vmatprep.mubr.bf16.mxu0 %v5327_v15  ;;  %3274 = vmatprep.mubr.msk.bf16.mxu1 %vm3847_vm0, %v5326_v5 }
 0x45b   :  { %1125 = vmatpush1.bf16.msra.mxu0 %v3999_v29  ;;  %3261 = vmatpush3.bf16.msra.mxu1 %v4049_v39 }
 0x45c   :  { %1126 = vmatprep.subr.bf16.mxu0 %v4006_v30  ;;  %3262 = vmatprep.subr.bf16.mxu1 %v5326_v5 }
 0x45f   :  { %1127 = vmatpush1.bf16.msra.mxu0 %v4015_v32  ;;  %3263 = vmatpush3.bf16.msra.mxu1 %v4068_v42 }
 0x460   :  { %1128 = vmatprep.subr.bf16.mxu0 %v4021_v33  ;;  %3264 = vmatprep.subr.bf16.mxu1 %v5326_v5 }
 0x463   :  { %1129 = vmatpush1.bf16.msra.mxu0 %v4033_v36  ;;  %3265 = vmatpush3.bf16.msra.mxu1 %v4091_v46 }
 0x464   :  { %1130 = vmatprep.subr.bf16.mxu0 %v4043_v38  ;;  %3266 = vmatprep.subr.bf16.mxu1 %v5326_v5 }
 0x467   :  { %1131 = vmatpush1.bf16.msra.mxu0 %v4056_v40  ;;  %3267 = vmatpush3.bf16.msra.mxu1 %v4112_v49 }
 0x468   :  { %1132 = vmatprep.subr.bf16.mxu0 %v4062_v41  ;;  %3268 = vmatprep.subr.bf16.mxu1 %v5326_v5 }
 0x46b   :  { %1133 = vmatpush1.bf16.msra.mxu0 %v4078_v44  ;;  %3269 = vmatpush3.bf16.msra.mxu1 %v4127_v51 }
 0x46c   :  { %1134 = vmatprep.subr.bf16.mxu0 %v4085_v45  ;;  %3270 = vmatprep.subr.bf16.mxu1 %v5326_v5 }
 0x46f   :  { %1135 = vmatpush1.bf16.msra.mxu0 %v4100_v47  ;;  %3271 = vmatpush3.bf16.msra.mxu1 %v4136_v52 }
 0x470   :  { %1136 = vmatprep.subr.bf16.mxu0 %v4106_v48  ;;  %3272 = vmatprep.subr.bf16.mxu1 %v5326_v5 }
 0x473   :  { %1137 = vmatpush1.bf16.msra.mxu0 %v4119_v50  ;;  %3273 = vmatpush3.bf16.msra.mxu1 %v4147_v53 }
 0x474   :  { %1233 = vmatprep.subr.bf16.mxu0 %v3976_v24  ;;  %3278 = vmatprep.subr.bf16.mxu1 %v5326_v5 }
 0x529   :  { %v1048_v18 = vpop.f32.mrb[32].mxu0  ;;  %v1089_v6 = vpop.f32.mrb[24].mxu1 }
 0x52a   :  { %v1095_v23 = vadd.f32 %v1048_v18, %v4222_v22  ;;  %v1050_v28 = vpop.f32.mrb[33].mxu0  ;;  %v3256_v55 = vpop.f32.mrb[25].mxu1  ;;  %v1109_v57 = vadd.f32 %v4253_v59, %v1089_v6  ;;  %v3800_v18 = vld [vmem:[%s5303_s2 + $0x1c] ss:$12 sps:$4 sm:$0xff]   ;;  %v3801_v6 = vld [vmem:[%s5303_s2 + $0x18] ss:$12 sps:$4 sm:$0xff]  }
 0x52b   :  { %v1102_v1 = vadd.f32 %v1050_v28, %v4224_v25  ;;  %v1052_v34 = vpop.f32.mrb[34].mxu0  ;;  %v1092_v60 = vpop.f32.mrb[26].mxu1  ;;  %v3803_v28 = vld [vmem:[%s5303_s2 + $0x34] ss:$12 sps:$4 sm:$0xff]   ;;  %v3804_v55 = vld [vmem:[%s5303_s2 + $0x30] ss:$12 sps:$4 sm:$0xff]  }
 0x52c   :  { %v2893_v61 = vmul.f32 -1.442695, %v1095_v23  ;;  %v1053_v62 = vpop.f32.mrb[35].mxu0  ;;  %v3257_v3 = vpop.f32.mrb[27].mxu1  ;;  %v3802_v23 = vld [vmem:[%s5303_s2 + $0x20] ss:$12 sps:$4 sm:$0xff]  }
 0x52d   :  { %v2894_v54 = vmul.f32 -1.442695, %v1102_v1  ;;  %v3805_v1 = vld [vmem:[%s5303_s2 + $0x38] ss:$12 sps:$4 sm:$0xff]   ;;  %v3807_v60 = vld [vmem:[%s5303_s2 + $0x48] ss:$12 sps:$4 sm:$0xff]  }
 0x52e   :  { %3677 = vpow2.f32 %v2893_v61  ;;  %v3806_v34 = vld [vmem:[%s5303_s2 + $0x4c] ss:$12 sps:$4 sm:$0xff]   ;;  %v3808_v61 = vld [vmem:[%s5303_s2 + $0x50] ss:$12 sps:$4 sm:$0xff]  }
 0x52f   :  { %3679 = vpow2.f32 %v2894_v54  ;;  %v3809_v62 = vld [vmem:[%s5303_s2 + $0x64] ss:$12 sps:$4 sm:$0xff]   ;;  %v3810_v3 = vld [vmem:[%s5303_s2 + $0x60] ss:$12 sps:$4 sm:$0xff]   ;;  %v3811_v54 = vld [vmem:[%s5303_s2 + $0x68] ss:$12 sps:$4 sm:$0xff]  }
 0x538   :  { %v3678_v0 = vpop.eup %3677 }
 0x539   :  { %v1099_v24 = vadd.f32 1.0, %v3678_v0  ;;  %v3680_v21 = vpop.eup %3679  ;;  %v3812_v0 = vld [vmem:[%s5303_s2 + $0x7c] ss:$12 sps:$4 sm:$0xff]  }
 0x53a   :  { %v1106_v4 = vadd.f32 1.0, %v3680_v21  ;;  %v3814_v21 = vld [vmem:[%s5303_s2 + $0x80] ss:$12 sps:$4 sm:$0xff]  }
 0x53b   :  { %3681 = vrcp.f32 %v1099_v24  ;;  %v3813_v24 = vld [vmem:[%s5303_s2 + $0x78] ss:$12 sps:$4 sm:$0xff]  }
 0x53c   :  { %3683 = vrcp.f32 %v1106_v4  ;;  %v3815_v4 = vld [vmem:[%s5303_s2 + $0x94] ss:$12 sps:$4 sm:$0xff]  }
 0x545   :  { %v3682_v22 = vpop.eup %3681 }
 0x546   :  { %v1110_v8 = vmul.f32 %v3682_v22, %v1109_v57  ;;  %v3684_v7 = vpop.eup %3683  ;;  %v3816_v57 = vld [vmem:[%s5303_s2 + $0x90] ss:$12 sps:$4 sm:$0xff]   ;;  %v3817_v22 = vld [vmem:[%s5303_s2 + $0x98] ss:$12 sps:$4 sm:$0xff]  }
 0x547   :  { %v1113_v12 = vsub.f32 1.0, %v3684_v7  ;;  %v1115_v9 = vmul.f32 %v3684_v7, %v4389_v20  ;;  %v3575_v7 = vld [vmem:[%s5306_s5 + $0x4] ss:$12 sps:$4 sm:$0xff]  }
 0x548   :  { %v1111_v25 = vadd.f32 %v1110_v8, %v4234_v2  ;;  %v3818_v8 = vld [vmem:[%s5303_s2 + $0xac] ss:$12 sps:$4 sm:$0xff]  }
 0x54a   :  { %3685 = vtanh.f32 %v1111_v25  ;;  %v3819_v25 = vld [vmem:[%s5303_s2 + $0xa8] ss:$12 sps:$4 sm:$0xff]  }
 0x554   :  { %v3686_v10 = vpop.eup %3685 }
 0x555   :  { %v1114_v16 = vmul.f32 %v3686_v10, %v1113_v12  ;;  %v3576_v12 = vld [vmem:[%s5306_s5 + $0x8] ss:$12 sps:$4 sm:$0xff]  }
 0x557   :  { %v4433_v13 = vadd.f32 %v1115_v9, %v1114_v16 }
 0x559   :  { %v1117_v19 = vpack.c.bf16 %v4433_v13, %v4433_v13 }
 0x55b   :  { %1118 = vst [vmem:[#allocation3 + $0x10] sm:$0xf] %v1117_v19  ;;  %1155 = vmatmul.mubr.bf16.vlgmr.msra.gmra.mrb[36].mxu0 %v1117_v19  ;;  %3275 = vmatmul.mubr.bf16.vlgmr.msra.gmra.mrb[28].mxu1 %v1117_v19 }
 0x55c   :  { %1234 = vmatpush1.bf16.msra.mxu0 %v3984_v26  ;;  %3279 = vmatpush3.bf16.msra.mxu1 %v4027_v35  ;;  %v3797_v26 = vld [vmem:[%s5303_s2 + $0x4] ss:$12 sps:$4 sm:$0xff]  }
 0x55d   :  { %1235 = vmatprep.subr.bf16.mxu0 %v3990_v27  ;;  %3280 = vmatprep.subr.bf16.mxu1 %v5326_v5 }
 0x55e   :  { %1265 = vmatprep.mubr.bf16.mxu0 %v5327_v15  ;;  %3294 = vmatprep.mubr.msk.bf16.mxu1 %vm3847_vm0, %v5326_v5 }
 0x560   :  { %1236 = vmatpush1.bf16.msra.mxu0 %v3999_v29  ;;  %3281 = vmatpush3.bf16.msra.mxu1 %v4049_v39 }
 0x561   :  { %1237 = vmatprep.subr.bf16.mxu0 %v4006_v30  ;;  %3282 = vmatprep.subr.bf16.mxu1 %v5326_v5 }
 0x564   :  { %1238 = vmatpush1.bf16.msra.mxu0 %v4015_v32  ;;  %3283 = vmatpush3.bf16.msra.mxu1 %v4068_v42 }
 0x565   :  { %1239 = vmatprep.subr.bf16.mxu0 %v4021_v33  ;;  %3284 = vmatprep.subr.bf16.mxu1 %v5326_v5 }
 0x568   :  { %1240 = vmatpush1.bf16.msra.mxu0 %v4033_v36  ;;  %3285 = vmatpush3.bf16.msra.mxu1 %v4091_v46 }
 0x569   :  { %1241 = vmatprep.subr.bf16.mxu0 %v4043_v38  ;;  %3286 = vmatprep.subr.bf16.mxu1 %v5326_v5 }
 0x56c   :  { %1242 = vmatpush1.bf16.msra.mxu0 %v4056_v40  ;;  %3287 = vmatpush3.bf16.msra.mxu1 %v4112_v49 }
 0x56d   :  { %1243 = vmatprep.subr.bf16.mxu0 %v4062_v41  ;;  %3288 = vmatprep.subr.bf16.mxu1 %v5326_v5 }
 0x570   :  { %1244 = vmatpush1.bf16.msra.mxu0 %v4078_v44  ;;  %3289 = vmatpush3.bf16.msra.mxu1 %v4127_v51 }
 0x571   :  { %1245 = vmatprep.subr.bf16.mxu0 %v4085_v45  ;;  %3290 = vmatprep.subr.bf16.mxu1 %v5326_v5 }
 0x574   :  { %1246 = vmatpush1.bf16.msra.mxu0 %v4100_v47  ;;  %3291 = vmatpush3.bf16.msra.mxu1 %v4136_v52 }
 0x575   :  { %1247 = vmatprep.subr.bf16.mxu0 %v4106_v48  ;;  %3292 = vmatprep.subr.bf16.mxu1 %v5326_v5 }
 0x578   :  { %1248 = vmatpush1.bf16.msra.mxu0 %v4119_v50  ;;  %3293 = vmatpush3.bf16.msra.mxu1 %v4147_v53 }
 0x579   :  { %1341 = vmatprep.subr.bf16.mxu0 %v3797_v26  ;;  %3298 = vmatprep.subr.bf16.mxu1 %v5326_v5  ;;  %v5328_v26 = vld [vmem:[#allocation7_spill] sm:$0xff] }
 0x62e   :  { %v1156_v27 = vpop.f32.mrb[36].mxu0  ;;  %v1197_v29 = vpop.f32.mrb[28].mxu1 }
 0x62f   :  { %v1203_v30 = vadd.f32 %v1156_v27, %v4226_v37  ;;  %v1158_v32 = vpop.f32.mrb[37].mxu0  ;;  %v3276_v33 = vpop.f32.mrb[29].mxu1  ;;  %v1217_v48 = vadd.f32 %v4253_v59, %v1197_v29 }
 0x630   :  { %v1210_v35 = vadd.f32 %v1158_v32, %v4231_v63  ;;  %v1160_v36 = vpop.f32.mrb[38].mxu0  ;;  %v1200_v38 = vpop.f32.mrb[30].mxu1 }
 0x631   :  { %v2895_v39 = vmul.f32 -1.442695, %v1203_v30  ;;  %v1161_v40 = vpop.f32.mrb[39].mxu0  ;;  %v3277_v41 = vpop.f32.mrb[31].mxu1 }
 0x632   :  { %v2896_v42 = vmul.f32 -1.442695, %v1210_v35 }
 0x633   :  { %3687 = vpow2.f32 %v2895_v39 }
 0x634   :  { %3689 = vpow2.f32 %v2896_v42 }
 0x63d   :  { %v3688_v44 = vpop.eup %3687 }
 0x63e   :  { %v1207_v45 = vadd.f32 1.0, %v3688_v44  ;;  %v3690_v46 = vpop.eup %3689  ;;  %v5329_v44 = vld [vmem:[#allocation5_spill] sm:$0xff] }
 0x63f   :  { %v1214_v47 = vadd.f32 1.0, %v3690_v46 }
 0x640   :  { %3691 = vrcp.f32 %v1207_v45 }
 0x641   :  { %3693 = vrcp.f32 %v1214_v47 }
 0x64a   :  { %v3692_v49 = vpop.eup %3691 }
 0x64b   :  { %v1218_v50 = vmul.f32 %v3692_v49, %v1217_v48  ;;  %v3694_v52 = vpop.eup %3693 }
 0x64c   :  { %v1221_v37 = vsub.f32 1.0, %v3694_v52  ;;  %v1223_v31 = vmul.f32 %v3694_v52, %v4433_v13  ;;  %v3573_v52 = vld [vmem:[%s5306_s5] ss:$12 sps:$4 sm:$0xff]  }
 0x64d   :  { %v1219_v51 = vadd.f32 %v1218_v50, %v4240_v11  ;;  %v3799_v11 = vld [vmem:[%s5303_s2 + $0x8] ss:$12 sps:$4 sm:$0xff]  }
 0x64f   :  { %3695 = vtanh.f32 %v1219_v51 }
 0x659   :  { %v3696_v63 = vpop.eup %3695 }
 0x65a   :  { %v1222_v2 = vmul.f32 %v3696_v63, %v1221_v37  ;;  %v3579_v37 = vld [vmem:[%s5306_s5 + $0x1c] ss:$12 sps:$4 sm:$0xff]   ;;  %v3580_v63 = vld [vmem:[%s5306_s5 + $0x20] ss:$12 sps:$4 sm:$0xff]  }
 0x65c   :  { %v4479_v56 = vadd.f32 %v1223_v31, %v1222_v2  ;;  %v1516_v2 = vld [vmem:[#allocation3] sm:$0xff] }
 0x65d   :  { %v3577_v31 = vld [vmem:[%s5306_s5 + $0x18] ss:$12 sps:$4 sm:$0xff]  }
 0x65e   :  { %v1225_v20 = vpack.c.bf16 %v4479_v56, %v4479_v56 }
 0x660   :  { %v1227_v58 = vrot.slane %v1225_v20, 4  ;;  %1266 = vmatmul.mubr.bf16.vlgmr.msra.gmra.mrb[40].mxu0 %v1225_v20  ;;  %3295 = vmatmul.mubr.bf16.vlgmr.msra.gmra.mrb[32].mxu1 %v1225_v20  ;;  %v3584_v20 = vld [vmem:[%s5306_s5 + $0x38] ss:$12 sps:$4 sm:$0xff]  }
 0x661   :  { %1342 = vmatpush1.bf16.msra.mxu0 %v3798_v14  ;;  %3299 = vmatpush3.bf16.msra.mxu1 %v3799_v11  ;;  %v3587_v14 = vld [vmem:[%s5306_s5 + $0x4c] ss:$12 sps:$4 sm:$0xff]   ;;  %v3588_v11 = vld [vmem:[%s5306_s5 + $0x50] ss:$12 sps:$4 sm:$0xff]  }
 0x662   :  { %1229 = vst [vmem:[#allocation3 + $0x10] sm:$0xf0] %v1227_v58  ;;  %1343 = vmatprep.subr.bf16.mxu0 %v3800_v18  ;;  %3300 = vmatprep.subr.bf16.mxu1 %v5326_v5  ;;  %v3581_v58 = vld [vmem:[%s5306_s5 + $0x30] ss:$12 sps:$4 sm:$0xff]   ;;  %v3585_v18 = vld [vmem:[%s5306_s5 + $0x48] ss:$12 sps:$4 sm:$0xff]  }
 0x663   :  { %1373 = vmatprep.mubr.bf16.mxu0 %v5327_v15  ;;  %3314 = vmatprep.mubr.msk.bf16.mxu1 %vm3847_vm0, %v5326_v5 }
 0x665   :  { %1344 = vmatpush1.bf16.msra.mxu0 %v3801_v6  ;;  %3301 = vmatpush3.bf16.msra.mxu1 %v3802_v23  ;;  %v3591_v6 = vld [vmem:[%s5306_s5 + $0x64] ss:$12 sps:$4 sm:$0xff]   ;;  %v3592_v23 = vld [vmem:[%s5306_s5 + $0x68] ss:$12 sps:$4 sm:$0xff]  }
 0x666   :  { %1345 = vmatprep.subr.bf16.mxu0 %v3803_v28  ;;  %3302 = vmatprep.subr.bf16.mxu1 %v5326_v5  ;;  %v3589_v28 = vld [vmem:[%s5306_s5 + $0x60] ss:$12 sps:$4 sm:$0xff]  }
 0x669   :  { %1346 = vmatpush1.bf16.msra.mxu0 %v3804_v55  ;;  %3303 = vmatpush3.bf16.msra.mxu1 %v3805_v1  ;;  %v3595_v55 = vld [vmem:[%s5306_s5 + $0x7c] ss:$12 sps:$4 sm:$0xff]   ;;  %v3596_v1 = vld [vmem:[%s5306_s5 + $0x80] ss:$12 sps:$4 sm:$0xff]  }
 0x66a   :  { %1347 = vmatprep.subr.bf16.mxu0 %v3806_v34  ;;  %3304 = vmatprep.subr.bf16.mxu1 %v5326_v5  ;;  %v3593_v34 = vld [vmem:[%s5306_s5 + $0x78] ss:$12 sps:$4 sm:$0xff]  }
 0x66d   :  { %1348 = vmatpush1.bf16.msra.mxu0 %v3807_v60  ;;  %3305 = vmatpush3.bf16.msra.mxu1 %v3808_v61  ;;  %v3599_v60 = vld [vmem:[%s5306_s5 + $0x94] ss:$12 sps:$4 sm:$0xff]   ;;  %v3600_v61 = vld [vmem:[%s5306_s5 + $0x98] ss:$12 sps:$4 sm:$0xff]  }
 0x66e   :  { %1349 = vmatprep.subr.bf16.mxu0 %v3809_v62  ;;  %3306 = vmatprep.subr.bf16.mxu1 %v5326_v5  ;;  %v3597_v62 = vld [vmem:[%s5306_s5 + $0x90] ss:$12 sps:$4 sm:$0xff]  }
 0x671   :  { %1350 = vmatpush1.bf16.msra.mxu0 %v3810_v3  ;;  %3307 = vmatpush3.bf16.msra.mxu1 %v3811_v54  ;;  %v3603_v3 = vld [vmem:[%s5306_s5 + $0xac] ss:$12 sps:$4 sm:$0xff]   ;;  %v3604_v54 = vld [vmem:[%s5306_s5 + $0xb0] ss:$12 sps:$4 sm:$0xff]  }
 0x672   :  { %1351 = vmatprep.subr.bf16.mxu0 %v3812_v0  ;;  %3308 = vmatprep.subr.bf16.mxu1 %v5326_v5  ;;  %v3601_v0 = vld [vmem:[%s5306_s5 + $0xa8] ss:$12 sps:$4 sm:$0xff]  }
 0x675   :  { %1352 = vmatpush1.bf16.msra.mxu0 %v3813_v24  ;;  %3309 = vmatpush3.bf16.msra.mxu1 %v3814_v21  ;;  %v1517_v24 = vld [vmem:[#allocation3 + $0x8] sm:$0xff]  ;;  %v1518_v21 = vld [vmem:[#allocation3 + $0x10] sm:$0xff] }
 0x676   :  { %1353 = vmatprep.subr.bf16.mxu0 %v3815_v4  ;;  %3310 = vmatprep.subr.bf16.mxu1 %v5326_v5  ;;  %v4649_v4 = vld [vmem:[%s5307_s6 + $0x4] ss:$12 sps:$4 sm:$0xff]  }
 0x679   :  { %1354 = vmatpush1.bf16.msra.mxu0 %v3816_v57  ;;  %3311 = vmatpush3.bf16.msra.mxu1 %v3817_v22  ;;  %v4654_v57 = vld [vmem:[%s5307_s6] ss:$12 sps:$4 sm:$0xff]   ;;  %v4661_v22 = vld [vmem:[%s5307_s6 + $0x1c] ss:$12 sps:$4 sm:$0xff]  }
 0x67a   :  { %1355 = vmatprep.subr.bf16.mxu0 %v3818_v8  ;;  %3312 = vmatprep.subr.bf16.mxu1 %v5326_v5  ;;  %v4666_v8 = vld [vmem:[%s5307_s6 + $0x18] ss:$12 sps:$4 sm:$0xff]  }
 0x67d   :  { %1356 = vmatpush1.bf16.msra.mxu0 %v3819_v25  ;;  %3313 = vmatpush3.bf16.msra.mxu1 %v4147_v53  ;;  %v4673_v25 = vld [vmem:[%s5307_s6 + $0x34] ss:$12 sps:$4 sm:$0xff]  }
 0x67e   :  { %1664 = vmatprep.subr.bf16.mxu0 %v3575_v7  ;;  %3318 = vmatprep.subr.bf16.mxu1 %v3576_v12  ;;  %v4678_v7 = vld [vmem:[%s5307_s6 + $0x30] ss:$12 sps:$4 sm:$0xff]  }
 0x733   :  { %v1267_v10 = vpop.f32.mrb[40].mxu0  ;;  %v1308_v16 = vpop.f32.mrb[32].mxu1 }
 0x734   :  { %v1314_v9 = vadd.f32 %v1267_v10, %v4242_v17  ;;  %v1269_v13 = vpop.f32.mrb[41].mxu0  ;;  %v3296_v19 = vpop.f32.mrb[33].mxu1  ;;  %v1328_v41 = vadd.f32 %v4253_v59, %v1308_v16  ;;  %v4690_v10 = vld [vmem:[%s5307_s6 + $0x48] ss:$12 sps:$4 sm:$0xff]   ;;  %v4697_v16 = vld [vmem:[%s5307_s6 + $0x64] ss:$12 sps:$4 sm:$0xff]  }
 0x735   :  { %v1321_v27 = vadd.f32 %v1269_v13, %v5328_v26  ;;  %v1271_v29 = vpop.f32.mrb[42].mxu0  ;;  %v1311_v53 = vpop.f32.mrb[34].mxu1  ;;  %v4707_v13 = vld [vmem:[%s5307_s6 + $0x7c] ss:$12 sps:$4 sm:$0xff]   ;;  %v4714_v19 = vld [vmem:[%s5307_s6 + $0x78] ss:$12 sps:$4 sm:$0xff]  }
 0x736   :  { %v2897_v30 = vmul.f32 -1.442695, %v1314_v9  ;;  %v1272_v32 = vpop.f32.mrb[43].mxu0  ;;  %v3297_v33 = vpop.f32.mrb[35].mxu1  ;;  %v4702_v9 = vld [vmem:[%s5307_s6 + $0x60] ss:$12 sps:$4 sm:$0xff]  }
 0x737   :  { %v2898_v35 = vmul.f32 -1.442695, %v1321_v27  ;;  %v4721_v26 = vld [vmem:[%s5307_s6 + $0x94] ss:$12 sps:$4 sm:$0xff]   ;;  %v4731_v29 = vld [vmem:[%s5307_s6 + $0x90] ss:$12 sps:$4 sm:$0xff]  }
 0x738   :  { %3697 = vpow2.f32 %v2897_v30  ;;  %v4726_v27 = vld [vmem:[%s5307_s6 + $0x8] ss:$12 sps:$4 sm:$0xff]   ;;  %v4736_v53 = vld [vmem:[%s5307_s6 + $0xac] ss:$12 sps:$4 sm:$0xff]  }
 0x739   :  { %3699 = vpow2.f32 %v2898_v35  ;;  %v4743_v30 = vld [vmem:[%s5307_s6 + $0x20] ss:$12 sps:$4 sm:$0xff]   ;;  %v4750_v32 = vld [vmem:[%s5307_s6 + $0xa8] ss:$12 sps:$4 sm:$0xff]   ;;  %v4759_v33 = vld [vmem:[%s5307_s6 + $0x38] ss:$12 sps:$4 sm:$0xff]  }
 0x73a   :  { %v4766_v35 = vld [vmem:[%s5307_s6 + $0x50] ss:$12 sps:$4 sm:$0xff]  }
 0x742   :  { %v3698_v36 = vpop.eup %3697 }
 0x743   :  { %v1318_v38 = vadd.f32 1.0, %v3698_v36  ;;  %v3700_v39 = vpop.eup %3699  ;;  %v4773_v36 = vld [vmem:[%s5307_s6 + $0x68] ss:$12 sps:$4 sm:$0xff]  }
 0x744   :  { %v1325_v40 = vadd.f32 1.0, %v3700_v39  ;;  %v4787_v39 = vld [vmem:[%s5307_s6 + $0x98] ss:$12 sps:$4 sm:$0xff]  }
 0x745   :  { %3701 = vrcp.f32 %v1318_v38  ;;  %v4780_v38 = vld [vmem:[%s5307_s6 + $0x80] ss:$12 sps:$4 sm:$0xff]  }
 0x746   :  { %3703 = vrcp.f32 %v1325_v40  ;;  %v4794_v40 = vld [vmem:[%s5307_s6 + $0xb0] ss:$12 sps:$4 sm:$0xff]  }
 0x74f   :  { %v3702_v17 = vpop.eup %3701 }
 0x750   :  { %v1329_v42 = vmul.f32 %v3702_v17, %v1328_v41  ;;  %v3704_v46 = vpop.eup %3703 }
 0x751   :  { %v1332_v47 = vsub.f32 1.0, %v3704_v46  ;;  %v1334_v50 = vmul.f32 %v3704_v46, %v4479_v56  ;;  %v3583_v56 = vld [vmem:[%s5306_s5 + $0x34] ss:$12 sps:$4 sm:$0xff]  }
 0x752   :  { %v1330_v45 = vadd.f32 %v1329_v42, %v5329_v44  ;;  %v5330_v42 = vld [vmem:[#allocation8_spill] sm:$0xff] }
 0x754   :  { %3705 = vtanh.f32 %v1330_v45 }
 0x75e   :  { %v3706_v48 = vpop.eup %3705 }
 0x75f   :  { %v1333_v49 = vmul.f32 %v3706_v48, %v1332_v47 }
 0x761   :  { %v4571_v51 = vadd.f32 %v1334_v50, %v1333_v49 }
 0x763   :  { %v1336_v59 = vpack.c.bf16 %v4571_v51, %v4571_v51 }
 0x765   :  { %1337 = vst [vmem:[#allocation3 + $0x18] sm:$0xf] %v1336_v59  ;;  %1374 = vmatmul.mubr.bf16.vlgmr.msra.gmra.mrb[44].mxu0 %v1336_v59  ;;  %3315 = vmatmul.mubr.bf16.vlgmr.msra.gmra.mrb[36].mxu1 %v1336_v59 }
 0x766   :  { %1665 = vmatpush1.bf16.msra.mxu0 %v3573_v52  ;;  %3319 = vmatpush3.bf16.msra.mxu1 %v3576_v12  ;;  %v4685_v12 = vld [vmem:[%s5307_s6 + $0x4c] ss:$12 sps:$4 sm:$0xff]  }
 0x767   :  { %3334 = vmatprep.mubr.bf16.mxu1 %v1516_v2  ;;  %1666 = vmatprep.subr.bf16.mxu0 %v3579_v37 }
 0x768   :  { %3320 = vmatprep.subr.bf16.mxu1 %v3580_v63  ;;  %1696 = vmatprep.mubr.bf16.mxu0 %v5327_v15 }
 0x76a   :  { %1667 = vmatpush1.bf16.msra.mxu0 %v3577_v31  ;;  %3321 = vmatpush3.bf16.msra.mxu1 %v3580_v63 }
 0x76b   :  { %1668 = vmatprep.subr.bf16.mxu0 %v3583_v56  ;;  %3322 = vmatprep.subr.bf16.mxu1 %v3584_v20 }
 0x76e   :  { %1669 = vmatpush1.bf16.msra.mxu0 %v3581_v58  ;;  %3323 = vmatpush3.bf16.msra.mxu1 %v3584_v20  ;;  %v3820_v20 = vld [vmem:[%s5305_s4] ss:$0 sm:$0xff] }
 0x76f   :  { %1670 = vmatprep.subr.bf16.mxu0 %v3587_v14  ;;  %3324 = vmatprep.subr.bf16.mxu1 %v3588_v11 }
 0x772   :  { %1671 = vmatpush1.bf16.msra.mxu0 %v3585_v18  ;;  %3325 = vmatpush3.bf16.msra.mxu1 %v3588_v11  ;;  %v5331_v11 = vld [vmem:[#allocation6_spill] sm:$0xff] }
 0x773   :  { %1672 = vmatprep.subr.bf16.mxu0 %v3591_v6  ;;  %3326 = vmatprep.subr.bf16.mxu1 %v3592_v23 }
 0x776   :  { %1673 = vmatpush1.bf16.msra.mxu0 %v3589_v28  ;;  %3327 = vmatpush3.bf16.msra.mxu1 %v3592_v23 }
 0x777   :  { %1674 = vmatprep.subr.bf16.mxu0 %v3595_v55  ;;  %3328 = vmatprep.subr.bf16.mxu1 %v3596_v1 }
 0x77a   :  { %1675 = vmatpush1.bf16.msra.mxu0 %v3593_v34  ;;  %3329 = vmatpush3.bf16.msra.mxu1 %v3596_v1 }
 0x77b   :  { %1676 = vmatprep.subr.bf16.mxu0 %v3599_v60  ;;  %3330 = vmatprep.subr.bf16.mxu1 %v3600_v61 }
 0x77e   :  { %1677 = vmatpush1.bf16.msra.mxu0 %v3597_v62  ;;  %3331 = vmatpush3.bf16.msra.mxu1 %v3600_v61 }
 0x77f   :  { %1678 = vmatprep.subr.bf16.mxu0 %v3603_v3  ;;  %3332 = vmatprep.subr.bf16.mxu1 %v3604_v54 }
 0x782   :  { %1679 = vmatpush1.bf16.msra.mxu0 %v3601_v0  ;;  %3333 = vmatpush3.bf16.msra.mxu1 %v3604_v54 }
 0x783   :  { %3342 = vmatprep.subr.bf16.mxu1 %v5326_v5  ;;  %1963 = vmatprep.subr.bf16.mxu0 %v4649_v4 }
 0x785   :  { %1697 = vmatmul.mubr.bf16.vlgmr.msra.gmra.mrb[48].mxu0 %v1516_v2  ;;  %3335 = vmatmul.mubr.bf16.vlgmr.msra.gmra.mrb[40].mxu1 %v1517_v24 }
 0x786   :  { %3338 = vmatprep.mubr.bf16.mxu1 %v1518_v21  ;;  %1706 = vmatprep.mubr.bf16.mxu0 %v5327_v15 }
 0x787   :  { %1964 = vmatpush1.bf16.msra.mxu0 %v4654_v57  ;;  %3343 = vmatpush3.bf16.msra.mxu1 %v4726_v27 }
 0x788   :  { %1965 = vmatprep.subr.bf16.mxu0 %v4661_v22  ;;  %3344 = vmatprep.subr.bf16.mxu1 %v5326_v5 }
 0x78b   :  { %1966 = vmatpush1.bf16.msra.mxu0 %v4666_v8  ;;  %3345 = vmatpush3.bf16.msra.mxu1 %v4743_v30 }
 0x78c   :  { %1967 = vmatprep.subr.bf16.mxu0 %v4673_v25  ;;  %3346 = vmatprep.subr.bf16.mxu1 %v5326_v5 }
 0x78d   :  { %1707 = vmatmul.mubr.bf16.gmra.mrb[52].mxu0 %v1517_v24 }
 0x78e   :  { %1716 = vmatprep.mubr.bf16.mxu0 %v5327_v15 }
 0x78f   :  { %1968 = vmatpush1.bf16.msra.mxu0 %v4678_v7  ;;  %3347 = vmatpush3.bf16.msra.mxu1 %v4759_v33 }
 0x790   :  { %1969 = vmatprep.subr.bf16.mxu0 %v4685_v12  ;;  %3348 = vmatprep.subr.bf16.mxu1 %v5326_v5 }
 0x793   :  { %1970 = vmatpush1.bf16.msra.mxu0 %v4690_v10  ;;  %3349 = vmatpush3.bf16.msra.mxu1 %v4766_v35 }
 0x794   :  { %1971 = vmatprep.subr.bf16.mxu0 %v4697_v16  ;;  %3350 = vmatprep.subr.bf16.mxu1 %v5326_v5 }
 0x795   :  { %1717 = vmatmul.mubr.bf16.gmra.mrb[56].mxu0 %v1518_v21 }
 0x796   :  { %1726 = vmatprep.mubr.bf16.mxu0 %v5327_v15 }
 0x797   :  { %1972 = vmatpush1.bf16.msra.mxu0 %v4702_v9  ;;  %3351 = vmatpush3.bf16.msra.mxu1 %v4773_v36 }
 0x798   :  { %1973 = vmatprep.subr.bf16.mxu0 %v4707_v13  ;;  %3352 = vmatprep.subr.bf16.mxu1 %v5326_v5 }
 0x79b   :  { %1974 = vmatpush1.bf16.msra.mxu0 %v4714_v19  ;;  %3353 = vmatpush3.bf16.msra.mxu1 %v4780_v38 }
 0x79c   :  { %1975 = vmatprep.subr.bf16.mxu0 %v4721_v26  ;;  %3354 = vmatprep.subr.bf16.mxu1 %v5326_v5 }
 0x79f   :  { %1976 = vmatpush1.bf16.msra.mxu0 %v4731_v29  ;;  %3355 = vmatpush3.bf16.msra.mxu1 %v4787_v39 }
 0x7a0   :  { %1977 = vmatprep.subr.bf16.mxu0 %v4736_v53  ;;  %3356 = vmatprep.subr.bf16.mxu1 %v5326_v5 }
 0x7a3   :  { %1978 = vmatpush1.bf16.msra.mxu0 %v4750_v32  ;;  %3357 = vmatpush3.bf16.msra.mxu1 %v4794_v40 }
 0x7a4   :  { %2071 = vmatprep.subr.bf16.mxu0 %v4649_v4  ;;  %3362 = vmatprep.subr.bf16.mxu1 %v5326_v5 }
 0x838   :  { %v1375_v41 = vpop.f32.mrb[44].mxu0  ;;  %v1416_v17 = vpop.f32.mrb[36].mxu1 }
 0x839   :  { %v1422_v44 = vadd.f32 %v1375_v41, %v5330_v42  ;;  %v1377_v45 = vpop.f32.mrb[45].mxu0  ;;  %v3316_v46 = vpop.f32.mrb[37].mxu1  ;;  %v1436_v58 = vadd.f32 %v3820_v20, %v1416_v17  ;;  %v5337_v20 = vld [vmem:[#allocation4_spill] sm:$0xff] }
 0x83a   :  { %v1429_v47 = vadd.f32 %v1377_v45, %v4248_v43  ;;  %v1379_v48 = vpop.f32.mrb[46].mxu0  ;;  %v1419_v49 = vpop.f32.mrb[38].mxu1 }
 0x83b   :  { %v2899_v50 = vmul.f32 -1.442695, %v1422_v44  ;;  %v1380_v52 = vpop.f32.mrb[47].mxu0  ;;  %v3317_v59 = vpop.f32.mrb[39].mxu1 }
 0x83c   :  { %v2900_v37 = vmul.f32 -1.442695, %v1429_v47 }
 0x83d   :  { %3707 = vpow2.f32 %v2899_v50 }
 0x83e   :  { %3709 = vpow2.f32 %v2900_v37 }
 0x847   :  { %v3708_v63 = vpop.eup %3707 }
 0x848   :  { %v1426_v2 = vadd.f32 1.0, %v3708_v63  ;;  %v3710_v31 = vpop.eup %3709 }
 0x849   :  { %v1433_v56 = vadd.f32 1.0, %v3710_v31 }
 0x84a   :  { %3711 = vrcp.f32 %v1426_v2 }
 0x84b   :  { %3713 = vrcp.f32 %v1433_v56 }
 0x854   :  { %v3712_v14 = vpop.eup %3711 }
 0x855   :  { %v1437_v43 = vmul.f32 %v3712_v14, %v1436_v58  ;;  %v3714_v62 = vpop.eup %3713  ;;  %v5338_v58 = vsub.s32 0, %v5337_v20 }
 0x856   :  { %v1440_v0 = vsub.f32 1.0, %v3714_v62  ;;  %v1442_v42 = vmul.f32 %v3714_v62, %v4571_v51  ;;  %v1514_v51 = vld [vmem:[%s5309_s7] sm:$0x7] }
 0x857   :  { %v1438_v18 = vadd.f32 %v1437_v43, %v5331_v11  ;;  %v4898_v14 = vrot.slane %v1514_v51, %v5338_v58 }
 0x858   :  { %v4805_v6 = vpop.f32.mrb[48].mxu0  ;;  %v4807_v23 = vpop.f32.mrb[40].mxu1 }
 0x859   :  { %3715 = vtanh.f32 %v1438_v18  ;;  %v4809_v28 = vpop.f32.mrb[49].mxu0  ;;  %v4811_v55 = vpop.f32.mrb[41].mxu1  ;;  %v5340_v18 = vsub.s32 1, %v5337_v20 }
 0x85a   :  { %v4813_v1 = vpop.f32.mrb[50].mxu0  ;;  %v4815_v34 = vpop.f32.mrb[42].mxu1 }
 0x85b   :  { %v4817_v60 = vpop.f32.mrb[51].mxu0  ;;  %v4819_v61 = vpop.f32.mrb[43].mxu1  ;;  %v4906_v62 = vrot.slane %v1514_v51, %v5340_v18 }
 0x860   :  { %v4821_v3 = vpop.f32.mrb[52].mxu0 }
 0x861   :  { %v4823_v54 = vpop.f32.mrb[53].mxu0 }
 0x862   :  { %v4825_v24 = vpop.f32.mrb[54].mxu0 }
 0x863   :  { %v3716_v21 = vpop.eup %3715  ;;  %v4827_v41 = vpop.f32.mrb[55].mxu0 }
 0x864   :  { %v1441_v17 = vmul.f32 %v3716_v21, %v1440_v0  ;;  %v1699_v0 = vadd.f32 %v4805_v6, %v4898_v14  ;;  %v1701_v21 = vadd.f32 %v4809_v28, %v4906_v62  ;;  %v4915_v28 = vld [vmem:[%s5310_s8] ss:$0 sm:$0xff] }
 0x866   :  { %v1443_v44 = vadd.f32 %v1442_v42, %v1441_v17 }
 0x868   :  { %v1444_v45 = vpack.c.bf16 %v1443_v44, %v1443_v44  ;;  %1449 = vst [vmem:[%s5308_s10] sm:$0xff] %v1443_v44  ;;  %v4833_v46 = vpop.f32.mrb[56].mxu0 }
 0x869   :  { %v4835_v47 = vpop.f32.mrb[57].mxu0 }
 0x86a   :  { %v1446_v48 = vrot.slane %v1444_v45, 4  ;;  %v4837_v49 = vpop.f32.mrb[58].mxu0 }
 0x86b   :  { %v4839_v50 = vpop.f32.mrb[59].mxu0 }
 0x86c   :  { %1448 = vst [vmem:[#allocation3 + $0x18] sm:$0xf0] %v1446_v48 }
 0x873   :  { %v1519_v52 = vld [vmem:[#allocation3 + $0x18] sm:$0xff] }
 0x874   :  { %1727 = vmatmul.mubr.bf16.gmra.mrb[60].mxu0 %v1519_v52  ;;  %3339 = vmatmul.mubr.bf16.gmra.mrb[44].mxu1 %v1519_v52 }
 0x875   :  { %1995 = vmatprep.mubr.bf16.mxu0 %v5327_v15  ;;  %3358 = vmatprep.mubr.msk.bf16.mxu1 %vm3847_vm0, %v5326_v5 }
 0x87c   :  { %1996 = vmatmul.mubr.bf16.vlgmr.msra.gmra.mrb[64].mxu0 %v5327_v15  ;;  %3359 = vmatmul.mubr.bf16.vlgmr.msra.gmra.mrb[48].mxu1 %v5327_v15 }
 0x87d   :  { %2072 = vmatpush1.bf16.msra.mxu0 %v4654_v57  ;;  %3363 = vmatpush3.bf16.msra.mxu1 %v4726_v27 }
 0x87e   :  { %2073 = vmatprep.subr.bf16.mxu0 %v4661_v22  ;;  %3364 = vmatprep.subr.bf16.mxu1 %v5326_v5 }
 0x87f   :  { %2103 = vmatprep.mubr.bf16.mxu0 %v5327_v15  ;;  %3378 = vmatprep.mubr.msk.bf16.mxu1 %vm3847_vm0, %v5326_v5 }
 0x881   :  { %2074 = vmatpush1.bf16.msra.mxu0 %v4666_v8  ;;  %3365 = vmatpush3.bf16.msra.mxu1 %v4743_v30 }
 0x882   :  { %2075 = vmatprep.subr.bf16.mxu0 %v4673_v25  ;;  %3366 = vmatprep.subr.bf16.mxu1 %v5326_v5 }
 0x885   :  { %2076 = vmatpush1.bf16.msra.mxu0 %v4678_v7  ;;  %3367 = vmatpush3.bf16.msra.mxu1 %v4759_v33 }
 0x886   :  { %2077 = vmatprep.subr.bf16.mxu0 %v4685_v12  ;;  %3368 = vmatprep.subr.bf16.mxu1 %v5326_v5 }
 0x889   :  { %2078 = vmatpush1.bf16.msra.mxu0 %v4690_v10  ;;  %3369 = vmatpush3.bf16.msra.mxu1 %v4766_v35 }
 0x88a   :  { %2079 = vmatprep.subr.bf16.mxu0 %v4697_v16  ;;  %3370 = vmatprep.subr.bf16.mxu1 %v5326_v5 }
 0x88d   :  { %2080 = vmatpush1.bf16.msra.mxu0 %v4702_v9  ;;  %3371 = vmatpush3.bf16.msra.mxu1 %v4773_v36 }
 0x88e   :  { %2081 = vmatprep.subr.bf16.mxu0 %v4707_v13  ;;  %3372 = vmatprep.subr.bf16.mxu1 %v5326_v5 }
 0x891   :  { %2082 = vmatpush1.bf16.msra.mxu0 %v4714_v19  ;;  %3373 = vmatpush3.bf16.msra.mxu1 %v4780_v38 }
 0x892   :  { %2083 = vmatprep.subr.bf16.mxu0 %v4721_v26  ;;  %3374 = vmatprep.subr.bf16.mxu1 %v5326_v5 }
 0x895   :  { %2084 = vmatpush1.bf16.msra.mxu0 %v4731_v29  ;;  %3375 = vmatpush3.bf16.msra.mxu1 %v4787_v39 }
 0x896   :  { %2085 = vmatprep.subr.bf16.mxu0 %v4736_v53  ;;  %3376 = vmatprep.subr.bf16.mxu1 %v5326_v5 }
 0x899   :  { %2086 = vmatpush1.bf16.msra.mxu0 %v4750_v32  ;;  %3377 = vmatpush3.bf16.msra.mxu1 %v4794_v40 }
 0x89a   :  { %2179 = vmatprep.subr.bf16.mxu0 %v4649_v4  ;;  %3382 = vmatprep.subr.bf16.mxu1 %v5326_v5 }
 0x947   :  { %v4884_v59 = vpop.f32.mrb[60].mxu0  ;;  %v4886_v37 = vpop.f32.mrb[44].mxu1 }
 0x948   :  { %5332 = vst [vmem:[#allocation7_spill] sm:$0xff] %v4884_v59  ;;  %5333 = vst [vmem:[#allocation5_spill] sm:$0xff] %v4886_v37  ;;  %v4888_v63 = vpop.f32.mrb[61].mxu0  ;;  %v4890_v2 = vpop.f32.mrb[45].mxu1 }
 0x949   :  { %5334 = vst [vmem:[#allocation8_spill] sm:$0xff] %v4888_v63  ;;  %v4892_v31 = vpop.f32.mrb[62].mxu0  ;;  %v4894_v56 = vpop.f32.mrb[46].mxu1 }
 0x94a   :  { %5335 = vst [vmem:[#allocation6_spill] sm:$0xff] %v4892_v31  ;;  %5336 = vst [vmem:[#allocation9_spill] sm:$0xff] %v4894_v56  ;;  %v4900_v43 = vpop.f32.mrb[63].mxu0  ;;  %v4902_v11 = vpop.f32.mrb[47].mxu1 }
 0x94b   :  { %5339 = vst [vmem:[#allocation4_spill] sm:$0xff] %v4900_v43 }
 0x94f   :  { %v1997_v17 = vpop.f32.mrb[64].mxu0  ;;  %v2038_v42 = vpop.f32.mrb[48].mxu1 }
 0x950   :  { %v2044_v44 = vadd.f32 %v1997_v17, %v1699_v0  ;;  %v1999_v45 = vpop.f32.mrb[65].mxu0  ;;  %v3360_v48 = vpop.f32.mrb[49].mxu1  ;;  %v5341_v0 = vsub.s32 2, %v5337_v20  ;;  %v1705_v20 = vadd.f32 %v4817_v60, %v4906_v62 }
 0x951   :  { %v2051_v52 = vadd.f32 %v1999_v45, %v1701_v21  ;;  %v2001_v58 = vpop.f32.mrb[66].mxu0  ;;  %v2041_v56 = vpop.f32.mrb[50].mxu1 }
 0x952   :  { %v2950_v43 = vmul.f32 -1.442695, %v2044_v44  ;;  %v2002_v31 = vpop.f32.mrb[67].mxu0  ;;  %v3361_v37 = vpop.f32.mrb[51].mxu1  ;;  %v4919_v21 = vrot.slane %v1514_v51, %v5341_v0 }
 0x953   :  { %v2951_v18 = vmul.f32 -1.442695, %v2051_v52  ;;  %v2058_v31 = vadd.f32 %v4915_v28, %v2038_v42 }
 0x954   :  { %3717 = vpow2.f32 %v2950_v43  ;;  %v1772_v43 = vadd.f32 %v4811_v55, %v4919_v21  ;;  %v1703_v55 = vadd.f32 %v4813_v1, %v4898_v14 }
 0x955   :  { %3719 = vpow2.f32 %v2951_v18 }
 0x95e   :  { %v3718_v63 = vpop.eup %3717 }
 0x95f   :  { %v2048_v59 = vadd.f32 1.0, %v3718_v63  ;;  %v3720_v6 = vpop.eup %3719 }
 0x960   :  { %v2055_v56 = vadd.f32 1.0, %v3720_v6 }
 0x961   :  { %3721 = vrcp.f32 %v2048_v59 }
 0x962   :  { %3723 = vrcp.f32 %v2055_v56 }
 0x96b   :  { %v3722_v37 = vpop.eup %3721 }
 0x96c   :  { %v2059_v63 = vmul.f32 %v3722_v37, %v2058_v31  ;;  %v3724_v17 = vpop.eup %3723 }
 0x96d   :  { %v2062_v44 = vsub.f32 1.0, %v3724_v17  ;;  %v2064_v52 = vmul.f32 0.0, %v3724_v17 }
 0x96e   :  { %v2060_v59 = vadd.f32 %v2059_v63, %v1772_v43 }
 0x970   :  { %3725 = vtanh.f32 %v2060_v59 }
 0x97a   :  { %v3726_v45 = vpop.eup %3725 }
 0x97b   :  { %v2063_v48 = vmul.f32 %v3726_v45, %v2062_v44 }
 0x97d   :  { %v4924_v58 = vadd.f32 %v2064_v52, %v2063_v48 }
 0x97f   :  { %2066 = vst [vmem:[%s5311_s9] sm:$0xff] %v4924_v58  ;;  %v2070_v51 = vpack.c.bf16 %v4924_v58, %v4924_v58 }
 0x981   :  { %2104 = vmatmul.mubr.bf16.vlgmr.msra.gmra.mrb[68].mxu0 %v2070_v51  ;;  %3379 = vmatmul.mubr.bf16.vlgmr.msra.gmra.mrb[52].mxu1 %v2070_v51 }
 0x982   :  { %2180 = vmatpush1.bf16.msra.mxu0 %v4654_v57  ;;  %3383 = vmatpush3.bf16.msra.mxu1 %v4726_v27 }
 0x983   :  { %2181 = vmatprep.subr.bf16.mxu0 %v4661_v22  ;;  %3384 = vmatprep.subr.bf16.mxu1 %v5326_v5 }
 0x984   :  { %2211 = vmatprep.mubr.bf16.mxu0 %v5327_v15  ;;  %3398 = vmatprep.mubr.msk.bf16.mxu1 %vm3847_vm0, %v5326_v5 }
 0x986   :  { %2182 = vmatpush1.bf16.msra.mxu0 %v4666_v8  ;;  %3385 = vmatpush3.bf16.msra.mxu1 %v4743_v30 }
 0x987   :  { %2183 = vmatprep.subr.bf16.mxu0 %v4673_v25  ;;  %3386 = vmatprep.subr.bf16.mxu1 %v5326_v5 }
 0x98a   :  { %2184 = vmatpush1.bf16.msra.mxu0 %v4678_v7  ;;  %3387 = vmatpush3.bf16.msra.mxu1 %v4759_v33 }
 0x98b   :  { %2185 = vmatprep.subr.bf16.mxu0 %v4685_v12  ;;  %3388 = vmatprep.subr.bf16.mxu1 %v5326_v5 }
 0x98e   :  { %2186 = vmatpush1.bf16.msra.mxu0 %v4690_v10  ;;  %3389 = vmatpush3.bf16.msra.mxu1 %v4766_v35 }
 0x98f   :  { %2187 = vmatprep.subr.bf16.mxu0 %v4697_v16  ;;  %3390 = vmatprep.subr.bf16.mxu1 %v5326_v5 }
 0x992   :  { %2188 = vmatpush1.bf16.msra.mxu0 %v4702_v9  ;;  %3391 = vmatpush3.bf16.msra.mxu1 %v4773_v36 }
 0x993   :  { %2189 = vmatprep.subr.bf16.mxu0 %v4707_v13  ;;  %3392 = vmatprep.subr.bf16.mxu1 %v5326_v5 }
 0x996   :  { %2190 = vmatpush1.bf16.msra.mxu0 %v4714_v19  ;;  %3393 = vmatpush3.bf16.msra.mxu1 %v4780_v38 }
 0x997   :  { %2191 = vmatprep.subr.bf16.mxu0 %v4721_v26  ;;  %3394 = vmatprep.subr.bf16.mxu1 %v5326_v5 }
 0x99a   :  { %2192 = vmatpush1.bf16.msra.mxu0 %v4731_v29  ;;  %3395 = vmatpush3.bf16.msra.mxu1 %v4787_v39 }
 0x99b   :  { %2193 = vmatprep.subr.bf16.mxu0 %v4736_v53  ;;  %3396 = vmatprep.subr.bf16.mxu1 %v5326_v5 }
 0x99e   :  { %2194 = vmatpush1.bf16.msra.mxu0 %v4750_v32  ;;  %3397 = vmatpush3.bf16.msra.mxu1 %v4794_v40 }
 0x99f   :  { %2287 = vmatprep.subr.bf16.mxu0 %v4649_v4  ;;  %3402 = vmatprep.subr.bf16.mxu1 %v5326_v5 }
 0xa54   :  { %v2105_v42 = vpop.f32.mrb[68].mxu0  ;;  %v2146_v18 = vpop.f32.mrb[52].mxu1 }
 0xa55   :  { %v2152_v6 = vadd.f32 %v2105_v42, %v1703_v55  ;;  %v2107_v0 = vpop.f32.mrb[69].mxu0  ;;  %v3380_v56 = vpop.f32.mrb[53].mxu1  ;;  %v2166_v60 = vadd.f32 %v4915_v28, %v2146_v18  ;;  %v1775_v55 = vadd.f32 %v4819_v61, %v4919_v21  ;;  %v1711_v18 = vadd.f32 %v4823_v54, %v4906_v62 }
 0xa56   :  { %v2159_v31 = vadd.f32 %v2107_v0, %v1705_v20  ;;  %v2109_v37 = vpop.f32.mrb[70].mxu0  ;;  %v2149_v43 = vpop.f32.mrb[54].mxu1 }
 0xa57   :  { %v2952_v63 = vmul.f32 -1.442695, %v2152_v6  ;;  %v2110_v59 = vpop.f32.mrb[71].mxu0  ;;  %v3381_v17 = vpop.f32.mrb[55].mxu1 }
 0xa58   :  { %v2953_v44 = vmul.f32 -1.442695, %v2159_v31 }
 0xa59   :  { %3727 = vpow2.f32 %v2952_v63 }
 0xa5a   :  { %3729 = vpow2.f32 %v2953_v44 }
 0xa63   :  { %v3728_v45 = vpop.eup %3727 }
 0xa64   :  { %v2156_v48 = vadd.f32 1.0, %v3728_v45  ;;  %v3730_v1 = vpop.eup %3729 }
 0xa65   :  { %v2163_v52 = vadd.f32 1.0, %v3730_v1 }
 0xa66   :  { %3731 = vrcp.f32 %v2156_v48 }
 0xa67   :  { %3733 = vrcp.f32 %v2163_v52 }
 0xa70   :  { %v3732_v51 = vpop.eup %3731 }
 0xa71   :  { %v2167_v20 = vmul.f32 %v3732_v51, %v2166_v60  ;;  %v3734_v6 = vpop.eup %3733 }
 0xa72   :  { %v2170_v0 = vsub.f32 1.0, %v3734_v6  ;;  %v2172_v37 = vmul.f32 %v3734_v6, %v4924_v58  ;;  %v1709_v58 = vadd.f32 %v4821_v3, %v4898_v14 }
 0xa73   :  { %v2168_v42 = vadd.f32 %v2167_v20, %v1775_v55 }
 0xa75   :  { %3735 = vtanh.f32 %v2168_v42 }
 0xa7f   :  { %v3736_v56 = vpop.eup %3735 }
 0xa80   :  { %v2171_v31 = vmul.f32 %v3736_v56, %v2170_v0 }
 0xa82   :  { %v4975_v43 = vadd.f32 %v2172_v37, %v2171_v31  ;;  %v1780_v31 = vadd.f32 %v4807_v23, %v4919_v21 }
 0xa84   :  { %2174 = vst [vmem:[%s5311_s9 + $0x8] sm:$0xff] %v4975_v43  ;;  %v2178_v61 = vpack.c.bf16 %v4975_v43, %v4975_v43 }
 0xa86   :  { %2212 = vmatmul.mubr.bf16.vlgmr.msra.gmra.mrb[72].mxu0 %v2178_v61  ;;  %3399 = vmatmul.mubr.bf16.vlgmr.msra.gmra.mrb[56].mxu1 %v2178_v61 }
 0xa87   :  { %2288 = vmatpush1.bf16.msra.mxu0 %v4654_v57  ;;  %3403 = vmatpush3.bf16.msra.mxu1 %v4726_v27 }
 0xa88   :  { %2289 = vmatprep.subr.bf16.mxu0 %v4661_v22  ;;  %3404 = vmatprep.subr.bf16.mxu1 %v5326_v5 }
 0xa89   :  { %2319 = vmatprep.mubr.bf16.mxu0 %v5327_v15  ;;  %3418 = vmatprep.mubr.msk.bf16.mxu1 %vm3847_vm0, %v5326_v5 }
 0xa8b   :  { %2290 = vmatpush1.bf16.msra.mxu0 %v4666_v8  ;;  %3405 = vmatpush3.bf16.msra.mxu1 %v4743_v30 }
 0xa8c   :  { %2291 = vmatprep.subr.bf16.mxu0 %v4673_v25  ;;  %3406 = vmatprep.subr.bf16.mxu1 %v5326_v5 }
 0xa8f   :  { %2292 = vmatpush1.bf16.msra.mxu0 %v4678_v7  ;;  %3407 = vmatpush3.bf16.msra.mxu1 %v4759_v33 }
 0xa90   :  { %2293 = vmatprep.subr.bf16.mxu0 %v4685_v12  ;;  %3408 = vmatprep.subr.bf16.mxu1 %v5326_v5 }
 0xa93   :  { %2294 = vmatpush1.bf16.msra.mxu0 %v4690_v10  ;;  %3409 = vmatpush3.bf16.msra.mxu1 %v4766_v35 }
 0xa94   :  { %2295 = vmatprep.subr.bf16.mxu0 %v4697_v16  ;;  %3410 = vmatprep.subr.bf16.mxu1 %v5326_v5 }
 0xa97   :  { %2296 = vmatpush1.bf16.msra.mxu0 %v4702_v9  ;;  %3411 = vmatpush3.bf16.msra.mxu1 %v4773_v36 }
 0xa98   :  { %2297 = vmatprep.subr.bf16.mxu0 %v4707_v13  ;;  %3412 = vmatprep.subr.bf16.mxu1 %v5326_v5 }
 0xa9b   :  { %2298 = vmatpush1.bf16.msra.mxu0 %v4714_v19  ;;  %3413 = vmatpush3.bf16.msra.mxu1 %v4780_v38 }
 0xa9c   :  { %2299 = vmatprep.subr.bf16.mxu0 %v4721_v26  ;;  %3414 = vmatprep.subr.bf16.mxu1 %v5326_v5 }
 0xa9f   :  { %2300 = vmatpush1.bf16.msra.mxu0 %v4731_v29  ;;  %3415 = vmatpush3.bf16.msra.mxu1 %v4787_v39 }
 0xaa0   :  { %2301 = vmatprep.subr.bf16.mxu0 %v4736_v53  ;;  %3416 = vmatprep.subr.bf16.mxu1 %v5326_v5 }
 0xaa3   :  { %2302 = vmatpush1.bf16.msra.mxu0 %v4750_v32  ;;  %3417 = vmatpush3.bf16.msra.mxu1 %v4794_v40 }
 0xaa4   :  { %2395 = vmatprep.subr.bf16.mxu0 %v4649_v4  ;;  %3422 = vmatprep.subr.bf16.mxu1 %v5326_v5 }
 0xb59   :  { %v2213_v63 = vpop.f32.mrb[72].mxu0  ;;  %v2254_v59 = vpop.f32.mrb[56].mxu1 }
 0xb5a   :  { %v2260_v17 = vadd.f32 %v2213_v63, %v1709_v58  ;;  %v2215_v44 = vpop.f32.mrb[73].mxu0  ;;  %v3400_v45 = vpop.f32.mrb[57].mxu1  ;;  %v2274_v54 = vadd.f32 %v4915_v28, %v2254_v59  ;;  %v1715_v59 = vadd.f32 %v4827_v41, %v4906_v62 }
 0xb5b   :  { %v2267_v48 = vadd.f32 %v2215_v44, %v1711_v18  ;;  %v2217_v1 = vpop.f32.mrb[74].mxu0  ;;  %v2257_v52 = vpop.f32.mrb[58].mxu1 }
 0xb5c   :  { %v2954_v60 = vmul.f32 -1.442695, %v2260_v17  ;;  %v2218_v51 = vpop.f32.mrb[75].mxu0  ;;  %v3401_v55 = vpop.f32.mrb[59].mxu1 }
 0xb5d   :  { %v2955_v20 = vmul.f32 -1.442695, %v2267_v48 }
 0xb5e   :  { %3737 = vpow2.f32 %v2954_v60 }
 0xb5f   :  { %3739 = vpow2.f32 %v2955_v20 }
 0xb68   :  { %v3738_v42 = vpop.eup %3737 }
 0xb69   :  { %v2264_v6 = vadd.f32 1.0, %v3738_v42  ;;  %v3740_v3 = vpop.eup %3739 }
 0xb6a   :  { %v2271_v0 = vadd.f32 1.0, %v3740_v3 }
 0xb6b   :  { %3741 = vrcp.f32 %v2264_v6 }
 0xb6c   :  { %3743 = vrcp.f32 %v2271_v0 }
 0xb75   :  { %v3742_v56 = vpop.eup %3741 }
 0xb76   :  { %v2275_v37 = vmul.f32 %v3742_v56, %v2274_v54  ;;  %v3744_v58 = vpop.eup %3743 }
 0xb77   :  { %v2278_v18 = vsub.f32 1.0, %v3744_v58  ;;  %v2280_v44 = vmul.f32 %v3744_v58, %v4975_v43  ;;  %v1713_v43 = vadd.f32 %v4825_v24, %v4898_v14  ;;  %v1783_v58 = vadd.f32 %v4815_v34, %v4919_v21 }
 0xb78   :  { %v2276_v61 = vadd.f32 %v2275_v37, %v1780_v31 }
 0xb7a   :  { %3745 = vtanh.f32 %v2276_v61 }
 0xb84   :  { %v3746_v63 = vpop.eup %3745 }
 0xb85   :  { %v2279_v17 = vmul.f32 %v3746_v63, %v2278_v18 }
 0xb87   :  { %v5026_v45 = vadd.f32 %v2280_v44, %v2279_v17 }
 0xb89   :  { %2282 = vst [vmem:[%s5311_s9 + $0x10] sm:$0xff] %v5026_v45  ;;  %v2286_v23 = vpack.c.bf16 %v5026_v45, %v5026_v45 }
 0xb8b   :  { %2320 = vmatmul.mubr.bf16.vlgmr.msra.gmra.mrb[76].mxu0 %v2286_v23  ;;  %3419 = vmatmul.mubr.bf16.vlgmr.msra.gmra.mrb[60].mxu1 %v2286_v23 }
 0xb8c   :  { %2396 = vmatpush1.bf16.msra.mxu0 %v4654_v57  ;;  %3423 = vmatpush3.bf16.msra.mxu1 %v4726_v27 }
 0xb8d   :  { %2397 = vmatprep.subr.bf16.mxu0 %v4661_v22  ;;  %3424 = vmatprep.subr.bf16.mxu1 %v5326_v5 }
 0xb8e   :  { %2427 = vmatprep.mubr.bf16.mxu0 %v5327_v15  ;;  %3438 = vmatprep.mubr.msk.bf16.mxu1 %vm3847_vm0, %v5326_v5 }
 0xb90   :  { %2398 = vmatpush1.bf16.msra.mxu0 %v4666_v8  ;;  %3425 = vmatpush3.bf16.msra.mxu1 %v4743_v30 }
 0xb91   :  { %2399 = vmatprep.subr.bf16.mxu0 %v4673_v25  ;;  %3426 = vmatprep.subr.bf16.mxu1 %v5326_v5 }
 0xb94   :  { %2400 = vmatpush1.bf16.msra.mxu0 %v4678_v7  ;;  %3427 = vmatpush3.bf16.msra.mxu1 %v4759_v33 }
 0xb95   :  { %2401 = vmatprep.subr.bf16.mxu0 %v4685_v12  ;;  %3428 = vmatprep.subr.bf16.mxu1 %v5326_v5 }
 0xb98   :  { %2402 = vmatpush1.bf16.msra.mxu0 %v4690_v10  ;;  %3429 = vmatpush3.bf16.msra.mxu1 %v4766_v35 }
 0xb99   :  { %2403 = vmatprep.subr.bf16.mxu0 %v4697_v16  ;;  %3430 = vmatprep.subr.bf16.mxu1 %v5326_v5 }
 0xb9c   :  { %2404 = vmatpush1.bf16.msra.mxu0 %v4702_v9  ;;  %3431 = vmatpush3.bf16.msra.mxu1 %v4773_v36 }
 0xb9d   :  { %2405 = vmatprep.subr.bf16.mxu0 %v4707_v13  ;;  %3432 = vmatprep.subr.bf16.mxu1 %v5326_v5 }
 0xba0   :  { %2406 = vmatpush1.bf16.msra.mxu0 %v4714_v19  ;;  %3433 = vmatpush3.bf16.msra.mxu1 %v4780_v38 }
 0xba1   :  { %2407 = vmatprep.subr.bf16.mxu0 %v4721_v26  ;;  %3434 = vmatprep.subr.bf16.mxu1 %v5326_v5 }
 0xba4   :  { %2408 = vmatpush1.bf16.msra.mxu0 %v4731_v29  ;;  %3435 = vmatpush3.bf16.msra.mxu1 %v4787_v39 }
 0xba5   :  { %2409 = vmatprep.subr.bf16.mxu0 %v4736_v53  ;;  %3436 = vmatprep.subr.bf16.mxu1 %v5326_v5 }
 0xba8   :  { %2410 = vmatpush1.bf16.msra.mxu0 %v4750_v32  ;;  %3437 = vmatpush3.bf16.msra.mxu1 %v4794_v40 }
 0xba9   :  { %2503 = vmatprep.subr.bf16.mxu0 %v4649_v4  ;;  %3442 = vmatprep.subr.bf16.mxu1 %v5326_v5 }
 0xc5e   :  { %v2321_v48 = vpop.f32.mrb[76].mxu0  ;;  %v2362_v1 = vpop.f32.mrb[60].mxu1 }
 0xc5f   :  { %v2368_v52 = vadd.f32 %v2321_v48, %v1713_v43  ;;  %v2323_v60 = vpop.f32.mrb[77].mxu0  ;;  %v3420_v51 = vpop.f32.mrb[61].mxu1  ;;  %v2382_v41 = vadd.f32 %v4915_v28, %v2362_v1 }
 0xc60   :  { %v2375_v55 = vadd.f32 %v2323_v60, %v1715_v59  ;;  %v2325_v20 = vpop.f32.mrb[78].mxu0  ;;  %v2365_v42 = vpop.f32.mrb[62].mxu1 }
 0xc61   :  { %v2956_v6 = vmul.f32 -1.442695, %v2368_v52  ;;  %v2326_v3 = vpop.f32.mrb[79].mxu0  ;;  %v3421_v0 = vpop.f32.mrb[63].mxu1 }
 0xc62   :  { %v2957_v54 = vmul.f32 -1.442695, %v2375_v55 }
 0xc63   :  { %3747 = vpow2.f32 %v2956_v6 }
 0xc64   :  { %3749 = vpow2.f32 %v2957_v54 }
 0xc6d   :  { %v3748_v56 = vpop.eup %3747 }
 0xc6e   :  { %v2372_v31 = vadd.f32 1.0, %v3748_v56  ;;  %v3750_v24 = vpop.eup %3749 }
 0xc6f   :  { %v2379_v37 = vadd.f32 1.0, %v3750_v24  ;;  %v1788_v24 = vadd.f32 %v4890_v2, %v4919_v21 }
 0xc70   :  { %3751 = vrcp.f32 %v2372_v31 }
 0xc71   :  { %3753 = vrcp.f32 %v2379_v37 }
 0xc7a   :  { %v3752_v61 = vpop.eup %3751 }
 0xc7b   :  { %v2383_v18 = vmul.f32 %v3752_v61, %v2382_v41  ;;  %v3754_v17 = vpop.eup %3753 }
 0xc7c   :  { %v2386_v44 = vsub.f32 1.0, %v3754_v17  ;;  %v2388_v59 = vmul.f32 %v3754_v17, %v5026_v45 }
 0xc7d   :  { %v2384_v63 = vadd.f32 %v2383_v18, %v1783_v58 }
 0xc7f   :  { %3755 = vtanh.f32 %v2384_v63 }
 0xc89   :  { %v3756_v23 = vpop.eup %3755 }
 0xc8a   :  { %v2387_v43 = vmul.f32 %v3756_v23, %v2386_v44  ;;  %v5139_v23 = vld [vmem:[%s5307_s6] ss:$12 sps:$4 sm:$0xff]  }
 0xc8c   :  { %v5077_v48 = vadd.f32 %v2388_v59, %v2387_v43  ;;  %v5146_v43 = vld [vmem:[%s5307_s6 + $0x1c] ss:$12 sps:$4 sm:$0xff]   ;;  %v5156_v59 = vld [vmem:[%s5307_s6 + $0x18] ss:$12 sps:$4 sm:$0xff]  }
 0xc8e   :  { %2390 = vst [vmem:[%s5311_s9 + $0x18] sm:$0xff] %v5077_v48  ;;  %v2394_v34 = vpack.c.bf16 %v5077_v48, %v5077_v48 }
 0xc90   :  { %2428 = vmatmul.mubr.bf16.vlgmr.msra.gmra.mrb[80].mxu0 %v2394_v34  ;;  %3439 = vmatmul.mubr.bf16.vlgmr.msra.gmra.mrb[64].mxu1 %v2394_v34 }
 0xc91   :  { %2504 = vmatpush1.bf16.msra.mxu0 %v4654_v57  ;;  %3443 = vmatpush3.bf16.msra.mxu1 %v4726_v27  ;;  %v1719_v57 = vadd.f32 %v4833_v46, %v4898_v14 }
 0xc92   :  { %2505 = vmatprep.subr.bf16.mxu0 %v4661_v22  ;;  %3444 = vmatprep.subr.bf16.mxu1 %v5326_v5  ;;  %v1721_v22 = vadd.f32 %v4835_v47, %v4906_v62 }
 0xc93   :  { %2535 = vmatprep.mubr.bf16.mxu0 %v5327_v15  ;;  %3458 = vmatprep.mubr.msk.bf16.mxu1 %vm3847_vm0, %v5326_v5 }
 0xc95   :  { %2506 = vmatpush1.bf16.msra.mxu0 %v4666_v8  ;;  %3445 = vmatpush3.bf16.msra.mxu1 %v4743_v30 }
 0xc96   :  { %2507 = vmatprep.subr.bf16.mxu0 %v4673_v25  ;;  %3446 = vmatprep.subr.bf16.mxu1 %v5326_v5 }
 0xc99   :  { %2508 = vmatpush1.bf16.msra.mxu0 %v4678_v7  ;;  %3447 = vmatpush3.bf16.msra.mxu1 %v4759_v33 }
 0xc9a   :  { %2509 = vmatprep.subr.bf16.mxu0 %v4685_v12  ;;  %3448 = vmatprep.subr.bf16.mxu1 %v5326_v5 }
 0xc9d   :  { %2510 = vmatpush1.bf16.msra.mxu0 %v4690_v10  ;;  %3449 = vmatpush3.bf16.msra.mxu1 %v4766_v35 }
 0xc9e   :  { %2511 = vmatprep.subr.bf16.mxu0 %v4697_v16  ;;  %3450 = vmatprep.subr.bf16.mxu1 %v5326_v5 }
 0xca1   :  { %2512 = vmatpush1.bf16.msra.mxu0 %v4702_v9  ;;  %3451 = vmatpush3.bf16.msra.mxu1 %v4773_v36 }
 0xca2   :  { %2513 = vmatprep.subr.bf16.mxu0 %v4707_v13  ;;  %3452 = vmatprep.subr.bf16.mxu1 %v5326_v5 }
 0xca5   :  { %2514 = vmatpush1.bf16.msra.mxu0 %v4714_v19  ;;  %3453 = vmatpush3.bf16.msra.mxu1 %v4780_v38 }
 0xca6   :  { %2515 = vmatprep.subr.bf16.mxu0 %v4721_v26  ;;  %3454 = vmatprep.subr.bf16.mxu1 %v5326_v5 }
 0xca9   :  { %2516 = vmatpush1.bf16.msra.mxu0 %v4731_v29  ;;  %3455 = vmatpush3.bf16.msra.mxu1 %v4787_v39 }
 0xcaa   :  { %2517 = vmatprep.subr.bf16.mxu0 %v4736_v53  ;;  %3456 = vmatprep.subr.bf16.mxu1 %v5326_v5 }
 0xcad   :  { %2518 = vmatpush1.bf16.msra.mxu0 %v4750_v32  ;;  %3457 = vmatpush3.bf16.msra.mxu1 %v4794_v40 }
 0xcae   :  { %2611 = vmatprep.subr.bf16.mxu0 %v4649_v4  ;;  %3462 = vmatprep.subr.bf16.mxu1 %v5326_v5 }
 0xd63   :  { %v2429_v8 = vpop.f32.mrb[80].mxu0  ;;  %v2470_v45 = vpop.f32.mrb[64].mxu1 }
 0xd64   :  { %v2476_v1 = vadd.f32 %v2429_v8, %v1719_v57  ;;  %v2431_v52 = vpop.f32.mrb[81].mxu0  ;;  %v3440_v60 = vpop.f32.mrb[65].mxu1  ;;  %v2490_v47 = vadd.f32 %v4915_v28, %v2470_v45 }
 0xd65   :  { %v2483_v51 = vadd.f32 %v2431_v52, %v1721_v22  ;;  %v2433_v55 = vpop.f32.mrb[82].mxu0  ;;  %v2473_v20 = vpop.f32.mrb[66].mxu1  ;;  %v3825_v60 = vld [vmem:[%s5307_s6 + $0x8] ss:$12 sps:$4 sm:$0xff]  }
 0xd66   :  { %v2958_v42 = vmul.f32 -1.442695, %v2476_v1  ;;  %v2434_v6 = vpop.f32.mrb[83].mxu0  ;;  %v3441_v3 = vpop.f32.mrb[67].mxu1  ;;  %v3827_v55 = vld [vmem:[%s5307_s6 + $0x34] ss:$12 sps:$4 sm:$0xff]  }
 0xd67   :  { %v2959_v4 = vmul.f32 -1.442695, %v2483_v51  ;;  %v3826_v51 = vld [vmem:[%s5307_s6 + $0x20] ss:$12 sps:$4 sm:$0xff]   ;;  %v3829_v20 = vld [vmem:[%s5307_s6 + $0x38] ss:$12 sps:$4 sm:$0xff]  }
 0xd68   :  { %3757 = vpow2.f32 %v2958_v42  ;;  %v3830_v42 = vld [vmem:[%s5307_s6 + $0x4c] ss:$12 sps:$4 sm:$0xff]   ;;  %v3831_v6 = vld [vmem:[%s5307_s6 + $0x48] ss:$12 sps:$4 sm:$0xff]   ;;  %v3832_v3 = vld [vmem:[%s5307_s6 + $0x50] ss:$12 sps:$4 sm:$0xff]  }
 0xd69   :  { %3759 = vpow2.f32 %v2959_v4  ;;  %v3833_v4 = vld [vmem:[%s5307_s6 + $0x64] ss:$12 sps:$4 sm:$0xff]  }
 0xd72   :  { %v3758_v0 = vpop.eup %3757 }
 0xd73   :  { %v2480_v54 = vadd.f32 1.0, %v3758_v0  ;;  %v3760_v46 = vpop.eup %3759  ;;  %v3834_v0 = vld [vmem:[%s5307_s6 + $0x60] ss:$12 sps:$4 sm:$0xff]  }
 0xd74   :  { %v2487_v56 = vadd.f32 1.0, %v3760_v46  ;;  %v3836_v46 = vld [vmem:[%s5307_s6 + $0x7c] ss:$12 sps:$4 sm:$0xff]  }
 0xd75   :  { %3761 = vrcp.f32 %v2480_v54  ;;  %v3835_v54 = vld [vmem:[%s5307_s6 + $0x68] ss:$12 sps:$4 sm:$0xff]  }
 0xd76   :  { %3763 = vrcp.f32 %v2487_v56  ;;  %v3837_v56 = vld [vmem:[%s5307_s6 + $0x78] ss:$12 sps:$4 sm:$0xff]  }
 0xd7f   :  { %v3762_v31 = vpop.eup %3761 }
 0xd80   :  { %v2491_v37 = vmul.f32 %v3762_v31, %v2490_v47  ;;  %v3764_v61 = vpop.eup %3763  ;;  %v3838_v47 = vld [vmem:[%s5307_s6 + $0x80] ss:$12 sps:$4 sm:$0xff]  }
 0xd81   :  { %v2494_v58 = vsub.f32 1.0, %v3764_v61  ;;  %v2496_v17 = vmul.f32 %v3764_v61, %v5077_v48  ;;  %v3839_v31 = vld [vmem:[%s5307_s6 + $0x94] ss:$12 sps:$4 sm:$0xff]  }
 0xd82   :  { %v2492_v41 = vadd.f32 %v2491_v37, %v1788_v24  ;;  %v3840_v24 = vld [vmem:[%s5307_s6 + $0x90] ss:$12 sps:$4 sm:$0xff]   ;;  %v3841_v37 = vld [vmem:[%s5307_s6 + $0x98] ss:$12 sps:$4 sm:$0xff]   ;;  %v3843_v61 = vld [vmem:[%s5307_s6 + $0xa8] ss:$12 sps:$4 sm:$0xff]  }
 0xd84   :  { %3765 = vtanh.f32 %v2492_v41  ;;  %v3842_v41 = vld [vmem:[%s5307_s6 + $0xac] ss:$12 sps:$4 sm:$0xff]  }
 0xd8e   :  { %v3766_v18 = vpop.eup %3765 }
 0xd8f   :  { %v2495_v63 = vmul.f32 %v3766_v18, %v2494_v58  ;;  %v3844_v58 = vld [vmem:[%s5307_s6 + $0xb0] ss:$12 sps:$4 sm:$0xff]  }
 0xd90   :  { %v5342_v18 = vld [vmem:[#allocation7_spill] sm:$0xff] }
 0xd91   :  { %v5128_v44 = vadd.f32 %v2496_v17, %v2495_v63  ;;  %v1729_v63 = vadd.f32 %v5342_v18, %v4898_v14  ;;  %v5343_v17 = vld [vmem:[#allocation8_spill] sm:$0xff] }
 0xd93   :  { %2498 = vst [vmem:[%s5311_s9 + $0x20] sm:$0xff] %v5128_v44  ;;  %v2502_v2 = vpack.c.bf16 %v5128_v44, %v5128_v44 }
 0xd95   :  { %2536 = vmatmul.mubr.bf16.vlgmr.msra.gmra.mrb[84].mxu0 %v2502_v2  ;;  %3459 = vmatmul.mubr.bf16.vlgmr.msra.gmra.mrb[68].mxu1 %v2502_v2 }
 0xd96   :  { %2612 = vmatpush1.bf16.msra.mxu0 %v5139_v23  ;;  %3463 = vmatpush3.bf16.msra.mxu1 %v4726_v27 }
 0xd97   :  { %2613 = vmatprep.subr.bf16.mxu0 %v5146_v43  ;;  %3464 = vmatprep.subr.bf16.mxu1 %v5326_v5 }
 0xd98   :  { %2643 = vmatprep.mubr.bf16.mxu0 %v5327_v15  ;;  %3478 = vmatprep.mubr.msk.bf16.mxu1 %vm3847_vm0, %v5326_v5 }
 0xd9a   :  { %2614 = vmatpush1.bf16.msra.mxu0 %v5156_v59  ;;  %3465 = vmatpush3.bf16.msra.mxu1 %v4743_v30 }
 0xd9b   :  { %2615 = vmatprep.subr.bf16.mxu0 %v4673_v25  ;;  %3466 = vmatprep.subr.bf16.mxu1 %v5326_v5  ;;  %v3824_v25 = vld [vmem:[%s5307_s6 + $0x4] ss:$12 sps:$4 sm:$0xff]  }
 0xd9e   :  { %2616 = vmatpush1.bf16.msra.mxu0 %v4678_v7  ;;  %3467 = vmatpush3.bf16.msra.mxu1 %v4759_v33  ;;  %v1723_v7 = vadd.f32 %v4837_v49, %v4898_v14 }
 0xd9f   :  { %2617 = vmatprep.subr.bf16.mxu0 %v4685_v12  ;;  %3468 = vmatprep.subr.bf16.mxu1 %v5326_v5  ;;  %v1725_v12 = vadd.f32 %v4839_v50, %v4906_v62  ;;  %v1791_v50 = vadd.f32 %v4902_v11, %v4919_v21 }
 0xda2   :  { %2618 = vmatpush1.bf16.msra.mxu0 %v4690_v10  ;;  %3469 = vmatpush3.bf16.msra.mxu1 %v4766_v35 }
 0xda3   :  { %2619 = vmatprep.subr.bf16.mxu0 %v4697_v16  ;;  %3470 = vmatprep.subr.bf16.mxu1 %v5326_v5 }
 0xda6   :  { %2620 = vmatpush1.bf16.msra.mxu0 %v4702_v9  ;;  %3471 = vmatpush3.bf16.msra.mxu1 %v4773_v36 }
 0xda7   :  { %2621 = vmatprep.subr.bf16.mxu0 %v4707_v13  ;;  %3472 = vmatprep.subr.bf16.mxu1 %v5326_v5 }
 0xdaa   :  { %2622 = vmatpush1.bf16.msra.mxu0 %v4714_v19  ;;  %3473 = vmatpush3.bf16.msra.mxu1 %v4780_v38 }
 0xdab   :  { %2623 = vmatprep.subr.bf16.mxu0 %v4721_v26  ;;  %3474 = vmatprep.subr.bf16.mxu1 %v5326_v5 }
 0xdae   :  { %2624 = vmatpush1.bf16.msra.mxu0 %v4731_v29  ;;  %3475 = vmatpush3.bf16.msra.mxu1 %v4787_v39 }
 0xdaf   :  { %2625 = vmatprep.subr.bf16.mxu0 %v4736_v53  ;;  %3476 = vmatprep.subr.bf16.mxu1 %v5326_v5 }
 0xdb2   :  { %2626 = vmatpush1.bf16.msra.mxu0 %v4750_v32  ;;  %3477 = vmatpush3.bf16.msra.mxu1 %v4794_v40 }
 0xdb3   :  { %2719 = vmatprep.subr.bf16.mxu0 %v3824_v25  ;;  %3482 = vmatprep.subr.bf16.mxu1 %v5326_v5 }
 0xe68   :  { %v2537_v10 = vpop.f32.mrb[84].mxu0  ;;  %v2578_v16 = vpop.f32.mrb[68].mxu1 }
 0xe69   :  { %v2584_v9 = vadd.f32 %v2537_v10, %v1723_v7  ;;  %v2539_v13 = vpop.f32.mrb[85].mxu0  ;;  %v3460_v19 = vpop.f32.mrb[69].mxu1  ;;  %v2598_v40 = vadd.f32 %v4915_v28, %v2578_v16 }
 0xe6a   :  { %v2591_v26 = vadd.f32 %v2539_v13, %v1725_v12  ;;  %v2541_v27 = vpop.f32.mrb[86].mxu0  ;;  %v2581_v29 = vpop.f32.mrb[70].mxu1 }
 0xe6b   :  { %v2960_v53 = vmul.f32 -1.442695, %v2584_v9  ;;  %v2542_v30 = vpop.f32.mrb[87].mxu0  ;;  %v3461_v32 = vpop.f32.mrb[71].mxu1 }
 0xe6c   :  { %v2961_v33 = vmul.f32 -1.442695, %v2591_v26  ;;  %v5344_v32 = vld [vmem:[#allocation5_spill] sm:$0xff] }
 0xe6d   :  { %3767 = vpow2.f32 %v2960_v53 }
 0xe6e   :  { %3769 = vpow2.f32 %v2961_v33  ;;  %v1796_v33 = vadd.f32 %v5344_v32, %v4919_v21 }
 0xe77   :  { %v3768_v35 = vpop.eup %3767 }
 0xe78   :  { %v2588_v36 = vadd.f32 1.0, %v3768_v35  ;;  %v3770_v38 = vpop.eup %3769 }
 0xe79   :  { %v2595_v39 = vadd.f32 1.0, %v3770_v38 }
 0xe7a   :  { %3771 = vrcp.f32 %v2588_v36 }
 0xe7b   :  { %3773 = vrcp.f32 %v2595_v39 }
 0xe84   :  { %v3772_v49 = vpop.eup %3771 }
 0xe85   :  { %v2599_v48 = vmul.f32 %v3772_v49, %v2598_v40  ;;  %v3774_v57 = vpop.eup %3773 }
 0xe86   :  { %v2602_v22 = vsub.f32 1.0, %v3774_v57  ;;  %v2604_v1 = vmul.f32 %v3774_v57, %v5128_v44  ;;  %v1731_v44 = vadd.f32 %v5343_v17, %v4906_v62  ;;  %v5345_v57 = vld [vmem:[#allocation6_spill] sm:$0xff] }
 0xe87   :  { %v2600_v34 = vadd.f32 %v2599_v48, %v1791_v50 }
 0xe89   :  { %3775 = vtanh.f32 %v2600_v34 }
 0xe93   :  { %v3776_v8 = vpop.eup %3775 }
 0xe94   :  { %v2603_v45 = vmul.f32 %v3776_v8, %v2602_v22  ;;  %v1733_v22 = vadd.f32 %v5345_v57, %v4898_v14  ;;  %v5346_v8 = vld [vmem:[#allocation4_spill] sm:$0xff] }
 0xe96   :  { %v5196_v52 = vadd.f32 %v2604_v1, %v2603_v45  ;;  %v1735_v45 = vadd.f32 %v5346_v8, %v4906_v62 }
 0xe98   :  { %2606 = vst [vmem:[%s5311_s9 + $0x28] sm:$0xff] %v5196_v52  ;;  %v2610_v11 = vpack.c.bf16 %v5196_v52, %v5196_v52 }
 0xe9a   :  { %2644 = vmatmul.mubr.bf16.vlgmr.msra.gmra.mrb[88].mxu0 %v2610_v11  ;;  %3479 = vmatmul.mubr.bf16.vlgmr.msra.gmra.mrb[72].mxu1 %v2610_v11 }
 0xe9b   :  { %2720 = vmatpush1.bf16.msra.mxu0 %v5139_v23  ;;  %3483 = vmatpush3.bf16.msra.mxu1 %v3825_v60 }
 0xe9c   :  { %2721 = vmatprep.subr.bf16.mxu0 %v5146_v43  ;;  %3484 = vmatprep.subr.bf16.mxu1 %v5326_v5 }
 0xe9d   :  { %2751 = vmatprep.mubr.bf16.mxu0 %v5327_v15  ;;  %3498 = vmatprep.mubr.msk.bf16.mxu1 %vm3847_vm0, %v5326_v5  ;;  %v3828_v15 = vld [vmem:[%s5307_s6 + $0x30] ss:$12 sps:$4 sm:$0xff]  }
 0xe9f   :  { %2722 = vmatpush1.bf16.msra.mxu0 %v5156_v59  ;;  %3485 = vmatpush3.bf16.msra.mxu1 %v3826_v51 }
 0xea0   :  { %2723 = vmatprep.subr.bf16.mxu0 %v3827_v55  ;;  %3486 = vmatprep.subr.bf16.mxu1 %v5326_v5 }
 0xea3   :  { %2724 = vmatpush1.bf16.msra.mxu0 %v3828_v15  ;;  %3487 = vmatpush3.bf16.msra.mxu1 %v3829_v20 }
 0xea4   :  { %2725 = vmatprep.subr.bf16.mxu0 %v3830_v42  ;;  %3488 = vmatprep.subr.bf16.mxu1 %v5326_v5 }
 0xea7   :  { %2726 = vmatpush1.bf16.msra.mxu0 %v3831_v6  ;;  %3489 = vmatpush3.bf16.msra.mxu1 %v3832_v3 }
 0xea8   :  { %2727 = vmatprep.subr.bf16.mxu0 %v3833_v4  ;;  %3490 = vmatprep.subr.bf16.mxu1 %v5326_v5 }
 0xeab   :  { %2728 = vmatpush1.bf16.msra.mxu0 %v3834_v0  ;;  %3491 = vmatpush3.bf16.msra.mxu1 %v3835_v54 }
 0xeac   :  { %2729 = vmatprep.subr.bf16.mxu0 %v3836_v46  ;;  %3492 = vmatprep.subr.bf16.mxu1 %v5326_v5 }
 0xeaf   :  { %2730 = vmatpush1.bf16.msra.mxu0 %v3837_v56  ;;  %3493 = vmatpush3.bf16.msra.mxu1 %v3838_v47  ;;  %v5347_v47 = vld [vmem:[#allocation9_spill] sm:$0xff] }
 0xeb0   :  { %2731 = vmatprep.subr.bf16.mxu0 %v3839_v31  ;;  %3494 = vmatprep.subr.bf16.mxu1 %v5326_v5  ;;  %v1799_v31 = vadd.f32 %v5347_v47, %v4919_v21 }
 0xeb3   :  { %2732 = vmatpush1.bf16.msra.mxu0 %v3840_v24  ;;  %3495 = vmatpush3.bf16.msra.mxu1 %v3841_v37 }
 0xeb4   :  { %2733 = vmatprep.subr.bf16.mxu0 %v3842_v41  ;;  %3496 = vmatprep.subr.bf16.mxu1 %v5326_v5 }
 0xeb7   :  { %2734 = vmatpush1.bf16.msra.mxu0 %v3843_v61  ;;  %3497 = vmatpush3.bf16.msra.mxu1 %v3844_v58 }
 0xf6d   :  { %v2645_v2 = vpop.f32.mrb[88].mxu0  ;;  %v2686_v23 = vpop.f32.mrb[72].mxu1 }
 0xf6e   :  { %v2692_v43 = vadd.f32 %v2645_v2, %v1729_v63  ;;  %v2647_v5 = vpop.f32.mrb[89].mxu0  ;;  %v3480_v59 = vpop.f32.mrb[73].mxu1  ;;  %v2706_v53 = vadd.f32 %v4915_v28, %v2686_v23 }
 0xf6f   :  { %v2699_v25 = vadd.f32 %v2647_v5, %v1731_v44  ;;  %v2649_v7 = vpop.f32.mrb[90].mxu0  ;;  %v2689_v12 = vpop.f32.mrb[74].mxu1 }
 0xf70   :  { %v2962_v10 = vmul.f32 -1.442695, %v2692_v43  ;;  %v2650_v16 = vpop.f32.mrb[91].mxu0  ;;  %v3481_v9 = vpop.f32.mrb[75].mxu1 }
 0xf71   :  { %v2963_v13 = vmul.f32 -1.442695, %v2699_v25 }
 0xf72   :  { %3777 = vpow2.f32 %v2962_v10 }
 0xf73   :  { %3779 = vpow2.f32 %v2963_v13 }
 0xf7c   :  { %v3778_v19 = vpop.eup %3777 }
 0xf7d   :  { %v2696_v26 = vadd.f32 1.0, %v3778_v19  ;;  %v3780_v27 = vpop.eup %3779 }
 0xf7e   :  { %v2703_v29 = vadd.f32 1.0, %v3780_v27 }
 0xf7f   :  { %3781 = vrcp.f32 %v2696_v26 }
 0xf80   :  { %3783 = vrcp.f32 %v2703_v29 }
 0xf89   :  { %v3782_v30 = vpop.eup %3781 }
 0xf8a   :  { %v2707_v35 = vmul.f32 %v3782_v30, %v2706_v53  ;;  %v3784_v38 = vpop.eup %3783 }
 0xf8b   :  { %v2710_v39 = vsub.f32 1.0, %v3784_v38  ;;  %v2712_v50 = vmul.f32 %v3784_v38, %v5196_v52 }
 0xf8c   :  { %v2708_v36 = vadd.f32 %v2707_v35, %v1796_v33 }
 0xf8e   :  { %3785 = vtanh.f32 %v2708_v36 }
 0xf98   :  { %v3786_v40 = vpop.eup %3785 }
 0xf99   :  { %v2711_v49 = vmul.f32 %v3786_v40, %v2710_v39 }
 0xf9b   :  { %v2713_v48 = vadd.f32 %v2712_v50, %v2711_v49 }
 0xf9d   :  { %2714 = vst [vmem:[%s5311_s9 + $0x30] sm:$0xff] %v2713_v48  ;;  %v2718_v34 = vpack.c.bf16 %v2713_v48, %v2713_v48 }
 0xf9f   :  { %2752 = vmatmul.mubr.bf16.vlgmr.msra.gmra.mrb[92].mxu0 %v2718_v34  ;;  %3499 = vmatmul.mubr.bf16.vlgmr.msra.gmra.mrb[76].mxu1 %v2718_v34 }
0x1072   :  { %v2753_v1 = vpop.f32.mrb[92].mxu0  ;;  %v2794_v11 = vpop.f32.mrb[76].mxu1 }
0x1073   :  { %v2800_v60 = vadd.f32 %v2753_v1, %v1733_v22  ;;  %v2755_v51 = vpop.f32.mrb[93].mxu0  ;;  %v3500_v55 = vpop.f32.mrb[77].mxu1  ;;  %v2814_v62 = vadd.f32 %v4915_v28, %v2794_v11 }
0x1074   :  { %v2807_v52 = vadd.f32 %v2755_v51, %v1735_v45  ;;  %v2757_v15 = vpop.f32.mrb[94].mxu0  ;;  %v2797_v20 = vpop.f32.mrb[78].mxu1 }
0x1075   :  { %v2964_v42 = vmul.f32 -1.442695, %v2800_v60  ;;  %v2758_v6 = vpop.f32.mrb[95].mxu0  ;;  %v3501_v3 = vpop.f32.mrb[79].mxu1 }
0x1076   :  { %v2965_v4 = vmul.f32 -1.442695, %v2807_v52 }
0x1077   :  { %3787 = vpow2.f32 %v2964_v42 }
0x1078   :  { %3789 = vpow2.f32 %v2965_v4 }
0x1081   :  { %v3788_v0 = vpop.eup %3787 }
0x1082   :  { %v2804_v54 = vadd.f32 1.0, %v3788_v0  ;;  %v3790_v14 = vpop.eup %3789 }
0x1083   :  { %v2811_v46 = vadd.f32 1.0, %v3790_v14 }
0x1084   :  { %3791 = vrcp.f32 %v2804_v54 }
0x1085   :  { %3793 = vrcp.f32 %v2811_v46 }
0x108e   :  { %v3792_v56 = vpop.eup %3791 }
0x108f   :  { %v2815_v24 = vmul.f32 %v3792_v56, %v2814_v62  ;;  %v3794_v41 = vpop.eup %3793 }
0x1090   :  { %v2818_v61 = vsub.f32 1.0, %v3794_v41  ;;  %v2820_v63 = vmul.f32 %v3794_v41, %v2713_v48 }
0x1091   :  { %v2816_v37 = vadd.f32 %v2815_v24, %v1799_v31 }
0x1093   :  { %3795 = vtanh.f32 %v2816_v37 }
0x109d   :  { %v3796_v58 = vpop.eup %3795 }
0x109e   :  { %v2819_v18 = vmul.f32 %v3796_v58, %v2818_v61 }
0x10a0   :  { %v2821_v17 = vadd.f32 %v2820_v63, %v2819_v18 }
0x10a2   :  { %2822 = vst [vmem:[%s5311_s9 + $0x38] sm:$0xff] %v2821_v17  ;;  %2823 = vst [vmem:[%s5308_s10 + $0x8] sm:$0xff] %v2821_v17 }

</bundles_post_ra>
